<compile_context>
chip_gen: v7x
topology: tpu7x:2x2x1
jax: 0.10.0
libtpu: 0.0.40
codegen_flags: <defaults>
</compile_context>

<pallas_src>
import functools

import jax
import jax.numpy as jnp
from jax import lax
from jax.experimental import pallas as pl
from jax.experimental.pallas import tpu as pltpu

LANE = 128


def _round_up(x, m):
    return (x + m - 1) // m * m


# --------------------------------------------------------------------------
# Fused Pallas kernel: one grid step == one image
# --------------------------------------------------------------------------

def _bottleneck_kernel(xp_ref, mask_ref, w1_ref, b1_ref, w2_ref, b2_ref,
                       w3_ref, b3_ref, o_ref, a1_ref, acc_ref, *, H, W):
    """Fused Bottleneck forward for one image.

    xp_ref  : (Mp_pad, Cin_p)  bf16  zero-padded image, rows flattened as h*(W+2)+w
    mask_ref: (Mp_pad, 1)      f32   1.0 on interior pixels, 0.0 on padded border
    w*_ref  : bf16 weights with BN scale folded in; b*_ref: (1, C) f32 biases
    o_ref   : (Mo, Cout_p)     f32   Mo = H*(W+2); cols W..W+1 of each row are garbage
    a1_ref  : (Mp_pad, Cw_p)   bf16  VMEM scratch: conv1 output in padded spatial layout
    acc_ref : (Mo, Cw_p)       f32   VMEM scratch: conv2 accumulator
    """
    Wp = W + 2
    Mo = H * Wp

    # ---- stage 1: 1x1 conv (+ folded BN) + ReLU over the whole padded slab ----
    # The border is forced back to zero with `mask` so stage 2 sees true zero
    # padding (otherwise the BN bias would leak into the 3x3 halo).
    y1 = jnp.dot(xp_ref[...], w1_ref[...], preferred_element_type=jnp.float32)
    y1 = jnp.maximum(y1 + b1_ref[...], 0.0) * mask_ref[...]
    a1_ref[...] = y1.astype(a1_ref.dtype)

    # ---- stage 2: 3x3 conv (pad=1) as 9 tap matmuls over contiguous row slabs ----
    # Tap (dy, dx) reads a1[dy*Wp+dx : dy*Wp+dx + Mo, :] — contiguous, no strided
    # slice/reshape copies — and accumulates into a VMEM f32 scratch.
    acc_ref[...] = jnp.dot(a1_ref[pl.ds(0, Mo), :], w2_ref[0],
                           preferred_element_type=jnp.float32)
    for k in range(1, 9):
        dy, dx = k // 3, k % 3
        slab = a1_ref[pl.ds(dy * Wp + dx, Mo), :]
        acc_ref[...] += jnp.dot(slab, w2_ref[k], preferred_element_type=jnp.float32)
    a2 = jnp.maximum(acc_ref[...] + b2_ref[...], 0.0).astype(jnp.bfloat16)

    # ---- stage 3: 1x1 conv (+ folded BN) + residual add + ReLU ----
    y3 = jnp.dot(a2, w3_ref[...], preferred_element_type=jnp.float32)
    # Identity, row-aligned with the output layout: xp[(y+1)*Wp + (x+1)] == x[y, x].
    ident = xp_ref[pl.ds(Wp + 1, Mo), :].astype(jnp.float32)
    o_ref[...] = jnp.maximum(y3 + b3_ref[...] + ident, 0.0).astype(o_ref.dtype)


# --------------------------------------------------------------------------
# Parameter construction (deterministic, mirrors PyTorch Bottleneck.__init__)
# --------------------------------------------------------------------------

def make_bottleneck_params(key, inplanes, planes, base_width=64, groups=1):
    width = int(planes * (base_width / 64.0)) * groups
    out_planes = planes * 4  # expansion = 4
    ks = jax.random.split(key, 16)

    def bn_params(k0, k1, k2, k3, c):
        gamma = 1.0 + 0.1 * jax.random.normal(k0, (c,), jnp.float32)
        beta = 0.1 * jax.random.normal(k1, (c,), jnp.float32)
        mean = 0.1 * jax.random.normal(k2, (c,), jnp.float32)
        var = 0.5 + jnp.abs(jax.random.normal(k3, (c,), jnp.float32))
        return gamma, beta, mean, var

    p = {
        "w1": 0.1 * jax.random.normal(ks[0], (width, inplanes, 1, 1), jnp.float32),
        "w2": 0.1 * jax.random.normal(ks[1], (width, width, 3, 3), jnp.float32),
        "w3": 0.1 * jax.random.normal(ks[2], (out_planes, width, 1, 1), jnp.float32),
        "bn1": bn_params(ks[3], ks[4], ks[5], ks[6], width),
        "bn2": bn_params(ks[7], ks[8], ks[9], ks[10], width),
        "bn3": bn_params(ks[11], ks[12], ks[13], ks[14], out_planes),
    }
    return p, width, out_planes


def _fold_bn(bn, eps=1e-5):
    gamma, beta, mean, var = bn
    scale = gamma / jnp.sqrt(var + eps)
    bias = beta - mean * scale
    return scale, bias


def _pad2(a, rows, cols):
    return jnp.pad(a, ((0, rows - a.shape[0]), (0, cols - a.shape[1])))


# --------------------------------------------------------------------------
# Bottleneck forward using the fused Pallas kernel
# --------------------------------------------------------------------------

def bottleneck_forward(x_nchw, params):
    N, C_in, H, W = x_nchw.shape
    Hp, Wp = H + 2, W + 2
    Mp = Hp * Wp                     # padded rows per image
    Mp_pad = _round_up(Mp + 2, 8)    # +2 rows of slack so the last 3x3 tap slab is in-bounds
    Mo = H * Wp                      # output rows per image (cols W..W+1 are garbage)

    width = params["w1"].shape[0]
    out_planes = params["w3"].shape[0]
    assert C_in == out_planes, (
        "identity shortcut requires inplanes == planes*4 (downsample not implemented)")

    # lane-dense channel sizes (multiples of 128)
    Cin_p = _round_up(C_in, LANE)
    Cw_p = _round_up(width, LANE)
    Cout_p = _round_up(out_planes, LANE)
    assert Cin_p == Cout_p  # needed for the in-kernel residual add

    # ---- fold BN scale into the conv weights; keep only a per-channel bias ----
    s1, b1 = _fold_bn(params["bn1"])
    s2, b2 = _fold_bn(params["bn2"])
    s3, b3 = _fold_bn(params["bn3"])

    w1 = params["w1"][:, :, 0, 0].T * s1[None, :]                  # (Cin, width)
    w2 = jnp.transpose(params["w2"], (2, 3, 1, 0)) * s2            # (3,3,Cin_w,Cout_w)
    w2 = w2.reshape(9, width, width)
    w3 = params["w3"][:, :, 0, 0].T * s3[None, :]                  # (width, out_planes)

    w1p = _pad2(w1, Cin_p, Cw_p).astype(jnp.bfloat16)
    w2p = jnp.pad(w2, ((0, 0), (0, Cw_p - width), (0, Cw_p - width))).astype(jnp.bfloat16)
    w3p = _pad2(w3, Cw_p, Cout_p).astype(jnp.bfloat16)
    b1p = _pad2(b1.reshape(1, -1), 1, Cw_p).astype(jnp.float32)
    b2p = _pad2(b2.reshape(1, -1), 1, Cw_p).astype(jnp.float32)
    b3p = _pad2(b3.reshape(1, -1), 1, Cout_p).astype(jnp.float32)

    # ---- layout glue: NCHW -> NHWC, spatial zero pad, channel pad to 128 lanes,
    # flatten spatial to rows (row = h*(W+2)+w), cast activations to bf16 ----
    x_nhwc = jnp.transpose(x_nchw, (0, 2, 3, 1)).astype(jnp.float32)
    xp = jnp.pad(x_nhwc, ((0, 0), (1, 1), (1, 1), (0, Cin_p - C_in)))
    xp_flat = xp.reshape(N, Mp, Cin_p)
    xp_flat = jnp.pad(xp_flat, ((0, 0), (0, Mp_pad - Mp), (0, 0))).astype(jnp.bfloat16)

    # interior mask: 1.0 inside the original HxW image, 0.0 on the padded border/slack
    mask = jnp.pad(jnp.ones((H, W), jnp.float32), ((1, 1), (1, 1))).reshape(Mp, 1)
    mask = jnp.pad(mask, ((0, Mp_pad - Mp), (0, 0)))

    kernel = functools.partial(_bottleneck_kernel, H=H, W=W)

    grid_spec = pltpu.PrefetchScalarGridSpec(
        num_scalar_prefetch=0,
        grid=(N,),
        in_specs=[
            pl.BlockSpec((None, Mp_pad, Cin_p), lambda n: (n, 0, 0)),   # padded image
            pl.BlockSpec((Mp_pad, 1), lambda n: (0, 0)),                # interior mask
            pl.BlockSpec((Cin_p, Cw_p), lambda n: (0, 0)),              # w1 (folded)
            pl.BlockSpec((1, Cw_p), lambda n: (0, 0)),                  # b1
            pl.BlockSpec((9, Cw_p, Cw_p), lambda n: (0, 0, 0)),         # w2 (folded)
            pl.BlockSpec((1, Cw_p), lambda n: (0, 0)),                  # b2
            pl.BlockSpec((Cw_p, Cout_p), lambda n: (0, 0)),             # w3 (folded)
            pl.BlockSpec((1, Cout_p), lambda n: (0, 0)),                # b3
        ],
        out_specs=pl.BlockSpec((None, Mo, Cout_p), lambda n: (n, 0, 0)),
        scratch_shapes=[
            pltpu.VMEM((Mp_pad, Cw_p), jnp.bfloat16),   # conv1 output (padded layout)
            pltpu.VMEM((Mo, Cw_p), jnp.float32),        # conv2 accumulator
        ],
    )

    out_flat = pl.pallas_call(
        kernel,
        out_shape=jax.ShapeDtypeStruct((N, Mo, Cout_p), jnp.float32),
        grid_spec=grid_spec,
        compiler_params=pltpu.CompilerParams(
            dimension_semantics=("parallel",),   # images are independent -> 2 TCs on v7x
            vmem_limit_bytes=64 * 1024 * 1024,   # per-image working set is ~13 MiB at 56x56x256
        ),
    )(xp_flat, mask, w1p, b1p, w2p, b2p, w3p, b3p)

    # drop the W-garbage columns and padded channels, back to NCHW
    out = out_flat.reshape(N, H, Wp, Cout_p)[:, :, :W, :out_planes]
    return jnp.transpose(out, (0, 3, 1, 2))


# --------------------------------------------------------------------------
# Pure-JAX reference (lax.conv, f32) for verification
# --------------------------------------------------------------------------

def _bn_ref(x_nchw, bn, eps=1e-5):
    gamma, beta, mean, var = bn
    shp = (1, -1, 1, 1)
    return (x_nchw - mean.reshape(shp)) / jnp.sqrt(var.reshape(shp) + eps) \
        * gamma.reshape(shp) + beta.reshape(shp)


def bottleneck_reference(x, p):
    dn = ("NCHW", "OIHW", "NCHW")
    out = lax.conv_general_dilated(x, p["w1"], (1, 1), "VALID", dimension_numbers=dn)
    out = jax.nn.relu(_bn_ref(out, p["bn1"]))
    out = lax.conv_general_dilated(out, p["w2"], (1, 1), ((1, 1), (1, 1)),
                                   dimension_numbers=dn)
    out = jax.nn.relu(_bn_ref(out, p["bn2"]))
    out = lax.conv_general_dilated(out, p["w3"], (1, 1), "VALID", dimension_numbers=dn)
    out = _bn_ref(out, p["bn3"])
    return jax.nn.relu(out + x)


# --------------------------------------------------------------------------

if __name__ == "__main__":
    key = jax.random.PRNGKey(0)
    k_x, k_p = jax.random.split(key)

    # Small config: inplanes = planes * expansion so the identity shortcut is valid.
    N, inplanes, planes, H, W = 2, 16, 4, 16, 16
    params, width, out_planes = make_bottleneck_params(k_p, inplanes, planes)

    x = jax.random.normal(k_x, (N, inplanes, H, W), jnp.float32)

    out = bottleneck_forward(x, params)
    out = jax.block_until_ready(out)

    ref = bottleneck_reference(x, params)
    assert out.shape == (N, out_planes, H, W), out.shape
    max_diff = jnp.max(jnp.abs(out - ref))
    # bf16 matmuls / bf16 identity vs f32 reference -> relaxed tolerance
    assert jnp.allclose(out, ref, atol=5e-2, rtol=5e-2), f"max abs diff {max_diff}"

    print("KERNEL_OK")
</pallas_src>

<mosaic_0001>
module attributes {stable_mosaic.version = 11 : i64} {
  func.func @_bottleneck_kernel(%arg0: i32, %arg1: memref<1x328x128xbf16, #tpu.memory_space<vmem>>, %arg2: memref<328x1xf32, #tpu.memory_space<vmem>>, %arg3: memref<128x128xbf16, #tpu.memory_space<vmem>>, %arg4: memref<1x128xf32, #tpu.memory_space<vmem>>, %arg5: memref<9x128x128xbf16, #tpu.memory_space<vmem>>, %arg6: memref<1x128xf32, #tpu.memory_space<vmem>>, %arg7: memref<128x128xbf16, #tpu.memory_space<vmem>>, %arg8: memref<1x128xf32, #tpu.memory_space<vmem>>, %arg9: memref<1x288x128xf32, #tpu.memory_space<vmem>>, %arg10: memref<328x128xbf16, #tpu.memory_space<vmem>>, %arg11: memref<288x128xf32, #tpu.memory_space<vmem>>) attributes {dimension_semantics = [#tpu.dimension_semantics<parallel>], iteration_bounds = array<i64: 2>, scalar_prefetch = 0 : i64, scratch_operands = 2 : i64, tpu.core_type = #tpu.core_type<tc>, window_params = [{transform_indices = @transform_0, window_bounds = array<i64: 1, 328, 128>}, {pipeline_mode = #tpu.pipeline_mode<synchronous>, transform_indices = @transform_1, window_bounds = array<i64: 328, 1>}, {pipeline_mode = #tpu.pipeline_mode<synchronous>, transform_indices = @transform_2, window_bounds = array<i64: 128, 128>}, {pipeline_mode = #tpu.pipeline_mode<synchronous>, transform_indices = @transform_3, window_bounds = array<i64: 1, 128>}, {pipeline_mode = #tpu.pipeline_mode<synchronous>, transform_indices = @transform_4, window_bounds = array<i64: 9, 128, 128>}, {pipeline_mode = #tpu.pipeline_mode<synchronous>, transform_indices = @transform_5, window_bounds = array<i64: 1, 128>}, {pipeline_mode = #tpu.pipeline_mode<synchronous>, transform_indices = @transform_6, window_bounds = array<i64: 128, 128>}, {pipeline_mode = #tpu.pipeline_mode<synchronous>, transform_indices = @transform_7, window_bounds = array<i64: 1, 128>}, {transform_indices = @transform_8, window_bounds = array<i64: 1, 288, 128>}]} {
    %c0 = arith.constant 0 : index
    %c0_0 = arith.constant 0 : index
    %c0_1 = arith.constant 0 : index
    %0 = vector.load %arg1[%c0, %c0_0, %c0_1] : memref<1x328x128xbf16, #tpu.memory_space<vmem>>, vector<1x328x128xbf16>
    %1 = vector.shape_cast %0 : vector<1x328x128xbf16> to vector<328x128xbf16>
    %c0_2 = arith.constant 0 : index
    %c0_3 = arith.constant 0 : index
    %2 = vector.load %arg3[%c0_2, %c0_3] : memref<128x128xbf16, #tpu.memory_space<vmem>>, vector<128x128xbf16>
    %cst = arith.constant dense<0.000000e+00> : vector<328x128xf32>
    %3 = tpu.matmul %1, %2, %cst {dimension_numbers = #tpu.dot_dimension_numbers<[1], [0], [0], [1], [0, 0, 1, 1], [], []>} : vector<328x128xbf16>, vector<128x128xbf16>, vector<328x128xf32> -> vector<328x128xf32>
    %c0_4 = arith.constant 0 : index
    %c0_5 = arith.constant 0 : index
    %4 = vector.load %arg4[%c0_4, %c0_5] : memref<1x128xf32, #tpu.memory_space<vmem>>, vector<1x128xf32>
    %5 = vector.broadcast %4 : vector<1x128xf32> to vector<328x128xf32>
    %6 = arith.addf %3, %5 : vector<328x128xf32>
    %cst_6 = arith.constant 0.000000e+00 : f32
    %7 = vector.broadcast %cst_6 : f32 to vector<328x128xf32>
    %8 = arith.maximumf %6, %7 : vector<328x128xf32>
    %c0_7 = arith.constant 0 : index
    %c0_8 = arith.constant 0 : index
    %9 = vector.load %arg2[%c0_7, %c0_8] : memref<328x1xf32, #tpu.memory_space<vmem>>, vector<328x1xf32>
    %10 = vector.broadcast %9 : vector<328x1xf32> to vector<328x128xf32>
    %11 = arith.mulf %8, %10 : vector<328x128xf32>
    %12 = arith.truncf %11 : vector<328x128xf32> to vector<328x128xbf16>
    %c0_9 = arith.constant 0 : index
    %c0_10 = arith.constant 0 : index
    %13 = vector.load %arg10[%c0_9, %c0_10] : memref<328x128xbf16, #tpu.memory_space<vmem>>, vector<328x128xbf16>
    tpu.vector_store %arg10[%c0_9, %c0_10], %12 {strides = array<i32>} : memref<328x128xbf16, #tpu.memory_space<vmem>>, vector<328x128xbf16>,
    %c0_11 = arith.constant 0 : index
    %c0_12 = arith.constant 0 : index
    %14 = vector.load %arg10[%c0_11, %c0_12] : memref<328x128xbf16, #tpu.memory_space<vmem>>, vector<288x128xbf16>
    %c0_13 = arith.constant 0 : index
    %c0_14 = arith.constant 0 : index
    %c0_15 = arith.constant 0 : index
    %15 = vector.load %arg5[%c0_13, %c0_14, %c0_15] : memref<9x128x128xbf16, #tpu.memory_space<vmem>>, vector<1x128x128xbf16>
    %16 = vector.shape_cast %15 : vector<1x128x128xbf16> to vector<128x128xbf16>
    %cst_16 = arith.constant dense<0.000000e+00> : vector<288x128xf32>
    %17 = tpu.matmul %14, %16, %cst_16 {dimension_numbers = #tpu.dot_dimension_numbers<[1], [0], [0], [1], [0, 0, 1, 1], [], []>} : vector<288x128xbf16>, vector<128x128xbf16>, vector<288x128xf32> -> vector<288x128xf32>
    %c0_17 = arith.constant 0 : index
    %c0_18 = arith.constant 0 : index
    %18 = vector.load %arg11[%c0_17, %c0_18] : memref<288x128xf32, #tpu.memory_space<vmem>>, vector<288x128xf32>
    tpu.vector_store %arg11[%c0_17, %c0_18], %17 {strides = array<i32>} : memref<288x128xf32, #tpu.memory_space<vmem>>, vector<288x128xf32>,
    %c1 = arith.constant 1 : index
    %c0_19 = arith.constant 0 : index
    %19 = vector.load %arg10[%c1, %c0_19] : memref<328x128xbf16, #tpu.memory_space<vmem>>, vector<288x128xbf16>
    %c0_20 = arith.constant 0 : index
    %c0_21 = arith.constant 0 : index
    %20 = vector.load %arg11[%c0_20, %c0_21] : memref<288x128xf32, #tpu.memory_space<vmem>>, vector<288x128xf32>
    %c1_22 = arith.constant 1 : index
    %c0_23 = arith.constant 0 : index
    %c0_24 = arith.constant 0 : index
    %21 = vector.load %arg5[%c1_22, %c0_23, %c0_24] : memref<9x128x128xbf16, #tpu.memory_space<vmem>>, vector<1x128x128xbf16>
    %22 = vector.shape_cast %21 : vector<1x128x128xbf16> to vector<128x128xbf16>
    %cst_25 = arith.constant dense<0.000000e+00> : vector<288x128xf32>
    %23 = tpu.matmul %19, %22, %cst_25 {dimension_numbers = #tpu.dot_dimension_numbers<[1], [0], [0], [1], [0, 0, 1, 1], [], []>} : vector<288x128xbf16>, vector<128x128xbf16>, vector<288x128xf32> -> vector<288x128xf32>
    %24 = arith.addf %20, %23 : vector<288x128xf32>
    %c0_26 = arith.constant 0 : index
    %c0_27 = arith.constant 0 : index
    %25 = vector.load %arg11[%c0_26, %c0_27] : memref<288x128xf32, #tpu.memory_space<vmem>>, vector<288x128xf32>
    tpu.vector_store %arg11[%c0_26, %c0_27], %24 {strides = array<i32>} : memref<288x128xf32, #tpu.memory_space<vmem>>, vector<288x128xf32>,
    %c2 = arith.constant 2 : index
    %c0_28 = arith.constant 0 : index
    %26 = vector.load %arg10[%c2, %c0_28] : memref<328x128xbf16, #tpu.memory_space<vmem>>, vector<288x128xbf16>
    %c0_29 = arith.constant 0 : index
    %c0_30 = arith.constant 0 : index
    %27 = vector.load %arg11[%c0_29, %c0_30] : memref<288x128xf32, #tpu.memory_space<vmem>>, vector<288x128xf32>
    %c2_31 = arith.constant 2 : index
    %c0_32 = arith.constant 0 : index
    %c0_33 = arith.constant 0 : index
    %28 = vector.load %arg5[%c2_31, %c0_32, %c0_33] : memref<9x128x128xbf16, #tpu.memory_space<vmem>>, vector<1x128x128xbf16>
    %29 = vector.shape_cast %28 : vector<1x128x128xbf16> to vector<128x128xbf16>
    %cst_34 = arith.constant dense<0.000000e+00> : vector<288x128xf32>
    %30 = tpu.matmul %26, %29, %cst_34 {dimension_numbers = #tpu.dot_dimension_numbers<[1], [0], [0], [1], [0, 0, 1, 1], [], []>} : vector<288x128xbf16>, vector<128x128xbf16>, vector<288x128xf32> -> vector<288x128xf32>
    %31 = arith.addf %27, %30 : vector<288x128xf32>
    %c0_35 = arith.constant 0 : index
    %c0_36 = arith.constant 0 : index
    %32 = vector.load %arg11[%c0_35, %c0_36] : memref<288x128xf32, #tpu.memory_space<vmem>>, vector<288x128xf32>
    tpu.vector_store %arg11[%c0_35, %c0_36], %31 {strides = array<i32>} : memref<288x128xf32, #tpu.memory_space<vmem>>, vector<288x128xf32>,
    %c18 = arith.constant 18 : index
    %c0_37 = arith.constant 0 : index
    %33 = vector.load %arg10[%c18, %c0_37] : memref<328x128xbf16, #tpu.memory_space<vmem>>, vector<288x128xbf16>
    %c0_38 = arith.constant 0 : index
    %c0_39 = arith.constant 0 : index
    %34 = vector.load %arg11[%c0_38, %c0_39] : memref<288x128xf32, #tpu.memory_space<vmem>>, vector<288x128xf32>
    %c3 = arith.constant 3 : index
    %c0_40 = arith.constant 0 : index
    %c0_41 = arith.constant 0 : index
    %35 = vector.load %arg5[%c3, %c0_40, %c0_41] : memref<9x128x128xbf16, #tpu.memory_space<vmem>>, vector<1x128x128xbf16>
    %36 = vector.shape_cast %35 : vector<1x128x128xbf16> to vector<128x128xbf16>
    %cst_42 = arith.constant dense<0.000000e+00> : vector<288x128xf32>
    %37 = tpu.matmul %33, %36, %cst_42 {dimension_numbers = #tpu.dot_dimension_numbers<[1], [0], [0], [1], [0, 0, 1, 1], [], []>} : vector<288x128xbf16>, vector<128x128xbf16>, vector<288x128xf32> -> vector<288x128xf32>
    %38 = arith.addf %34, %37 : vector<288x128xf32>
    %c0_43 = arith.constant 0 : index
    %c0_44 = arith.constant 0 : index
    %39 = vector.load %arg11[%c0_43, %c0_44] : memref<288x128xf32, #tpu.memory_space<vmem>>, vector<288x128xf32>
    tpu.vector_store %arg11[%c0_43, %c0_44], %38 {strides = array<i32>} : memref<288x128xf32, #tpu.memory_space<vmem>>, vector<288x128xf32>,
    %c19 = arith.constant 19 : index
    %c0_45 = arith.constant 0 : index
    %40 = vector.load %arg10[%c19, %c0_45] : memref<328x128xbf16, #tpu.memory_space<vmem>>, vector<288x128xbf16>
    %c0_46 = arith.constant 0 : index
    %c0_47 = arith.constant 0 : index
    %41 = vector.load %arg11[%c0_46, %c0_47] : memref<288x128xf32, #tpu.memory_space<vmem>>, vector<288x128xf32>
    %c4 = arith.constant 4 : index
    %c0_48 = arith.constant 0 : index
    %c0_49 = arith.constant 0 : index
    %42 = vector.load %arg5[%c4, %c0_48, %c0_49] : memref<9x128x128xbf16, #tpu.memory_space<vmem>>, vector<1x128x128xbf16>
    %43 = vector.shape_cast %42 : vector<1x128x128xbf16> to vector<128x128xbf16>
    %cst_50 = arith.constant dense<0.000000e+00> : vector<288x128xf32>
    %44 = tpu.matmul %40, %43, %cst_50 {dimension_numbers = #tpu.dot_dimension_numbers<[1], [0], [0], [1], [0, 0, 1, 1], [], []>} : vector<288x128xbf16>, vector<128x128xbf16>, vector<288x128xf32> -> vector<288x128xf32>
    %45 = arith.addf %41, %44 : vector<288x128xf32>
    %c0_51 = arith.constant 0 : index
    %c0_52 = arith.constant 0 : index
    %46 = vector.load %arg11[%c0_51, %c0_52] : memref<288x128xf32, #tpu.memory_space<vmem>>, vector<288x128xf32>
    tpu.vector_store %arg11[%c0_51, %c0_52], %45 {strides = array<i32>} : memref<288x128xf32, #tpu.memory_space<vmem>>, vector<288x128xf32>,
    %c20 = arith.constant 20 : index
    %c0_53 = arith.constant 0 : index
    %47 = vector.load %arg10[%c20, %c0_53] : memref<328x128xbf16, #tpu.memory_space<vmem>>, vector<288x128xbf16>
    %c0_54 = arith.constant 0 : index
    %c0_55 = arith.constant 0 : index
    %48 = vector.load %arg11[%c0_54, %c0_55] : memref<288x128xf32, #tpu.memory_space<vmem>>, vector<288x128xf32>
    %c5 = arith.constant 5 : index
    %c0_56 = arith.constant 0 : index
    %c0_57 = arith.constant 0 : index
    %49 = vector.load %arg5[%c5, %c0_56, %c0_57] : memref<9x128x128xbf16, #tpu.memory_space<vmem>>, vector<1x128x128xbf16>
    %50 = vector.shape_cast %49 : vector<1x128x128xbf16> to vector<128x128xbf16>
    %cst_58 = arith.constant dense<0.000000e+00> : vector<288x128xf32>
    %51 = tpu.matmul %47, %50, %cst_58 {dimension_numbers = #tpu.dot_dimension_numbers<[1], [0], [0], [1], [0, 0, 1, 1], [], []>} : vector<288x128xbf16>, vector<128x128xbf16>, vector<288x128xf32> -> vector<288x128xf32>
    %52 = arith.addf %48, %51 : vector<288x128xf32>
    %c0_59 = arith.constant 0 : index
    %c0_60 = arith.constant 0 : index
    %53 = vector.load %arg11[%c0_59, %c0_60] : memref<288x128xf32, #tpu.memory_space<vmem>>, vector<288x128xf32>
    tpu.vector_store %arg11[%c0_59, %c0_60], %52 {strides = array<i32>} : memref<288x128xf32, #tpu.memory_space<vmem>>, vector<288x128xf32>,
    %c36 = arith.constant 36 : index
    %c0_61 = arith.constant 0 : index
    %54 = vector.load %arg10[%c36, %c0_61] : memref<328x128xbf16, #tpu.memory_space<vmem>>, vector<288x128xbf16>
    %c0_62 = arith.constant 0 : index
    %c0_63 = arith.constant 0 : index
    %55 = vector.load %arg11[%c0_62, %c0_63] : memref<288x128xf32, #tpu.memory_space<vmem>>, vector<288x128xf32>
    %c6 = arith.constant 6 : index
    %c0_64 = arith.constant 0 : index
    %c0_65 = arith.constant 0 : index
    %56 = vector.load %arg5[%c6, %c0_64, %c0_65] : memref<9x128x128xbf16, #tpu.memory_space<vmem>>, vector<1x128x128xbf16>
    %57 = vector.shape_cast %56 : vector<1x128x128xbf16> to vector<128x128xbf16>
    %cst_66 = arith.constant dense<0.000000e+00> : vector<288x128xf32>
    %58 = tpu.matmul %54, %57, %cst_66 {dimension_numbers = #tpu.dot_dimension_numbers<[1], [0], [0], [1], [0, 0, 1, 1], [], []>} : vector<288x128xbf16>, vector<128x128xbf16>, vector<288x128xf32> -> vector<288x128xf32>
    %59 = arith.addf %55, %58 : vector<288x128xf32>
    %c0_67 = arith.constant 0 : index
    %c0_68 = arith.constant 0 : index
    %60 = vector.load %arg11[%c0_67, %c0_68] : memref<288x128xf32, #tpu.memory_space<vmem>>, vector<288x128xf32>
    tpu.vector_store %arg11[%c0_67, %c0_68], %59 {strides = array<i32>} : memref<288x128xf32, #tpu.memory_space<vmem>>, vector<288x128xf32>,
    %c37 = arith.constant 37 : index
    %c0_69 = arith.constant 0 : index
    %61 = vector.load %arg10[%c37, %c0_69] : memref<328x128xbf16, #tpu.memory_space<vmem>>, vector<288x128xbf16>
    %c0_70 = arith.constant 0 : index
    %c0_71 = arith.constant 0 : index
    %62 = vector.load %arg11[%c0_70, %c0_71] : memref<288x128xf32, #tpu.memory_space<vmem>>, vector<288x128xf32>
    %c7 = arith.constant 7 : index
    %c0_72 = arith.constant 0 : index
    %c0_73 = arith.constant 0 : index
    %63 = vector.load %arg5[%c7, %c0_72, %c0_73] : memref<9x128x128xbf16, #tpu.memory_space<vmem>>, vector<1x128x128xbf16>
    %64 = vector.shape_cast %63 : vector<1x128x128xbf16> to vector<128x128xbf16>
    %cst_74 = arith.constant dense<0.000000e+00> : vector<288x128xf32>
    %65 = tpu.matmul %61, %64, %cst_74 {dimension_numbers = #tpu.dot_dimension_numbers<[1], [0], [0], [1], [0, 0, 1, 1], [], []>} : vector<288x128xbf16>, vector<128x128xbf16>, vector<288x128xf32> -> vector<288x128xf32>
    %66 = arith.addf %62, %65 : vector<288x128xf32>
    %c0_75 = arith.constant 0 : index
    %c0_76 = arith.constant 0 : index
    %67 = vector.load %arg11[%c0_75, %c0_76] : memref<288x128xf32, #tpu.memory_space<vmem>>, vector<288x128xf32>
    tpu.vector_store %arg11[%c0_75, %c0_76], %66 {strides = array<i32>} : memref<288x128xf32, #tpu.memory_space<vmem>>, vector<288x128xf32>,
    %c38 = arith.constant 38 : index
    %c0_77 = arith.constant 0 : index
    %68 = vector.load %arg10[%c38, %c0_77] : memref<328x128xbf16, #tpu.memory_space<vmem>>, vector<288x128xbf16>
    %c0_78 = arith.constant 0 : index
    %c0_79 = arith.constant 0 : index
    %69 = vector.load %arg11[%c0_78, %c0_79] : memref<288x128xf32, #tpu.memory_space<vmem>>, vector<288x128xf32>
    %c8 = arith.constant 8 : index
    %c0_80 = arith.constant 0 : index
    %c0_81 = arith.constant 0 : index
    %70 = vector.load %arg5[%c8, %c0_80, %c0_81] : memref<9x128x128xbf16, #tpu.memory_space<vmem>>, vector<1x128x128xbf16>
    %71 = vector.shape_cast %70 : vector<1x128x128xbf16> to vector<128x128xbf16>
    %cst_82 = arith.constant dense<0.000000e+00> : vector<288x128xf32>
    %72 = tpu.matmul %68, %71, %cst_82 {dimension_numbers = #tpu.dot_dimension_numbers<[1], [0], [0], [1], [0, 0, 1, 1], [], []>} : vector<288x128xbf16>, vector<128x128xbf16>, vector<288x128xf32> -> vector<288x128xf32>
    %73 = arith.addf %69, %72 : vector<288x128xf32>
    %c0_83 = arith.constant 0 : index
    %c0_84 = arith.constant 0 : index
    %74 = vector.load %arg11[%c0_83, %c0_84] : memref<288x128xf32, #tpu.memory_space<vmem>>, vector<288x128xf32>
    tpu.vector_store %arg11[%c0_83, %c0_84], %73 {strides = array<i32>} : memref<288x128xf32, #tpu.memory_space<vmem>>, vector<288x128xf32>,
    %c0_85 = arith.constant 0 : index
    %c0_86 = arith.constant 0 : index
    %75 = vector.load %arg11[%c0_85, %c0_86] : memref<288x128xf32, #tpu.memory_space<vmem>>, vector<288x128xf32>
    %c0_87 = arith.constant 0 : index
    %c0_88 = arith.constant 0 : index
    %76 = vector.load %arg6[%c0_87, %c0_88] : memref<1x128xf32, #tpu.memory_space<vmem>>, vector<1x128xf32>
    %77 = vector.broadcast %76 : vector<1x128xf32> to vector<288x128xf32>
    %78 = arith.addf %75, %77 : vector<288x128xf32>
    %cst_89 = arith.constant 0.000000e+00 : f32
    %79 = vector.broadcast %cst_89 : f32 to vector<288x128xf32>
    %80 = arith.maximumf %78, %79 : vector<288x128xf32>
    %81 = arith.truncf %80 : vector<288x128xf32> to vector<288x128xbf16>
    %c0_90 = arith.constant 0 : index
    %c0_91 = arith.constant 0 : index
    %82 = vector.load %arg7[%c0_90, %c0_91] : memref<128x128xbf16, #tpu.memory_space<vmem>>, vector<128x128xbf16>
    %cst_92 = arith.constant dense<0.000000e+00> : vector<288x128xf32>
    %83 = tpu.matmul %81, %82, %cst_92 {dimension_numbers = #tpu.dot_dimension_numbers<[1], [0], [0], [1], [0, 0, 1, 1], [], []>} : vector<288x128xbf16>, vector<128x128xbf16>, vector<288x128xf32> -> vector<288x128xf32>
    %c0_93 = arith.constant 0 : index
    %c19_94 = arith.constant 19 : index
    %c0_95 = arith.constant 0 : index
    %84 = vector.load %arg1[%c0_93, %c19_94, %c0_95] : memref<1x328x128xbf16, #tpu.memory_space<vmem>>, vector<1x288x128xbf16>
    %85 = vector.shape_cast %84 : vector<1x288x128xbf16> to vector<288x128xbf16>
    %86 = arith.extf %85 : vector<288x128xbf16> to vector<288x128xf32>
    %c0_96 = arith.constant 0 : index
    %c0_97 = arith.constant 0 : index
    %87 = vector.load %arg8[%c0_96, %c0_97] : memref<1x128xf32, #tpu.memory_space<vmem>>, vector<1x128xf32>
    %88 = vector.broadcast %87 : vector<1x128xf32> to vector<288x128xf32>
    %89 = arith.addf %83, %88 : vector<288x128xf32>
    %90 = arith.addf %89, %86 : vector<288x128xf32>
    %cst_98 = arith.constant 0.000000e+00 : f32
    %91 = vector.broadcast %cst_98 : f32 to vector<288x128xf32>
    %92 = arith.maximumf %90, %91 : vector<288x128xf32>
    %c0_99 = arith.constant 0 : index
    %c0_100 = arith.constant 0 : index
    %c0_101 = arith.constant 0 : index
    %93 = vector.load %arg9[%c0_99, %c0_100, %c0_101] : memref<1x288x128xf32, #tpu.memory_space<vmem>>, vector<1x288x128xf32>
    %94 = vector.shape_cast %93 : vector<1x288x128xf32> to vector<288x128xf32>
    %95 = vector.shape_cast %92 : vector<288x128xf32> to vector<1x288x128xf32>
    tpu.vector_store %arg9[%c0_99, %c0_100, %c0_101], %95 {strides = array<i32>} : memref<1x288x128xf32, #tpu.memory_space<vmem>>, vector<1x288x128xf32>,
    return
  }
  func.func @transform_0(%arg0: i32) -> (i32, i32, i32) {
    %c0_i32 = arith.constant 0 : i32
    %c0_i32_0 = arith.constant 0 : i32
    %c0_i32_1 = arith.constant 0 : i32
    return %arg0, %c0_i32, %c0_i32_0 : i32, i32, i32
  }
  func.func @transform_1(%arg0: i32) -> (i32, i32) {
    %c0_i32 = arith.constant 0 : i32
    %c0_i32_0 = arith.constant 0 : i32
    %c0_i32_1 = arith.constant 0 : i32
    return %c0_i32, %c0_i32_0 : i32, i32
  }
  func.func @transform_2(%arg0: i32) -> (i32, i32) {
    %c0_i32 = arith.constant 0 : i32
    %c0_i32_0 = arith.constant 0 : i32
    %c0_i32_1 = arith.constant 0 : i32
    return %c0_i32, %c0_i32_0 : i32, i32
  }
  func.func @transform_3(%arg0: i32) -> (i32, i32) {
    %c0_i32 = arith.constant 0 : i32
    %c0_i32_0 = arith.constant 0 : i32
    %c0_i32_1 = arith.constant 0 : i32
    return %c0_i32, %c0_i32_0 : i32, i32
  }
  func.func @transform_4(%arg0: i32) -> (i32, i32, i32) {
    %c0_i32 = arith.constant 0 : i32
    %c0_i32_0 = arith.constant 0 : i32
    %c0_i32_1 = arith.constant 0 : i32
    %c0_i32_2 = arith.constant 0 : i32
    return %c0_i32, %c0_i32_0, %c0_i32_1 : i32, i32, i32
  }
  func.func @transform_5(%arg0: i32) -> (i32, i32) {
    %c0_i32 = arith.constant 0 : i32
    %c0_i32_0 = arith.constant 0 : i32
    %c0_i32_1 = arith.constant 0 : i32
    return %c0_i32, %c0_i32_0 : i32, i32
  }
  func.func @transform_6(%arg0: i32) -> (i32, i32) {
    %c0_i32 = arith.constant 0 : i32
    %c0_i32_0 = arith.constant 0 : i32
    %c0_i32_1 = arith.constant 0 : i32
    return %c0_i32, %c0_i32_0 : i32, i32
  }
  func.func @transform_7(%arg0: i32) -> (i32, i32) {
    %c0_i32 = arith.constant 0 : i32
    %c0_i32_0 = arith.constant 0 : i32
    %c0_i32_1 = arith.constant 0 : i32
    return %c0_i32, %c0_i32_0 : i32, i32
  }
  func.func @transform_8(%arg0: i32) -> (i32, i32, i32) {
    %c0_i32 = arith.constant 0 : i32
    %c0_i32_0 = arith.constant 0 : i32
    %c0_i32_1 = arith.constant 0 : i32
    return %arg0, %c0_i32, %c0_i32_0 : i32, i32, i32
  }
}

</mosaic_0001>

<bundles_post_ra>
// kernel: tpu_custom_call.1
= control target key start
LH: loop header
LB: loop body
LE: loop exit
PB: predicated region body
PF: predicated region fallthrough
CT: control target
= control target key end

     0   :  { %s11004_s0 = inlined_call_operand.hbm [shape: bf16[2,328,128], index: 0, kind: input, shape index: {}]   ;;  %s11005_s1 = inlined_call_operand.hbm [shape: f32[328,1], index: 1, kind: input, shape index: {}]   ;;  %s11006_s2 = inlined_call_operand.hbm [shape: bf16[128,128], index: 2, kind: input, shape index: {}]   ;;  %s11007_s3 = inlined_call_operand.hbm [shape: f32[1,128], index: 3, kind: input, shape index: {}]   ;;  %s11008_s4 = inlined_call_operand.hbm [shape: bf16[9,128,128], index: 4, kind: input, shape index: {}]   ;;  %s11009_s5 = inlined_call_operand.hbm [shape: f32[1,128], index: 5, kind: input, shape index: {}]   ;;  %s11010_s6 = inlined_call_operand.hbm [shape: bf16[128,128], index: 6, kind: input, shape index: {}]   ;;  %s11011_s7 = inlined_call_operand.hbm [shape: f32[1,128], index: 7, kind: input, shape index: {}]   ;;  %s11012_s8 = inlined_call_operand.hbm [shape: f32[2,288,128], index: 8, kind: output, shape index: {}]  }
   0x1   :  { %11019 = sst [smem:[#allocation53_spill]] %s11005_s1 }
   0x2   :  { %11020 = sst [smem:[#allocation54_spill]] %s11006_s2 }
   0x3   :  { %13 = vsyncpa [#allocation5], 0 }
   0x4   :  { %15 = vsyncpa [#allocation5 + $0x1], 0 }
   0x5   :  { %16 = vsyncpa [#allocation8], 0 }
   0x6   :  { %17 = vsyncpa [#allocation11], 0 }
   0x7   :  { %18 = vsyncpa [#allocation14], 0 }
   0x8   :  { %19 = vsyncpa [#allocation17], 0 }
   0x9   :  { %20 = vsyncpa [#allocation6], 0 }
   0xa   :  { %22 = vsyncpa [#allocation6 + $0x1], 0  ;;  %s9936_s27 = smov 0   ;;  %s9938_s28 = smov 0  }
   0xb   :  { %s9940_s29 = smov 0   ;;  %s9942_s30 = smov 0  }
   0xc LB: > { %s9873_s9 = smov [#allocation7]   ;;  %s9957_s11 = sadd.s32 4294967295, %s9871_s30   ;;  %s9871_s30 = sphi %s9942_s30, %s11105_s30   ;;  %s9867_s29 = sphi %s9940_s29, %s11104_s29   ;;  %s9863_s28 = sphi %s9938_s28, %s11103_s28   ;;  %s9859_s27 = sphi %s9936_s27, %s11102_s27  }
   0xd   : > { %s244_s10 = sshll.u32 %s9873_s9, 4  ;;  %p7340_p0 = scmp.ge.s32.totalorder %s9871_s30, 1  ;;  %s9962_s10 = int_to_ptr.vmem [resolvable:$true] %s244_s10 }
   0xe   : > { %p11013_p1 = scmp.eq.s32.totalorder %s9957_s11, 0  ;;  %p232_p2 = scmp.lt.s32.totalorder %s9871_s30, 3 }
   0xf   : > { %s9874_s13 = smov [#allocation10]   ;;  %s9875_s16 = smov [#allocation13]  }
  0x10   : > { %p9964_p3 = pnand %p7340_p0, %p232_p2  ;;  %s271_s14 = sshll.u32 %s9874_s13, 4  ;;  %s9977_s14 = int_to_ptr.vmem [resolvable:$true] %s271_s14 }
  0x11   : > { %s295_s17 = sshll.u32 %s9875_s16, 4  ;;  %s11023_s1 = sld [smem:[#allocation53_spill]]  ;;  %s9979_s17 = int_to_ptr.vmem [resolvable:$true] %s295_s17 }
  0x12   : > { %s11021_s12 = scalar_select %p9964_p3, 1, 0 }
  0x13   : > { %p9179_p5 = pneg %p9964_p3 }
  0x15   : > { %p9973_p6 = pnand %p9179_p5, %p11013_p1 }
  0x17   : > { %s9563_s20 = scalar_lea.hbm %s11023_s1, 5248  ;;  %p9989_p8 = pneg %p9973_p6 }
  0x18   : > { %p9564_p7 = scmp.ne.s32.totalorder %s11023_s1, %s9563_s20  ;;  %p9570_p11 = scmp.lt.u32.totalorder %s9563_s20, %s11023_s1 }
  0x1a   : > { %p9566_p9 = pnand %p9989_p8, %p9564_p7 }
  0x1c   : > { %p9567_p10 = pneg %p9566_p9 }
  0x1e   : > { %p9572_p12 = pnand %p9570_p11, %p9567_p10 }
  0x20   : > { %9575 = shalt.err (!%p9572_p12)
}
  0x21   : > { %s9576_s26 = scalar_lea.vmem %s9962_s10, 5248  ;;  %p9584_p5 = scmp.lt.s32.totalorder %s9962_s10, %s9962_s10 }
  0x22   : > { %p9577_p13 = scmp.ne.s32.totalorder %s9962_s10, %s9576_s26  ;;  %p9585_p4 = scmp.lt.s32.totalorder %s9576_s26, %s9576_s26 }
  0x24   : > { %p9579_p0 = pnand %p9577_p13, %p9989_p8  ;;  %p9586_p7 = por %p9585_p4, %p9584_p5 }
  0x26   : > { %p9580_p2 = pneg %p9579_p0 }
  0x28   : > { %p9587_p9 = pnand %p9586_p7, %p9580_p2 }
  0x2a   : > { %9590 = shalt.err (!%p9587_p9)
}
  0x2b   : > { %s9876_s9 = smov 128   ;;  %s9877_s13 = smov 8  }
  0x2c   : > { %9182 = dma.hbm_to_vmem [thread:$0]  (!%p9973_p6), %s11023_s1, 5248, %s9962_s10, [#allocation8], %s9876_s9, %s9876_s9, %s9877_s13  }
  0x2d   : > { %s9591_s21 = scalar_lea.hbm %s11007_s3, 16 }
  0x2e   : > { %p9592_p4 = scmp.ne.s32.totalorder %s11007_s3, %s9591_s21  ;;  %p9598_p12 = scmp.lt.u32.totalorder %s9591_s21, %s11007_s3 }
  0x30   : > { %p9594_p10 = pnand %p9592_p4, %p9989_p8 }
  0x32   : > { %p9595_p11 = pneg %p9594_p10 }
  0x34   : > { %p9600_p13 = pnand %p9598_p12, %p9595_p11 }
  0x36   : > { %9603 = shalt.err (!%p9600_p13)
}
  0x37   : > { %s9604_s10 = scalar_lea.vmem %s9977_s14, 16  ;;  %s9611_s9 = scalar_lea.vmem %s9977_s14, 32 }
  0x38   : > { %p9605_p0 = scmp.ne.s32.totalorder %s9977_s14, %s9604_s10  ;;  %p9612_p7 = scmp.lt.s32.totalorder %s9977_s14, %s9977_s14 }
  0x39   : > { %p9613_p9 = scmp.lt.s32.totalorder %s9611_s9, %s9604_s10 }
  0x3a   : > { %p9607_p2 = pnand %p9605_p0, %p9989_p8 }
  0x3b   : > { %p9614_p4 = por %p9613_p9, %p9612_p7 }
  0x3c   : > { %p9608_p5 = pneg %p9607_p2 }
  0x3e   : > { %p9615_p10 = pnand %p9614_p4, %p9608_p5 }
  0x40   : > { %9618 = shalt.err (!%p9615_p10)
}
  0x41   : > { %9188 = dma.hbm_to_vmem [thread:$0]  (!%p9973_p6), %s11007_s3, 16, %s9977_s14, [#allocation11]  }
  0x42   : > { %s9619_s20 = scalar_lea.hbm %s11009_s5, 16 }
  0x43   : > { %p9620_p11 = scmp.ne.s32.totalorder %s11009_s5, %s9619_s20  ;;  %p9626_p0 = scmp.lt.u32.totalorder %s9619_s20, %s11009_s5 }
  0x45   : > { %p9622_p12 = pnand %p9620_p11, %p9989_p8 }
  0x47   : > { %p9623_p13 = pneg %p9622_p12 }
  0x49   : > { %p9628_p2 = pnand %p9626_p0, %p9623_p13 }
  0x4b   : > { %9631 = shalt.err (!%p9628_p2)
}
  0x4c   : > { %s9632_s14 = scalar_lea.vmem %s9979_s17, 16  ;;  %s9639_s26 = scalar_lea.vmem %s9979_s17, 32 }
  0x4d   : > { %p9633_p5 = scmp.ne.s32.totalorder %s9979_s17, %s9632_s14  ;;  %p9640_p4 = scmp.lt.s32.totalorder %s9979_s17, %s9979_s17 }
  0x4e   : > { %p9641_p10 = scmp.lt.s32.totalorder %s9639_s26, %s9632_s14 }
  0x4f   : > { %p9635_p7 = pnand %p9633_p5, %p9989_p8 }
  0x50   : > { %p9642_p11 = por %p9641_p10, %p9640_p4 }
  0x51   : > { %p9636_p9 = pneg %p9635_p7 }
  0x53   : > { %p9643_p12 = pnand %p9642_p11, %p9636_p9 }
  0x55   : > { %9646 = shalt.err (!%p9643_p12)
}
  0x56   : > { %9194 = dma.hbm_to_vmem [thread:$0]  (!%p9973_p6), %s11009_s5, 16, %s9979_s17, [#allocation14]  }
  0x57   : > { %s9878_s13 = smov [#allocation9]   ;;  %s11025_s2 = sld [smem:[#allocation54_spill]] }
  0x58   : > { %s257_s16 = sshll.u32 %s9878_s13, 4  ;;  %s258_s16 = int_to_ptr.vmem [resolvable:$true] %s257_s16 }
  0x5d   : > { %s9647_s20 = scalar_lea.hbm %s11025_s2, 1024 }
  0x5e   : > { %p9648_p13 = scmp.ne.s32.totalorder %s11025_s2, %s9647_s20  ;;  %p9654_p5 = scmp.lt.u32.totalorder %s9647_s20, %s11025_s2 }
  0x60   : > { %p9650_p0 = pnand %p9648_p13, %p9989_p8 }
  0x62   : > { %p9651_p2 = pneg %p9650_p0 }
  0x64   : > { %p9656_p7 = pnand %p9654_p5, %p9651_p2 }
  0x66   : > { %9659 = shalt.err (!%p9656_p7)
}
  0x67   : > { %s9660_s17 = scalar_lea.vmem %s258_s16, 1024  ;;  %p9668_p11 = scmp.lt.s32.totalorder %s258_s16, %s258_s16 }
  0x68   : > { %p9661_p9 = scmp.ne.s32.totalorder %s258_s16, %s9660_s17  ;;  %p9669_p12 = scmp.lt.s32.totalorder %s9660_s17, %s9660_s17 }
  0x6a   : > { %p9663_p4 = pnand %p9661_p9, %p9989_p8  ;;  %p9670_p1 = por %p9669_p12, %p9668_p11 }
  0x6c   : > { %p9664_p10 = pneg %p9663_p4 }
  0x6e   : > { %p9671_p3 = pnand %p9670_p1, %p9664_p10 }
  0x70   : > { %9674 = shalt.err (!%p9671_p3)
}
  0x71   : > { %s11015_s14 = smov 64   ;;  %s11016_s26 = smov 4  }
  0x72   : > { %9185 = dma.hbm_to_vmem [thread:$0]  (!%p9973_p6), %s11025_s2, 1024, %s258_s16, [#allocation8], %s11015_s14, %s11015_s14, %s11016_s26  }
  0x73   : > { %s9881_s13 = smov [#allocation12]   ;;  %s9882_s19 = smov [#allocation15]  }
  0x74   : > { %s281_s18 = sshll.u32 %s9881_s13, 4  ;;  %s305_s20 = sshll.u32 %s9882_s19, 4  ;;  %s282_s18 = int_to_ptr.vmem [resolvable:$true] %s281_s18  ;;  %s10079_s20 = int_to_ptr.vmem [resolvable:$true] %s305_s20 }
  0x75   : > { %s9675_s24 = scalar_lea.hbm %s11008_s4, 9216 }
  0x76   : > { %p9676_p1 = scmp.ne.s32.totalorder %s11008_s4, %s9675_s24  ;;  %p9682_p0 = scmp.lt.u32.totalorder %s9675_s24, %s11008_s4 }
  0x78   : > { %p9678_p3 = pnand %p9676_p1, %p9989_p8 }
  0x7a   : > { %p9679_p13 = pneg %p9678_p3 }
  0x7c   : > { %p9684_p2 = pnand %p9682_p0, %p9679_p13 }
  0x7e   : > { %9687 = shalt.err (!%p9684_p2)
}
  0x7f   : > { %s9688_s9 = scalar_lea.vmem %s282_s18, 9216  ;;  %p9696_p4 = scmp.lt.s32.totalorder %s282_s18, %s282_s18 }
  0x80   : > { %p9689_p5 = scmp.ne.s32.totalorder %s282_s18, %s9688_s9  ;;  %p9697_p10 = scmp.lt.s32.totalorder %s9688_s9, %s9688_s9 }
  0x82   : > { %p9691_p7 = pnand %p9689_p5, %p9989_p8  ;;  %p9698_p11 = por %p9697_p10, %p9696_p4 }
  0x84   : > { %p9692_p9 = pneg %p9691_p7 }
  0x86   : > { %p9699_p12 = pnand %p9698_p11, %p9692_p9 }
  0x88   : > { %9702 = shalt.err (!%p9699_p12)
}
  0x89   : > { %9191 = dma.hbm_to_vmem [thread:$0]  (!%p9973_p6), %s11008_s4, 9216, %s282_s18, [#allocation11], %s11015_s14, %s11015_s14, %s11016_s26  }
  0x8a   : > { %s9703_s24 = scalar_lea.hbm %s11010_s6, 1024 }
  0x8b   : > { %p9704_p1 = scmp.ne.s32.totalorder %s11010_s6, %s9703_s24  ;;  %p9710_p0 = scmp.lt.u32.totalorder %s9703_s24, %s11010_s6 }
  0x8d   : > { %p9706_p3 = pnand %p9704_p1, %p9989_p8 }
  0x8f   : > { %p9707_p13 = pneg %p9706_p3 }
  0x91   : > { %p9712_p2 = pnand %p9710_p0, %p9707_p13 }
  0x93   : > { %9715 = shalt.err (!%p9712_p2)
}
  0x94   : > { %s9716_s18 = scalar_lea.vmem %s10079_s20, 1024  ;;  %p9724_p4 = scmp.lt.s32.totalorder %s10079_s20, %s10079_s20 }
  0x95   : > { %p9717_p5 = scmp.ne.s32.totalorder %s10079_s20, %s9716_s18  ;;  %p9725_p10 = scmp.lt.s32.totalorder %s9716_s18, %s9716_s18 }
  0x97   : > { %p9719_p7 = pnand %p9717_p5, %p9989_p8  ;;  %p9726_p11 = por %p9725_p10, %p9724_p4 }
  0x99   : > { %p9720_p9 = pneg %p9719_p7 }
  0x9b   : > { %p9727_p12 = pnand %p9726_p11, %p9720_p9 }
  0x9d   : > { %9730 = shalt.err (!%p9727_p12)
}
  0x9e   : > { %9197 = dma.hbm_to_vmem [thread:$0]  (!%p9973_p6), %s11010_s6, 1024, %s10079_s20, [#allocation14], %s11015_s14, %s11015_s14, %s11016_s26  }
  0x9f   : > { %s9883_s19 = smov [#allocation16]   ;;  %s9731_s25 = scalar_lea.hbm %s11011_s7, 16 }
  0xa0   : > { %s319_s21 = sshll.u32 %s9883_s19, 4  ;;  %p9732_p1 = scmp.ne.s32.totalorder %s11011_s7, %s9731_s25  ;;  %s320_s21 = int_to_ptr.vmem [resolvable:$true] %s319_s21 }
  0xa1   : > { %p9738_p0 = scmp.lt.u32.totalorder %s9731_s25, %s11011_s7 }
  0xa2   : > { %p9734_p3 = pnand %p9732_p1, %p9989_p8 }
  0xa4   : > { %p9735_p13 = pneg %p9734_p3 }
  0xa6   : > { %p9740_p2 = pnand %p9738_p0, %p9735_p13 }
  0xa8   : > { %9743 = shalt.err (!%p9740_p2)
}
  0xa9   : > { %s9744_s20 = scalar_lea.vmem %s320_s21, 16  ;;  %s9751_s9 = scalar_lea.vmem %s320_s21, 32 }
  0xaa   : > { %p9745_p5 = scmp.ne.s32.totalorder %s320_s21, %s9744_s20  ;;  %p9752_p4 = scmp.lt.s32.totalorder %s320_s21, %s320_s21 }
  0xab   : > { %p9753_p10 = scmp.lt.s32.totalorder %s9751_s9, %s9744_s20 }
  0xac   : > { %p9747_p7 = pnand %p9745_p5, %p9989_p8 }
  0xad   : > { %p9754_p11 = por %p9753_p10, %p9752_p4 }
  0xae   : > { %p9748_p9 = pneg %p9747_p7 }
  0xb0   : > { %p9755_p12 = pnand %p9754_p11, %p9748_p9 }
  0xb2   : > { %9758 = shalt.err (!%p9755_p12)
}
  0xb3   : > { %9200 = dma.hbm_to_vmem [thread:$0]  (!%p9973_p6), %s11011_s7, 16, %s320_s21, [#allocation17]  }
  0xb4   : > { %s7339_s23 = sadd.s32 4294967294, %s9871_s30   ;;  %s10148_s15 = sadd.s32 1, %s9871_s30  }
  0xb5   : > { %s35_s22 = sadd.s32 1, %s9867_s29  ;;  %s32_s24 = ssub.s32 %s9871_s30, %s10148_s15 }
  0xb6   : > { %p42_p8 = scmp.ne.s32.totalorder %s9867_s29, %s9863_s28  ;;  %p33_p1 = scmp.eq.s32.totalorder %s32_s24, 0 }
  0xb7   : > { %p43_p3 = scmp.eq.s32.totalorder %s9871_s30, 0  ;;  %p48_p13 = scmp.ne.s32.totalorder %s9863_s28, %s9859_s27 }
  0xb8   : > { %p219_p0 = scmp.eq.s32.totalorder %s9957_s11, 1  ;;  %p11026_p5 = scmp.eq.s32.totalorder %s9957_s11, 0 }
  0xb9   : > { %s10160_s25 = scalar_select %p33_p1, %s9867_s29, %s35_s22  }
  0xba   : > { %p44_p2 = por %p43_p3, %p42_p8  ;;  %p10164_p7 = por %p11026_p5, %p48_p13 }
  0xbb   : > { %p10168_p6 = por %p219_p0, %p42_p8  ;;  %p225_p9 = scmp.eq.s32.totalorder %s7339_s23, 1 }
  0xbc   : > { %p9216_p4 = scmp.lt.s32.totalorder %s9871_s30, 2  ;;  %s330_s10 = sand.u32 1, %s9867_s29  }
  0xbd   : > { %s11028_s21 = scalar_select %p10168_p6, 1, 0 }
  0xbe   : > { %p10174_p10 = por %p225_p9, %p48_p13  ;;  %s9142_s18 = smul.u32 164, %s330_s10 }
  0xbf   : > { %p10178_p11 = pnand %p9216_p4, %p44_p2  ;;  %s9143_s9 = smul.u32 2624, %s9871_s30 }
  0xc0   : > { %s11029_s16 = scalar_select %p10174_p10, 1, 0 }
  0xc1   : > { %s10186_s22 = scalar_lea.hbm %s11004_s0, %s9143_s9  ;;  %s334_s23 = scalar_lea.vmem [#allocation4], %s9142_s18 }
  0xc2   : > { %s341_s24 = sshll.u32 %s334_s23, 4  ;;  %s10190_s14 = scalar_lea.sflag [#allocation5], %s330_s10  ;;  %s10188_s24 = int_to_ptr.vmem [resolvable:$true] %s341_s24 }
  0xc3   : > { %s9759_s26 = scalar_lea.hbm %s10186_s22, 2624  ;;  %p9761_p8 = pneg %p10178_p11 }
  0xc4   : > { %p9760_p12 = scmp.ne.s32.totalorder %s10186_s22, %s9759_s26  ;;  %s9764_s19 = scalar_lea.hbm %s11004_s0, 5248 }
  0xc5   : > { %p9765_p13 = scmp.lt.u32.totalorder %s10186_s22, %s11004_s0  ;;  %p9766_p0 = scmp.lt.u32.totalorder %s9764_s19, %s9759_s26 }
  0xc6   : > { %p9762_p1 = pnand %p9761_p8, %p9760_p12  ;;  %p9768_p5 = scmp.lt.u32.totalorder %s9759_s26, %s10186_s22 }
  0xc7   : > { %p9767_p2 = por %p9766_p0, %p9765_p13 }
  0xc8   : > { %p9763_p3 = pneg %p9762_p1 }
  0xc9   : > { %p9769_p9 = por %p9768_p5, %p9767_p2 }
  0xcb   : > { %p9770_p4 = pnand %p9769_p9, %p9763_p3 }
  0xcd   : > { %9773 = shalt.err (!%p9770_p4)
}
  0xce   : > { %s9774_s10 = scalar_lea.vmem %s10188_s24, 2624  ;;  %s9884_s18 = smov [#allocation4]  }
  0xcf   : > { %p9775_p12 = scmp.ne.s32.totalorder %s10188_s24, %s9774_s10  ;;  %s9779_s23 = sshll.u32 %s9884_s18, 4  ;;  %s9780_s23 = int_to_ptr.vmem [resolvable:$false] %s9779_s23 }
  0xd0   : > { %s9781_s1 = scalar_lea.vmem %s9780_s23, 5248  ;;  %p9782_p6 = scmp.lt.s32.totalorder %s10188_s24, %s9780_s23 }
  0xd1   : > { %p9777_p1 = pnand %p9775_p12, %p9761_p8  ;;  %p9783_p13 = scmp.lt.s32.totalorder %s9781_s1, %s9774_s10 }
  0xd3   : > { %p9778_p10 = pneg %p9777_p1  ;;  %p9784_p0 = por %p9783_p13, %p9782_p6 }
  0xd5   : > { %p9785_p2 = pnand %p9784_p0, %p9778_p10 }
  0xd7   : > { %9788 = shalt.err (!%p9785_p2)
}
  0xd8   : > { %s11031_s2 = smov 4   ;;  %s11032_s26 = smov 64  }
  0xd9   : > { %9204 = dma.hbm_to_vmem [thread:$0]  (!%p10178_p11), %s10186_s22, 2624, %s10188_s24, %s10190_s14, %s11032_s26, %s11032_s26, %s11031_s2  }
  0xda   : > { %p11033_p8 = scmp.ne.s32.totalorder %s11021_s12, 0 }
  0xdc   : > { %353 = sbr.rel (%p11033_p8) target bundleno = 1488 (0x5d0), region = 52 }
  0xe3   : > { %s10224_s9 = sand.u32 1, %s9863_s28  }
  0xe4   : > { %s9144_s13 = smul.u32 164, %s10224_s9  ;;  %s356_s19 = scalar_lea.sflag [#allocation5], %s10224_s9 }
  0xe6   : > { %s10228_s10 = scalar_lea.vmem [#allocation4], %s9144_s13 }
  0xe7   : > { %9834 = dma.done.wait (%p10164_p7), %s356_s19, 2624  }
  0xe8   : > { %9836 = vsyncadd (%p10164_p7), %s356_s19, 4294964672  ;;  %p11034_p6 = scmp.eq.s32.totalorder %s9957_s11, 0 }
  0xea   : > { %9838 = dma.done.wait (%p11034_p6), [#allocation8], 6272   ;;  %p11035_p10 = pmov %p11034_p6 }
  0xeb   : > { %p11036_p11 = pmov %p11034_p6 }
  0xec   : > { %9840 = vsyncadd (%p11035_p10), [#allocation8], 4294961024 }
  0xed   : > { %9842 = dma.done.wait (%p11036_p11), [#allocation11], 9232   ;;  %p11037_p3 = pmov %p11034_p6 }
  0xef   : > { %9844 = vsyncadd (%p11037_p3), [#allocation11], 4294958064  ;;  %p11038_p5 = pmov %p11037_p3 }
  0xf0   : > { %p11039_p9 = pmov %p11037_p3 }
  0xf1   : > { %9846 = dma.done.wait (%p11038_p5), [#allocation14], 1040  }
  0xf2   : > { %9848 = vsyncadd (%p11039_p9), [#allocation14], 4294966256  ;;  %p11040_p7 = pmov %p11037_p3 }
  0xf3   : > { %p11041_p4 = pmov %p11037_p3 }
  0xf4   : > { %9850 = dma.done.wait (%p11040_p7), [#allocation17], 16  }
  0xf5   : > { %9852 = vsyncadd (%p11041_p4), [#allocation17], 4294967280  ;;  %v9885_v0 = vmov 0.0   ;;  %vm9886_vm0 = vmmov 0   ;;  %v9887_v1 = vmov 0   ;;  %v9275_v2 = vld [vmem:[#allocation9] sm:$0xff]  }
  0xf6   : > { %8218 = vmatprep.subr.bf16.mxu0 %v9885_v0  ;;  %8234 = vmatprep.mubr.msk.bf16.mxu0 %vm9886_vm0, %v9885_v0  ;;  %v9276_v3 = vld [vmem:[#allocation9 + $0x8] sm:$0xff]   ;;  %v9277_v4 = vld [vmem:[#allocation9 + $0x10] sm:$0xff]   ;;  %v9278_v5 = vld [vmem:[#allocation9 + $0x18] sm:$0xff]   ;;  %vm2642_vm1 = vcmask 1046528   ;;  %vm1995_vm2 = vsmask.f32 7424 }
  0xf7   : > { %9273 = vset.pattern.permute.xlu0 %v9887_v1  ;;  %9274 = vset.pattern.permute.xlu1 %v9887_v1  ;;  %v9279_v6 = vld [vmem:[#allocation9 + $0x20] sm:$0xff]   ;;  %v9280_v7 = vld [vmem:[#allocation9 + $0x28] sm:$0xff]   ;;  %v898_v8 = vld [vmem:[#allocation7] sm:$0xff]  ;;  %vm6122_vm3 = vcmask 1044480   ;;  %vm3713_vm4 = vsmask.f32 6400 }
  0xf8   : > { %8219 = vmatpush3.bf16.msra.mxu0 %v9275_v2  ;;  %v900_v9 = vld [vmem:[#allocation7 + $0x10] sm:$0xff]  ;;  %941 = vperm.xlu0 %9273, %v898_v8   ;;  %v899_v10 = vld [vmem:[#allocation7 + $0x8] sm:$0xff]  ;;  %v901_v11 = vld [vmem:[#allocation7 + $0x18] sm:$0xff]  ;;  %vm4382_vm5 = vcmask 1045504   ;;  %vm5453_vm6 = vsmask.f32 5376 }
  0xf9   : > { %8220 = vmatprep.subr.bf16.mxu0 %v9885_v0  ;;  %951 = vperm.xlu1 %9274, %v900_v9   ;;  %v9281_v12 = vld [vmem:[#allocation9 + $0x30] sm:$0xff]   ;;  %v902_v13 = vld [vmem:[#allocation7 + $0x20] sm:$0xff]  ;;  %v903_v14 = vld [vmem:[#allocation7 + $0x28] sm:$0xff]  ;;  %s9145_s12 = smul.u32 288, %s10224_s9  ;;  %p11099_p1 = scmp.ne.s32.totalorder %s11028_s21, 0 }
  0xfa   : > { %v9282_v15 = vld [vmem:[#allocation9 + $0x38] sm:$0xff]   ;;  %v904_v17 = vld [vmem:[#allocation7 + $0x30] sm:$0xff]  ;;  %v905_v18 = vld [vmem:[#allocation7 + $0x38] sm:$0xff]  ;;  %s9146_s17 = smul.u32 4608, %s9957_s11  ;;  %s7186_s11 = scalar_lea.sflag [#allocation6], %s10224_s9 }
  0xfb   : > { %v9283_v16 = vld [vmem:[%s10228_s10] sm:$0xff]   ;;  %v907_v20 = vld [vmem:[#allocation7 + $0x48] sm:$0xff]  ;;  %v908_v22 = vld [vmem:[#allocation7 + $0x50] sm:$0xff]  ;;  %s10834_s14 = scalar_lea.vmem [#allocation18], %s9145_s12  ;;  %s9888_s1 = smov [#allocation18]  }
  0xfc   : > { %8221 = vmatpush3.bf16.msra.mxu0 %v9276_v3  ;;  %946 = vperm.xlu0 %9273, %v899_v10   ;;  %v906_v19 = vld [vmem:[#allocation7 + $0x40] sm:$0xff]  ;;  %v909_v23 = vld [vmem:[#allocation7 + $0x58] sm:$0xff]  ;;  %v911_v25 = vld [vmem:[#allocation7 + $0x68] sm:$0xff]  ;;  %s7199_s20 = sshll.u32 %s10834_s14, 4  ;;  %s10955_s18 = scalar_lea.hbm %s11012_s8, %s9146_s17  ;;  %s10958_s20 = int_to_ptr.vmem [resolvable:$true] %s7199_s20 }
  0xfd   : > { %8222 = vmatprep.subr.bf16.mxu0 %v9885_v0  ;;  %956 = vperm.xlu1 %9274, %v901_v11   ;;  %v9284_v21 = vld [vmem:[%s10228_s10 + $0x8] sm:$0xff]   ;;  %v9285_v26 = vld [vmem:[%s10228_s10 + $0x10] sm:$0xff]   ;;  %v913_v28 = vld [vmem:[#allocation7 + $0x78] sm:$0xff]  ;;  %s9789_s23 = scalar_lea.vmem %s10958_s20, 4608  ;;  %s9793_s2 = sshll.u32 %s9888_s1, 4  ;;  %s9794_s2 = int_to_ptr.vmem [resolvable:$false] %s9793_s2 }
  0xfe   : > { %v910_v24 = vld [vmem:[#allocation7 + $0x60] sm:$0xff]  ;;  %v912_v27 = vld [vmem:[#allocation7 + $0x70] sm:$0xff]  ;;  %v915_v30 = vld [vmem:[#allocation7 + $0x88] sm:$0xff]  ;;  %p9790_p12 = scmp.ne.s32.totalorder %s10958_s20, %s9789_s23  ;;  %s9795_s26 = scalar_lea.vmem %s9794_s2, 9216 }
  0xff   : > { %v914_v29 = vld [vmem:[#allocation7 + $0x80] sm:$0xff]  ;;  %v9286_v31 = vld [vmem:[%s10228_s10 + $0x18] sm:$0xff]   ;;  %v919_v35 = vld [vmem:[#allocation7 + $0xa8] sm:$0xff]  ;;  %p9796_p2 = scmp.lt.s32.totalorder %s10958_s20, %s9794_s2  ;;  %p9797_p8 = scmp.lt.s32.totalorder %s9795_s26, %s9789_s23 }
 0x100   : > { %8223 = vmatpush3.bf16.msra.mxu0 %v9277_v4  ;;  %961 = vperm.xlu0 %9273, %v902_v13   ;;  %v916_v32 = vld [vmem:[#allocation7 + $0x90] sm:$0xff]  ;;  %v917_v33 = vld [vmem:[#allocation7 + $0x98] sm:$0xff]  ;;  %v918_v34 = vld [vmem:[#allocation7 + $0xa0] sm:$0xff]  ;;  %p9791_p13 = pnand %p9790_p12, %p11099_p1 }
 0x101   : > { %8224 = vmatprep.subr.bf16.mxu0 %v9885_v0  ;;  %966 = vperm.xlu1 %9274, %v903_v14   ;;  %v9287_v36 = vld [vmem:[%s10228_s10 + $0x20] sm:$0xff]   ;;  %v920_v37 = vld [vmem:[#allocation7 + $0xb0] sm:$0xff]  ;;  %v923_v40 = vld [vmem:[#allocation7 + $0xc8] sm:$0xff]  ;;  %p9798_p6 = por %p9797_p8, %p9796_p2 }
 0x102   : > { %v921_v38 = vld [vmem:[#allocation7 + $0xb8] sm:$0xff]  ;;  %v922_v39 = vld [vmem:[#allocation7 + $0xc0] sm:$0xff]  ;;  %v9304_v41 = vld [vmem:[#allocation12] sm:$0xff]   ;;  %p9792_p0 = pneg %p9791_p13 }
 0x103   : > { %v9288_v42 = vld [vmem:[%s10228_s10 + $0x28] sm:$0xff]   ;;  %v924_v43 = vld [vmem:[#allocation7 + $0xd0] sm:$0xff]  ;;  %v925_v44 = vld [vmem:[#allocation7 + $0xd8] sm:$0xff] }
 0x104   : > { %8225 = vmatpush3.bf16.msra.mxu0 %v9278_v5  ;;  %971 = vperm.xlu0 %9273, %v904_v17   ;;  %v926_v45 = vld [vmem:[#allocation7 + $0xe0] sm:$0xff]  ;;  %v927_v46 = vld [vmem:[#allocation7 + $0xe8] sm:$0xff]  ;;  %v928_v48 = vld [vmem:[#allocation7 + $0xf0] sm:$0xff]  ;;  %p9799_p10 = pnand %p9798_p6, %p9792_p0 }
 0x105   : > { %8226 = vmatprep.subr.bf16.mxu0 %v9885_v0  ;;  %976 = vperm.xlu1 %9274, %v905_v18   ;;  %v9289_v47 = vld [vmem:[%s10228_s10 + $0x30] sm:$0xff]   ;;  %v929_v49 = vld [vmem:[#allocation7 + $0xf8] sm:$0xff]  ;;  %v930_v50 = vld [vmem:[#allocation7 + $0x100] sm:$0xff] }
 0x106   : > { %v931_v51 = vld [vmem:[#allocation7 + $0x108] sm:$0xff]  ;;  %v9290_v52 = vld [vmem:[%s10228_s10 + $0x38] sm:$0xff]   ;;  %v934_v55 = vld [vmem:[#allocation7 + $0x120] sm:$0xff] }
 0x107   : > { %v932_v53 = vld [vmem:[#allocation7 + $0x110] sm:$0xff]  ;;  %v933_v54 = vld [vmem:[#allocation7 + $0x118] sm:$0xff]  ;;  %v935_v56 = vld [vmem:[#allocation7 + $0x128] sm:$0xff] }
 0x108   : > { %8227 = vmatpush3.bf16.msra.mxu0 %v9279_v6  ;;  %981 = vperm.xlu0 %9273, %v906_v19   ;;  %v9291_v57 = vld [vmem:[%s10228_s10 + $0x40] sm:$0xff]   ;;  %v936_v58 = vld [vmem:[#allocation7 + $0x130] sm:$0xff]  ;;  %v9292_v61 = vld [vmem:[%s10228_s10 + $0x48] sm:$0xff]  }
 0x109   : > { %8228 = vmatprep.subr.bf16.mxu0 %v9885_v0  ;;  %986 = vperm.xlu1 %9274, %v907_v20   ;;  %v937_v59 = vld [vmem:[#allocation7 + $0x138] sm:$0xff]  ;;  %v938_v60 = vld [vmem:[#allocation7 + $0x140] sm:$0xff]  ;;  %v9293_v62 = vld [vmem:[%s10228_s10 + $0x50] sm:$0xff]  }
 0x10a   : > { %v9305_v63 = vld [vmem:[#allocation12 + $0x8] sm:$0xff]   ;;  %v9306_v2 = vld [vmem:[#allocation12 + $0x10] sm:$0xff]   ;;  %v9307_v3 = vld [vmem:[#allocation12 + $0x80] sm:$0xff]  }
 0x10b   : > { %v9294_v1 = vld [vmem:[%s10228_s10 + $0x58] sm:$0xff]   ;;  %v9308_v4 = vld [vmem:[#allocation12 + $0x18] sm:$0xff]   ;;  %8422 = vmatprep.subr.bf16.mxu1 %v9307_v3 }
 0x10c   : > { %8229 = vmatpush3.bf16.msra.mxu0 %v9280_v7  ;;  %991 = vperm.xlu0 %9273, %v908_v22   ;;  %v9295_v5 = vld [vmem:[%s10228_s10 + $0x60] sm:$0xff]   ;;  %v9310_v7 = vld [vmem:[#allocation12 + $0x20] sm:$0xff]  }
 0x10d   : > { %8230 = vmatprep.subr.bf16.mxu0 %v9885_v0  ;;  %996 = vperm.xlu1 %9274, %v909_v23   ;;  %v9309_v6 = vld [vmem:[#allocation12 + $0x88] sm:$0xff]   ;;  %v9311_v8 = vld [vmem:[#allocation12 + $0x90] sm:$0xff]   ;;  %v9313_v11 = vld [vmem:[#allocation12 + $0x98] sm:$0xff]  }
 0x10e   : > { %8423 = vmatpush3.bf16.msra.mxu1 %v9307_v3  ;;  %v9312_v9 = vld [vmem:[#allocation12 + $0x28] sm:$0xff]   ;;  %v9296_v10 = vld [vmem:[%s10228_s10 + $0x68] sm:$0xff]  }
 0x10f   : > { %8424 = vmatprep.subr.bf16.mxu1 %v9309_v6  ;;  %v9316_v13 = vld [vmem:[#allocation12 + $0xa0] sm:$0xff]   ;;  %v9317_v14 = vld [vmem:[#allocation12 + $0x38] sm:$0xff]   ;;  %v9320_v17 = vld [vmem:[#allocation12 + $0xb0] sm:$0xff]  }
 0x110   : > { %8231 = vmatpush3.bf16.msra.mxu0 %v9281_v12  ;;  %1001 = vperm.xlu0 %9273, %v910_v24   ;;  %v9314_v12 = vld [vmem:[#allocation12 + $0x30] sm:$0xff]   ;;  %v9323_v19 = vld [vmem:[#allocation12 + $0xb8] sm:$0xff]  }
 0x111   : > { %8232 = vmatprep.subr.bf16.mxu0 %v9885_v0  ;;  %1006 = vperm.xlu1 %9274, %v911_v25   ;;  %v9298_v18 = vld [vmem:[%s10228_s10 + $0x78] sm:$0xff]   ;;  %v9299_v20 = vld [vmem:[%s10228_s10 + $0x80] sm:$0xff]   ;;  %v9301_v22 = vld [vmem:[%s10228_s10 + $0x90] sm:$0xff]  }
 0x112   : > { %8425 = vmatpush3.bf16.msra.mxu1 %v9309_v6  ;;  %v9302_v23 = vld [vmem:[%s10228_s10 + $0x98] sm:$0xff]   ;;  %v9303_v24 = vld [vmem:[%s10228_s10 + $0xa0] ss:$0 sps:$4 sm:$0xff]  }
 0x113   : > { %8426 = vmatprep.subr.bf16.mxu1 %v9311_v8  ;;  %v10321_v25 = vld [vmem:[#allocation12 + $0xc0] sm:$0xff]  }
 0x114   : > { %8233 = vmatpush3.bf16.msra.mxu0 %v9282_v15  ;;  %1011 = vperm.xlu0 %9273, %v912_v27   ;;  %v9297_v15 = vld [vmem:[%s10228_s10 + $0x70] sm:$0xff]  }
 0x115   : > { %1016 = vperm.xlu1 %9274, %v913_v28   ;;  %8318 = vmatprep.subr.bf16.mxu0 %v9304_v41 }
 0x116   : > { %8427 = vmatpush3.bf16.msra.mxu1 %v9311_v8  ;;  %v9355_v8 = vld [vmem:[#allocation12 + $0x48] sm:$0xff]  }
 0x117   : > { %8235 = vmatmul.mubr.bf16.vlgmr.msra.gmra.mrb[0].mxu0 %v9283_v16  ;;  %8428 = vmatprep.subr.bf16.mxu1 %v9313_v11  ;;  %v9318_v16 = vld [vmem:[#allocation12 + $0xa8] sm:$0xff]  }
 0x118   : > { %8238 = vmatprep.mubr.msk.bf16.mxu0 %vm9886_vm0, %v9885_v0  ;;  %1021 = vperm.xlu0 %9273, %v914_v29  }
 0x119   : > { %1026 = vperm.xlu1 %9274, %v915_v30   ;;  %8319 = vmatpush3.bf16.msra.mxu0 %v9304_v41 }
 0x11a   : > { %8320 = vmatprep.subr.bf16.mxu0 %v9305_v63  ;;  %8429 = vmatpush3.bf16.msra.mxu1 %v9313_v11 }
 0x11b   : > { %8430 = vmatprep.subr.bf16.mxu1 %v9316_v13 }
 0x11c   : > { %1031 = vperm.xlu0 %9273, %v916_v32  }
 0x11d   : > { %1036 = vperm.xlu1 %9274, %v917_v33   ;;  %8321 = vmatpush3.bf16.msra.mxu0 %v9305_v63 }
 0x11e   : > { %8322 = vmatprep.subr.bf16.mxu0 %v9306_v2  ;;  %8431 = vmatpush3.bf16.msra.mxu1 %v9316_v13 }
 0x11f   : > { %8239 = vmatmul.mubr.bf16.gmra.mrb[4].mxu0 %v9284_v21  ;;  %8432 = vmatprep.subr.bf16.mxu1 %v9318_v16  ;;  %v9300_v21 = vld [vmem:[%s10228_s10 + $0x88] sm:$0xff]  }
 0x120   : > { %8242 = vmatprep.mubr.msk.bf16.mxu0 %vm9886_vm0, %v9885_v0  ;;  %1041 = vperm.xlu0 %9273, %v918_v34  }
 0x121   : > { %1046 = vperm.xlu1 %9274, %v919_v35   ;;  %8323 = vmatpush3.bf16.msra.mxu0 %v9306_v2  ;;  %v9353_v35 = vld [vmem:[#allocation12 + $0x40] sm:$0xff]  }
 0x122   : > { %8324 = vmatprep.subr.bf16.mxu0 %v9308_v4  ;;  %8433 = vmatpush3.bf16.msra.mxu1 %v9318_v16  ;;  %v9358_v16 = vld [vmem:[#allocation12 + $0x50] sm:$0xff]  }
 0x123   : > { %8434 = vmatprep.subr.bf16.mxu1 %v9320_v17 }
 0x124   : > { %1051 = vperm.xlu0 %9273, %v920_v37  }
 0x125   : > { %1056 = vperm.xlu1 %9274, %v921_v38   ;;  %8325 = vmatpush3.bf16.msra.mxu0 %v9308_v4 }
 0x126   : > { %8326 = vmatprep.subr.bf16.mxu0 %v9310_v7  ;;  %8435 = vmatpush3.bf16.msra.mxu1 %v9320_v17 }
 0x127   : > { %8243 = vmatmul.mubr.bf16.gmra.mrb[8].mxu0 %v9285_v26  ;;  %8436 = vmatprep.subr.bf16.mxu1 %v9323_v19  ;;  %v10324_v26 = vld [vmem:[#allocation10] ss:$0 sm:$0xff] }
 0x128   : > { %8246 = vmatprep.mubr.msk.bf16.mxu0 %vm9886_vm0, %v9885_v0  ;;  %1061 = vperm.xlu0 %9273, %v922_v39  }
 0x129   : > { %1066 = vperm.xlu1 %9274, %v923_v40   ;;  %8327 = vmatpush3.bf16.msra.mxu0 %v9310_v7 }
 0x12a   : > { %8328 = vmatprep.subr.bf16.mxu0 %v9312_v9  ;;  %8437 = vmatpush3.bf16.msra.mxu1 %v9323_v19 }
 0x12b   : > { %8474 = vmatprep.subr.bf16.mxu1 %v10321_v25 }
 0x12c   : > { %1071 = vperm.xlu0 %9273, %v924_v43  }
 0x12d   : > { %1076 = vperm.xlu1 %9274, %v925_v44   ;;  %8329 = vmatpush3.bf16.msra.mxu0 %v9312_v9 }
 0x12e   : > { %8330 = vmatprep.subr.bf16.mxu0 %v9314_v12 }
 0x12f   : > { %8247 = vmatmul.mubr.bf16.gmra.mrb[12].mxu0 %v9286_v31 }
 0x130   : > { %8250 = vmatprep.mubr.msk.bf16.mxu0 %vm9886_vm0, %v9885_v0  ;;  %1081 = vperm.xlu0 %9273, %v926_v45  }
 0x131   : > { %1086 = vperm.xlu1 %9274, %v927_v46   ;;  %8331 = vmatpush3.bf16.msra.mxu0 %v9314_v12 }
 0x132   : > { %8332 = vmatprep.subr.bf16.mxu0 %v9317_v14 }
 0x134   : > { %1091 = vperm.xlu0 %9273, %v928_v48  }
 0x135   : > { %1096 = vperm.xlu1 %9274, %v929_v49   ;;  %8333 = vmatpush3.bf16.msra.mxu0 %v9317_v14 }
 0x136   : > { %8370 = vmatprep.subr.bf16.mxu0 %v9353_v35 }
 0x137   : > { %8251 = vmatmul.mubr.bf16.gmra.mrb[16].mxu0 %v9287_v36 }
 0x138   : > { %8254 = vmatprep.mubr.msk.bf16.mxu0 %vm9886_vm0, %v9885_v0  ;;  %1101 = vperm.xlu0 %9273, %v930_v50  }
 0x139   : > { %1106 = vperm.xlu1 %9274, %v931_v51  }
 0x13c   : > { %1111 = vperm.xlu0 %9273, %v932_v53  }
 0x13d   : > { %1116 = vperm.xlu1 %9274, %v933_v54  }
 0x13f   : > { %8255 = vmatmul.mubr.bf16.gmra.mrb[20].mxu0 %v9288_v42 }
 0x140   : > { %8258 = vmatprep.mubr.msk.bf16.mxu0 %vm9886_vm0, %v9885_v0  ;;  %1121 = vperm.xlu0 %9273, %v934_v55  }
 0x141   : > { %1126 = vperm.xlu1 %9274, %v935_v56  }
 0x144   : > { %1131 = vperm.xlu0 %9273, %v936_v58  }
 0x145   : > { %1136 = vperm.xlu1 %9274, %v937_v59  }
 0x147   : > { %8259 = vmatmul.mubr.bf16.gmra.mrb[24].mxu0 %v9289_v47 }
 0x148   : > { %8262 = vmatprep.mubr.msk.bf16.mxu0 %vm9886_vm0, %v9885_v0  ;;  %1141 = vperm.xlu0 %9273, %v938_v60  }
 0x14f   : > { %8263 = vmatmul.mubr.bf16.gmra.mrb[28].mxu0 %v9290_v52 }
 0x150   : > { %8266 = vmatprep.mubr.msk.bf16.mxu0 %vm9886_vm0, %v9885_v0 }
 0x157   : > { %8267 = vmatmul.mubr.bf16.gmra.mrb[32].mxu0 %v9291_v57 }
 0x158   : > { %8270 = vmatprep.mubr.msk.bf16.mxu0 %vm9886_vm0, %v9885_v0 }
 0x15f   : > { %8271 = vmatmul.mubr.bf16.gmra.mrb[36].mxu0 %v9292_v61 }
 0x160   : > { %8274 = vmatprep.mubr.msk.bf16.mxu0 %vm9886_vm0, %v9885_v0 }
 0x167   : > { %8275 = vmatmul.mubr.bf16.gmra.mrb[40].mxu0 %v9293_v62 }
 0x168   : > { %8278 = vmatprep.mubr.msk.bf16.mxu0 %vm9886_vm0, %v9885_v0 }
 0x16f   : > { %8279 = vmatmul.mubr.bf16.gmra.mrb[44].mxu0 %v9294_v1 }
 0x170   : > { %8282 = vmatprep.mubr.msk.bf16.mxu0 %vm9886_vm0, %v9885_v0 }
 0x177   : > { %8283 = vmatmul.mubr.bf16.gmra.mrb[48].mxu0 %v9295_v5  ;;  %v942_v27 = vpop.permute.xlu0 %941 }
 0x178   : > { %8286 = vmatprep.mubr.msk.bf16.mxu0 %vm9886_vm0, %v9885_v0  ;;  %v952_v39 = vpop.permute.xlu1 %951 }
 0x17b   : > { %v947_v36 = vpop.permute.xlu0 %946 }
 0x17c   : > { %v957_v49 = vpop.permute.xlu1 %956 }
 0x17f   : > { %8287 = vmatmul.mubr.bf16.gmra.mrb[52].mxu0 %v9296_v10  ;;  %v962_v62 = vpop.permute.xlu0 %961 }
 0x180   : > { %8290 = vmatprep.mubr.msk.bf16.mxu0 %vm9886_vm0, %v9885_v0  ;;  %v967_v63 = vpop.permute.xlu1 %966 }
 0x183   : > { %v972_v17 = vpop.permute.xlu0 %971 }
 0x187   : > { %8291 = vmatmul.mubr.bf16.gmra.mrb[56].mxu0 %v9297_v15 }
 0x188   : > { %8294 = vmatprep.mubr.msk.bf16.mxu0 %vm9886_vm0, %v9885_v0 }
 0x18f   : > { %8295 = vmatmul.mubr.bf16.gmra.mrb[60].mxu0 %v9298_v18  ;;  %v977_v18 = vpop.permute.xlu1 %976 }
 0x190   : > { %8298 = vmatprep.mubr.msk.bf16.mxu0 %vm9886_vm0, %v9885_v0 }
 0x197   : > { %8299 = vmatmul.mubr.bf16.gmra.mrb[64].mxu0 %v9299_v20 }
 0x198   : > { %8302 = vmatprep.mubr.msk.bf16.mxu0 %vm9886_vm0, %v9885_v0 }
 0x19f   : > { %8303 = vmatmul.mubr.bf16.gmra.mrb[68].mxu0 %v9300_v21 }
 0x1a0   : > { %8306 = vmatprep.mubr.msk.bf16.mxu0 %vm9886_vm0, %v9885_v0 }
 0x1a7   : > { %8307 = vmatmul.mubr.bf16.gmra.mrb[72].mxu0 %v9301_v22 }
 0x1a8   : > { %8310 = vmatprep.mubr.msk.bf16.mxu0 %vm9886_vm0, %v9885_v0 }
 0x1af   : > { %8311 = vmatmul.mubr.bf16.gmra.mrb[76].mxu0 %v9302_v23 }
 0x1b0   : > { %8314 = vmatprep.mubr.msk.bf16.mxu0 %vm9886_vm0, %v9885_v0 }
 0x1b7   : > { %8315 = vmatmul.mubr.bf16.gmra.mrb[80].mxu0 %v9303_v24 }
 0x1ea   : > { %v691_v28 = vpop.f32.mrb[0].mxu0 }
 0x1eb   : > { %v692_v29 = vadd.f32 %v10324_v26, %v691_v28  ;;  %v8236_v30 = vpop.f32.mrb[1].mxu0 }
 0x1ec   : > { %v694_v31 = vpop.f32.mrb[2].mxu0  ;;  %v9360_v30 = vld [vmem:[#allocation12 + $0x58] sm:$0xff]  }
 0x1ed   : > { %v857_v32 = vmax.f32 %v692_v29, 0.0  ;;  %v695_v33 = vadd.f32 %v10324_v26, %v694_v31  ;;  %v8237_v34 = vpop.f32.mrb[3].mxu0 }
 0x1ef   : > { %v858_v0 = vmax.f32 %v695_v33, 0.0  ;;  %v1144_v37 = vmul.f32 %v942_v27, %v857_v32 }
 0x1f1   : > { %v1145_v38 = vmul.f32 %v947_v36, %v858_v0 }
 0x1f2   : > { %v699_v40 = vpop.f32.mrb[4].mxu0 }
 0x1f3   : > { %v7728_v41 = vpack.c.bf16 %v1145_v38, %v1144_v37  ;;  %v700_v42 = vadd.f32 %v10324_v26, %v699_v40  ;;  %v8240_v43 = vpop.f32.mrb[5].mxu0  ;;  %v982_v37 = vpop.permute.xlu0 %981  ;;  %v9363_v40 = vld [vmem:[#allocation12 + $0x60] sm:$0xff]  }
 0x1f4   : > { %v702_v44 = vpop.f32.mrb[6].mxu0  ;;  %v987_v38 = vpop.permute.xlu1 %986  ;;  %v9345_v43 = vld [vmem:[#allocation12 + $0xc8] sm:$0xff]  }
 0x1f5   : > { %7729 = vst [vmem:[#allocation2] sm:$0xff] %v7728_v41   ;;  %v859_v45 = vmax.f32 %v700_v42, 0.0  ;;  %v703_v46 = vadd.f32 %v10324_v26, %v702_v44  ;;  %v8241_v47 = vpop.f32.mrb[7].mxu0 }
 0x1f7   : > { %v860_v48 = vmax.f32 %v703_v46, 0.0  ;;  %v1146_v50 = vmul.f32 %v952_v39, %v859_v45 }
 0x1f9   : > { %v1147_v51 = vmul.f32 %v957_v49, %v860_v48  ;;  %v9348_v49 = vld [vmem:[#allocation12 + $0xd0] sm:$0xff]  }
 0x1fa   : > { %v707_v52 = vpop.f32.mrb[8].mxu0 }
 0x1fb   : > { %v7733_v53 = vpack.c.bf16 %v1147_v51, %v1146_v50  ;;  %v708_v54 = vadd.f32 %v10324_v26, %v707_v52  ;;  %v8244_v55 = vpop.f32.mrb[9].mxu0  ;;  %v9365_v50 = vld [vmem:[#allocation12 + $0x68] sm:$0xff]  }
 0x1fc   : > { %v710_v56 = vpop.f32.mrb[10].mxu0  ;;  %v9315_v57 = vld [vmem:[#allocation2] sm:$0xff]  }
 0x1fd   : > { %7893 = vst [vmem:[#allocation2 + $0x8] sm:$0xff] %v7733_v53   ;;  %v861_v58 = vmax.f32 %v708_v54, 0.0  ;;  %v711_v59 = vadd.f32 %v10324_v26, %v710_v56  ;;  %v8245_v60 = vpop.f32.mrb[11].mxu0  ;;  %8334 = vmatprep.mubr.bf16.mxu0 %v9315_v57  ;;  %v9321_v7 = vld [vmem:[#allocation2] sm:$0xfe]  }
 0x1fe   : > { %v2643_v19 = vrot.slane %v9321_v7, 1  ;;  %v9372_v7 = vld [vmem:[#allocation12 + $0x78] sm:$0xff]  }
 0x1ff   : > { %v862_v61 = vmax.f32 %v711_v59, 0.0  ;;  %v1148_v1 = vmul.f32 %v962_v62, %v861_v58  ;;  %v992_v58 = vpop.permute.xlu0 %991  ;;  %v997_v59 = vpop.permute.xlu1 %996 }
 0x201   : > { %v1149_v2 = vmul.f32 %v967_v63, %v862_v61  ;;  %v9367_v61 = vld [vmem:[#allocation12 + $0x70] sm:$0xff]  }
 0x202   : > { %v715_v3 = vpop.f32.mrb[12].mxu0 }
 0x203   : > { %v7738_v4 = vpack.c.bf16 %v1149_v2, %v1148_v1  ;;  %v716_v5 = vadd.f32 %v10324_v26, %v715_v3  ;;  %v8248_v6 = vpop.f32.mrb[13].mxu0 }
 0x204   : > { %v718_v9 = vpop.f32.mrb[14].mxu0  ;;  %v9319_v10 = vld [vmem:[#allocation2 + $0x8] sm:$0xff]   ;;  %v9356_v6 = vld [vmem:[#allocation12 + $0xe0] sm:$0xff]  }
 0x205   : > { %7894 = vst [vmem:[#allocation2 + $0x10] sm:$0xff] %v7738_v4   ;;  %v863_v11 = vmax.f32 %v716_v5, 0.0  ;;  %v719_v12 = vadd.f32 %v10324_v26, %v718_v9  ;;  %v8249_v13 = vpop.f32.mrb[15].mxu0  ;;  %8335 = vmatmul.mubr.bf16.vlgmr.msra.gmra.mrb[84].mxu0 %v9319_v10  ;;  %v9322_v14 = vld [vmem:[#allocation2 + $0x8] sm:$0xff]  }
 0x206   : > { %8371 = vmatpush3.bf16.msra.mxu0 %v9353_v35  ;;  %v2644_v20 = vrot.slane %v9322_v14, 1 }
 0x207   : > { %v864_v15 = vmax.f32 %v719_v12, 0.0  ;;  %8372 = vmatprep.subr.bf16.mxu0 %v9355_v8  ;;  %v1150_v21 = vmul.f32 %v972_v17, %v863_v11 }
 0x208   : > { %v2645_v24 = vsel %vm2642_vm1, %v2643_v19, %v2644_v20 }
 0x209   : > { %v1151_v22 = vmul.f32 %v977_v18, %v864_v15  ;;  %8438 = vmatprep.mubr.bf16.mxu1 %v2645_v24  ;;  %v1002_v15 = vpop.permute.xlu0 %1001 }
 0x20a   : > { %v723_v23 = vpop.f32.mrb[16].mxu0  ;;  %8373 = vmatpush3.bf16.msra.mxu0 %v9355_v8 }
 0x20b   : > { %v7743_v27 = vpack.c.bf16 %v1151_v22, %v1150_v21  ;;  %v724_v28 = vadd.f32 %v10324_v26, %v723_v23  ;;  %v8252_v29 = vpop.f32.mrb[17].mxu0  ;;  %8374 = vmatprep.subr.bf16.mxu0 %v9358_v16 }
 0x20c   : > { %v726_v31 = vpop.f32.mrb[18].mxu0  ;;  %v9324_v32 = vld [vmem:[#allocation2 + $0x10] sm:$0xff]  }
 0x20d   : > { %7895 = vst [vmem:[#allocation2 + $0x18] sm:$0xff] %v7743_v27   ;;  %v865_v33 = vmax.f32 %v724_v28, 0.0  ;;  %v727_v34 = vadd.f32 %v10324_v26, %v726_v31  ;;  %v8253_v35 = vpop.f32.mrb[19].mxu0  ;;  %8338 = vmatprep.mubr.bf16.mxu0 %v9324_v32  ;;  %v9325_v0 = vld [vmem:[#allocation2 + $0x10] sm:$0xff]   ;;  %v9368_v28 = vld [vmem:[#allocation12 + $0xf0] sm:$0xff]  }
 0x20e   : > { %8375 = vmatpush3.bf16.msra.mxu0 %v9358_v16  ;;  %v2646_v39 = vrot.slane %v9325_v0, 1  ;;  %v1007_v16 = vpop.permute.xlu1 %1006  ;;  %v1012_v0 = vpop.permute.xlu0 %1011 }
 0x20f   : > { %v866_v36 = vmax.f32 %v727_v34, 0.0  ;;  %8376 = vmatprep.subr.bf16.mxu0 %v9360_v30  ;;  %v1152_v41 = vmul.f32 %v982_v37, %v865_v33 }
 0x210   : > { %v2647_v45 = vsel %vm2642_vm1, %v2644_v20, %v2646_v39  ;;  %v9361_v20 = vld [vmem:[#allocation12 + $0xe8] sm:$0xff]  }
 0x211   : > { %v1153_v42 = vmul.f32 %v987_v38, %v866_v36  ;;  %8439 = vmatmul.mubr.bf16.vlgmr.msra.gmra.mrb[0].mxu1 %v2647_v45 }
 0x212   : > { %v731_v44 = vpop.f32.mrb[20].mxu0  ;;  %8377 = vmatpush3.bf16.msra.mxu0 %v9360_v30  ;;  %8475 = vmatpush3.bf16.msra.mxu1 %v10321_v25  ;;  %v9351_v25 = vld [vmem:[#allocation12 + $0xd8] sm:$0xff]   ;;  %v1017_v36 = vpop.permute.xlu1 %1016 }
 0x213   : > { %v7748_v46 = vpack.c.bf16 %v1153_v42, %v1152_v41  ;;  %v732_v47 = vadd.f32 %v10324_v26, %v731_v44  ;;  %v8256_v48 = vpop.f32.mrb[21].mxu0  ;;  %8378 = vmatprep.subr.bf16.mxu0 %v9363_v40  ;;  %8476 = vmatprep.subr.bf16.mxu1 %v9345_v43 }
 0x214   : > { %v734_v51 = vpop.f32.mrb[22].mxu0  ;;  %v9326_v52 = vld [vmem:[#allocation2 + $0x18] sm:$0xff]  }
 0x215   : > { %7896 = vst [vmem:[#allocation2 + $0x20] sm:$0xff] %v7748_v46   ;;  %v867_v53 = vmax.f32 %v732_v47, 0.0  ;;  %v735_v54 = vadd.f32 %v10324_v26, %v734_v51  ;;  %v8257_v55 = vpop.f32.mrb[23].mxu0  ;;  %8339 = vmatmul.mubr.bf16.gmra.mrb[88].mxu0 %v9326_v52  ;;  %v9327_v56 = vld [vmem:[#allocation2 + $0x18] sm:$0xff]  }
 0x216   : > { %8379 = vmatpush3.bf16.msra.mxu0 %v9363_v40  ;;  %v2648_v60 = vrot.slane %v9327_v56, 1  ;;  %8477 = vmatpush3.bf16.msra.mxu1 %v9345_v43  ;;  %v9375_v40 = vld [vmem:[#allocation12 + $0xf8] sm:$0xff]   ;;  %v10349_v46 = vld [vmem:[#allocation12 + $0x100] sm:$0xff]   ;;  %v1027_v55 = vpop.permute.xlu1 %1026 }
 0x217   : > { %v868_v57 = vmax.f32 %v735_v54, 0.0  ;;  %8380 = vmatprep.subr.bf16.mxu0 %v9365_v50  ;;  %v1154_v62 = vmul.f32 %v992_v58, %v867_v53  ;;  %8478 = vmatprep.subr.bf16.mxu1 %v9348_v49  ;;  %v1022_v54 = vpop.permute.xlu0 %1021 }
 0x218   : > { %v2649_v2 = vsel %vm2642_vm1, %v2646_v39, %v2648_v60 }
 0x219   : > { %v1155_v63 = vmul.f32 %v997_v59, %v868_v57  ;;  %8442 = vmatprep.mubr.bf16.mxu1 %v2649_v2 }
 0x21a   : > { %v739_v1 = vpop.f32.mrb[24].mxu0  ;;  %8381 = vmatpush3.bf16.msra.mxu0 %v9365_v50  ;;  %8479 = vmatpush3.bf16.msra.mxu1 %v9348_v49 }
 0x21b   : > { %v7753_v3 = vpack.c.bf16 %v1155_v63, %v1154_v62  ;;  %v740_v4 = vadd.f32 %v10324_v26, %v739_v1  ;;  %v8260_v5 = vpop.f32.mrb[25].mxu0  ;;  %8382 = vmatprep.subr.bf16.mxu0 %v9367_v61  ;;  %8480 = vmatprep.subr.bf16.mxu1 %v9351_v25 }
 0x21c   : > { %v742_v8 = vpop.f32.mrb[26].mxu0  ;;  %v9328_v9 = vld [vmem:[#allocation2 + $0x20] sm:$0xff]  }
 0x21d   : > { %7897 = vst [vmem:[#allocation2 + $0x28] sm:$0xff] %v7753_v3   ;;  %v869_v10 = vmax.f32 %v740_v4, 0.0  ;;  %v743_v11 = vadd.f32 %v10324_v26, %v742_v8  ;;  %v8261_v12 = vpop.f32.mrb[27].mxu0  ;;  %8342 = vmatprep.mubr.bf16.mxu0 %v9328_v9  ;;  %v9329_v13 = vld [vmem:[#allocation2 + $0x20] sm:$0xff]   ;;  %v1037_v8 = vpop.permute.xlu1 %1036 }
 0x21e   : > { %8383 = vmatpush3.bf16.msra.mxu0 %v9367_v61  ;;  %v2650_v17 = vrot.slane %v9329_v13, 1  ;;  %8481 = vmatpush3.bf16.msra.mxu1 %v9351_v25 }
 0x21f   : > { %v870_v14 = vmax.f32 %v743_v11, 0.0  ;;  %8384 = vmatprep.subr.bf16.mxu0 %v9372_v7  ;;  %v1156_v18 = vmul.f32 %v1002_v15, %v869_v10  ;;  %8482 = vmatprep.subr.bf16.mxu1 %v9356_v6  ;;  %v10356_v10 = vld [vmem:[#allocation12 + $0x200] sm:$0xff]  }
 0x220   : > { %v2651_v22 = vsel %vm2642_vm1, %v2648_v60, %v2650_v17 }
 0x221   : > { %v1157_v19 = vmul.f32 %v1007_v16, %v870_v14  ;;  %8443 = vmatmul.mubr.bf16.gmra.mrb[4].mxu1 %v2651_v22 }
 0x222   : > { %v747_v21 = vpop.f32.mrb[28].mxu0  ;;  %8385 = vmatpush3.bf16.msra.mxu0 %v9372_v7  ;;  %8483 = vmatpush3.bf16.msra.mxu1 %v9356_v6  ;;  %v1032_v7 = vpop.permute.xlu0 %1031 }
 0x223   : > { %v7758_v23 = vpack.c.bf16 %v1157_v19, %v1156_v18  ;;  %v748_v24 = vadd.f32 %v10324_v26, %v747_v21  ;;  %v8264_v27 = vpop.f32.mrb[29].mxu0  ;;  %8484 = vmatprep.subr.bf16.mxu1 %v9361_v20  ;;  %8734 = vmatprep.subr.bf16.mxu0 %v10356_v10 }
 0x224   : > { %v750_v29 = vpop.f32.mrb[30].mxu0  ;;  %v9330_v30 = vld [vmem:[#allocation2 + $0x28] sm:$0xff]  }
 0x225   : > { %7898 = vst [vmem:[#allocation2 + $0x30] sm:$0xff] %v7758_v23   ;;  %v871_v31 = vmax.f32 %v748_v24, 0.0  ;;  %v751_v32 = vadd.f32 %v10324_v26, %v750_v29  ;;  %v8265_v33 = vpop.f32.mrb[31].mxu0  ;;  %8343 = vmatmul.mubr.bf16.gmra.mrb[92].mxu0 %v9330_v30  ;;  %v9331_v34 = vld [vmem:[#allocation2 + $0x28] sm:$0xff]  }
 0x226   : > { %v2652_v37 = vrot.slane %v9331_v34, 1  ;;  %8485 = vmatpush3.bf16.msra.mxu1 %v9361_v20  ;;  %v1042_v27 = vpop.permute.xlu0 %1041 }
 0x227   : > { %v872_v35 = vmax.f32 %v751_v32, 0.0  ;;  %v1158_v38 = vmul.f32 %v1012_v0, %v871_v31  ;;  %8486 = vmatprep.subr.bf16.mxu1 %v9368_v28 }
 0x228   : > { %v2653_v42 = vsel %vm2642_vm1, %v2650_v17, %v2652_v37 }
 0x229   : > { %v1159_v39 = vmul.f32 %v1017_v36, %v872_v35  ;;  %8446 = vmatprep.mubr.bf16.mxu1 %v2653_v42 }
 0x22a   : > { %v755_v41 = vpop.f32.mrb[32].mxu0  ;;  %8487 = vmatpush3.bf16.msra.mxu1 %v9368_v28  ;;  %v1047_v28 = vpop.permute.xlu1 %1046 }
 0x22b   : > { %v7763_v43 = vpack.c.bf16 %v1159_v39, %v1158_v38  ;;  %v756_v44 = vadd.f32 %v10324_v26, %v755_v41  ;;  %v8268_v45 = vpop.f32.mrb[33].mxu0  ;;  %8488 = vmatprep.subr.bf16.mxu1 %v9375_v40 }
 0x22c   : > { %v758_v47 = vpop.f32.mrb[34].mxu0  ;;  %v9332_v48 = vld [vmem:[#allocation2 + $0x30] sm:$0xff]  }
 0x22d   : > { %7899 = vst [vmem:[#allocation2 + $0x38] sm:$0xff] %v7763_v43   ;;  %v873_v49 = vmax.f32 %v756_v44, 0.0  ;;  %v759_v50 = vadd.f32 %v10324_v26, %v758_v47  ;;  %v8269_v51 = vpop.f32.mrb[35].mxu0  ;;  %8346 = vmatprep.mubr.bf16.mxu0 %v9332_v48  ;;  %v9333_v52 = vld [vmem:[#allocation2 + $0x30] sm:$0xff]   ;;  %v1052_v43 = vpop.permute.xlu0 %1051 }
 0x22e   : > { %v2654_v56 = vrot.slane %v9333_v52, 1  ;;  %8489 = vmatpush3.bf16.msra.mxu1 %v9375_v40  ;;  %v1057_v44 = vpop.permute.xlu1 %1056 }
 0x22f   : > { %v874_v53 = vmax.f32 %v759_v50, 0.0  ;;  %v1160_v57 = vmul.f32 %v1022_v54, %v873_v49  ;;  %8526 = vmatprep.subr.bf16.mxu1 %v10349_v46 }
 0x230   : > { %v2655_v60 = vsel %vm2642_vm1, %v2652_v37, %v2654_v56 }
 0x231   : > { %v1161_v58 = vmul.f32 %v1027_v55, %v874_v53  ;;  %8447 = vmatmul.mubr.bf16.gmra.mrb[8].mxu1 %v2655_v60 }
 0x232   : > { %v763_v59 = vpop.f32.mrb[36].mxu0 }
 0x233   : > { %v7768_v61 = vpack.c.bf16 %v1161_v58, %v1160_v57  ;;  %v764_v62 = vadd.f32 %v10324_v26, %v763_v59  ;;  %v8272_v63 = vpop.f32.mrb[37].mxu0 }
 0x234   : > { %v766_v25 = vpop.f32.mrb[38].mxu0  ;;  %v9334_v1 = vld [vmem:[#allocation2 + $0x38] sm:$0xff]  }
 0x235   : > { %7900 = vst [vmem:[#allocation2 + $0x40] sm:$0xff] %v7768_v61   ;;  %v875_v2 = vmax.f32 %v764_v62, 0.0  ;;  %v767_v3 = vadd.f32 %v10324_v26, %v766_v25  ;;  %v8273_v4 = vpop.f32.mrb[39].mxu0  ;;  %8347 = vmatmul.mubr.bf16.gmra.mrb[96].mxu0 %v9334_v1  ;;  %v9335_v5 = vld [vmem:[#allocation2 + $0x38] sm:$0xff]   ;;  %v1062_v61 = vpop.permute.xlu0 %1061 }
 0x236   : > { %v2656_v9 = vrot.slane %v9335_v5, 1  ;;  %v1067_v62 = vpop.permute.xlu1 %1066 }
 0x237   : > { %v876_v6 = vmax.f32 %v767_v3, 0.0  ;;  %v1162_v11 = vmul.f32 %v1032_v7, %v875_v2 }
 0x238   : > { %v2657_v14 = vsel %vm2642_vm1, %v2654_v56, %v2656_v9 }
 0x239   : > { %v1163_v12 = vmul.f32 %v1037_v8, %v876_v6  ;;  %8450 = vmatprep.mubr.bf16.mxu1 %v2657_v14 }
 0x23a   : > { %v771_v13 = vpop.f32.mrb[40].mxu0 }
 0x23b   : > { %v7773_v15 = vpack.c.bf16 %v1163_v12, %v1162_v11  ;;  %v772_v16 = vadd.f32 %v10324_v26, %v771_v13  ;;  %v8276_v17 = vpop.f32.mrb[41].mxu0 }
 0x23c   : > { %v774_v18 = vpop.f32.mrb[42].mxu0  ;;  %v9336_v19 = vld [vmem:[#allocation2 + $0x40] sm:$0xff]  }
 0x23d   : > { %7901 = vst [vmem:[#allocation2 + $0x48] sm:$0xff] %v7773_v15   ;;  %v877_v20 = vmax.f32 %v772_v16, 0.0  ;;  %v775_v21 = vadd.f32 %v10324_v26, %v774_v18  ;;  %v8277_v22 = vpop.f32.mrb[43].mxu0  ;;  %8350 = vmatprep.mubr.bf16.mxu0 %v9336_v19  ;;  %v9337_v23 = vld [vmem:[#allocation2 + $0x40] sm:$0xff]   ;;  %v1072_v15 = vpop.permute.xlu0 %1071 }
 0x23e   : > { %v2658_v29 = vrot.slane %v9337_v23, 1  ;;  %v1077_v16 = vpop.permute.xlu1 %1076 }
 0x23f   : > { %v878_v24 = vmax.f32 %v775_v21, 0.0  ;;  %v1164_v30 = vmul.f32 %v1042_v27, %v877_v20 }
 0x240   : > { %v2659_v33 = vsel %vm2642_vm1, %v2656_v9, %v2658_v29 }
 0x241   : > { %v1165_v31 = vmul.f32 %v1047_v28, %v878_v24  ;;  %8451 = vmatmul.mubr.bf16.gmra.mrb[12].mxu1 %v2659_v33 }
 0x242   : > { %v779_v32 = vpop.f32.mrb[44].mxu0 }
 0x243   : > { %v7778_v34 = vpack.c.bf16 %v1165_v31, %v1164_v30  ;;  %v780_v35 = vadd.f32 %v10324_v26, %v779_v32  ;;  %v8280_v0 = vpop.f32.mrb[45].mxu0 }
 0x244   : > { %v782_v36 = vpop.f32.mrb[46].mxu0  ;;  %v9338_v37 = vld [vmem:[#allocation2 + $0x48] sm:$0xff]  }
 0x245   : > { %7902 = vst [vmem:[#allocation2 + $0x50] sm:$0xff] %v7778_v34   ;;  %v879_v38 = vmax.f32 %v780_v35, 0.0  ;;  %v783_v39 = vadd.f32 %v10324_v26, %v782_v36  ;;  %v8281_v40 = vpop.f32.mrb[47].mxu0  ;;  %8351 = vmatmul.mubr.bf16.gmra.mrb[100].mxu0 %v9338_v37  ;;  %v9339_v41 = vld [vmem:[#allocation2 + $0x48] sm:$0xff]   ;;  %v1082_v34 = vpop.permute.xlu0 %1081 }
 0x246   : > { %v2660_v45 = vrot.slane %v9339_v41, 1  ;;  %v1087_v35 = vpop.permute.xlu1 %1086 }
 0x247   : > { %v880_v42 = vmax.f32 %v783_v39, 0.0  ;;  %v1166_v47 = vmul.f32 %v1052_v43, %v879_v38 }
 0x248   : > { %v2661_v50 = vsel %vm2642_vm1, %v2658_v29, %v2660_v45 }
 0x249   : > { %v1167_v48 = vmul.f32 %v1057_v44, %v880_v42  ;;  %8454 = vmatprep.mubr.bf16.mxu1 %v2661_v50 }
 0x24a   : > { %v787_v49 = vpop.f32.mrb[48].mxu0 }
 0x24b   : > { %v7783_v51 = vpack.c.bf16 %v1167_v48, %v1166_v47  ;;  %v788_v52 = vadd.f32 %v10324_v26, %v787_v49  ;;  %v8284_v53 = vpop.f32.mrb[49].mxu0 }
 0x24c   : > { %v790_v54 = vpop.f32.mrb[50].mxu0  ;;  %v9340_v55 = vld [vmem:[#allocation2 + $0x50] sm:$0xff]  }
 0x24d   : > { %7903 = vst [vmem:[#allocation2 + $0x58] sm:$0xff] %v7783_v51   ;;  %v881_v56 = vmax.f32 %v788_v52, 0.0  ;;  %v791_v57 = vadd.f32 %v10324_v26, %v790_v54  ;;  %v8285_v58 = vpop.f32.mrb[51].mxu0  ;;  %8354 = vmatprep.mubr.bf16.mxu0 %v9340_v55  ;;  %v9342_v59 = vld [vmem:[#allocation2 + $0x50] sm:$0xff]   ;;  %v1092_v51 = vpop.permute.xlu0 %1091 }
 0x24e   : > { %v2662_v63 = vrot.slane %v9342_v59, 1  ;;  %v1097_v52 = vpop.permute.xlu1 %1096  ;;  %v10378_v59 = vld [vmem:[#allocation10] ss:$0 sm:$0xff] }
 0x24f   : > { %v882_v60 = vmax.f32 %v791_v57, 0.0  ;;  %v1168_v25 = vmul.f32 %v1062_v61, %v881_v56 }
 0x250   : > { %v2663_v3 = vsel %vm2642_vm1, %v2660_v45, %v2662_v63 }
 0x251   : > { %v1169_v1 = vmul.f32 %v1067_v62, %v882_v60  ;;  %8455 = vmatmul.mubr.bf16.gmra.mrb[16].mxu1 %v2663_v3 }
 0x252   : > { %v795_v2 = vpop.f32.mrb[52].mxu0 }
 0x253   : > { %v7788_v4 = vpack.c.bf16 %v1169_v1, %v1168_v25  ;;  %v796_v5 = vadd.f32 %v10324_v26, %v795_v2  ;;  %v8288_v6 = vpop.f32.mrb[53].mxu0 }
 0x254   : > { %v798_v7 = vpop.f32.mrb[54].mxu0  ;;  %v9343_v8 = vld [vmem:[#allocation2 + $0x58] sm:$0xff]  }
 0x255   : > { %7904 = vst [vmem:[#allocation2 + $0x60] sm:$0xff] %v7788_v4   ;;  %v883_v9 = vmax.f32 %v796_v5, 0.0  ;;  %v799_v11 = vadd.f32 %v10324_v26, %v798_v7  ;;  %v8289_v12 = vpop.f32.mrb[55].mxu0  ;;  %8355 = vmatmul.mubr.bf16.gmra.mrb[104].mxu0 %v9343_v8  ;;  %v9344_v13 = vld [vmem:[#allocation2 + $0x58] sm:$0xff]   ;;  %v1102_v4 = vpop.permute.xlu0 %1101 }
 0x256   : > { %v2664_v17 = vrot.slane %v9344_v13, 1  ;;  %v1107_v5 = vpop.permute.xlu1 %1106 }
 0x257   : > { %v884_v14 = vmax.f32 %v799_v11, 0.0  ;;  %v1170_v18 = vmul.f32 %v1072_v15, %v883_v9 }
 0x258   : > { %v2665_v21 = vsel %vm2642_vm1, %v2662_v63, %v2664_v17 }
 0x259   : > { %v1171_v19 = vmul.f32 %v1077_v16, %v884_v14  ;;  %8458 = vmatprep.mubr.bf16.mxu1 %v2665_v21 }
 0x25a   : > { %v803_v20 = vpop.f32.mrb[56].mxu0 }
 0x25b   : > { %v7793_v22 = vpack.c.bf16 %v1171_v19, %v1170_v18  ;;  %v804_v23 = vadd.f32 %v10324_v26, %v803_v20  ;;  %v8292_v24 = vpop.f32.mrb[57].mxu0 }
 0x25c   : > { %v806_v27 = vpop.f32.mrb[58].mxu0  ;;  %v9346_v28 = vld [vmem:[#allocation2 + $0x60] sm:$0xff]   ;;  %v1117_v24 = vpop.permute.xlu1 %1116 }
 0x25d   : > { %7905 = vst [vmem:[#allocation2 + $0x68] sm:$0xff] %v7793_v22   ;;  %v885_v29 = vmax.f32 %v804_v23, 0.0  ;;  %v807_v30 = vadd.f32 %v10324_v26, %v806_v27  ;;  %v8293_v31 = vpop.f32.mrb[59].mxu0  ;;  %8358 = vmatprep.mubr.bf16.mxu0 %v9346_v28  ;;  %v9347_v32 = vld [vmem:[#allocation2 + $0x60] sm:$0xff]   ;;  %v1112_v23 = vpop.permute.xlu0 %1111 }
 0x25e   : > { %v2666_v0 = vrot.slane %v9347_v32, 1  ;;  %v9369_v22 = vld [vmem:[#allocation2] sm:$0xff]   ;;  %v10386_v32 = vld [vmem:[#allocation2 + $0x8] sm:$0xff]  }
 0x25f   : > { %v886_v33 = vmax.f32 %v807_v30, 0.0  ;;  %v1172_v36 = vmul.f32 %v1082_v34, %v885_v29 }
 0x260   : > { %v2667_v39 = vsel %vm2642_vm1, %v2664_v17, %v2666_v0 }
 0x261   : > { %v1173_v37 = vmul.f32 %v1087_v35, %v886_v33  ;;  %8459 = vmatmul.mubr.bf16.gmra.mrb[20].mxu1 %v2667_v39 }
 0x262   : > { %v811_v38 = vpop.f32.mrb[60].mxu0 }
 0x263   : > { %v7798_v40 = vpack.c.bf16 %v1173_v37, %v1172_v36  ;;  %v812_v41 = vadd.f32 %v10324_v26, %v811_v38  ;;  %v8296_v42 = vpop.f32.mrb[61].mxu0 }
 0x264   : > { %v814_v43 = vpop.f32.mrb[62].mxu0  ;;  %v9349_v44 = vld [vmem:[#allocation2 + $0x68] sm:$0xff]   ;;  %v2004_v42 = vshll.u32 %v10386_v32, 16 }
 0x265   : > { %7906 = vst [vmem:[#allocation2 + $0x70] sm:$0xff] %v7798_v40   ;;  %v887_v45 = vmax.f32 %v812_v41, 0.0  ;;  %v815_v47 = vadd.f32 %v10324_v26, %v814_v43  ;;  %v8297_v48 = vpop.f32.mrb[63].mxu0  ;;  %8359 = vmatmul.mubr.bf16.gmra.mrb[108].mxu0 %v9349_v44  ;;  %v9350_v49 = vld [vmem:[#allocation2 + $0x68] sm:$0xff]   ;;  %v9373_v44 = vld [vmem:[#allocation2 + $0x10] sm:$0xff]  }
 0x266   : > { %v2668_v53 = vrot.slane %v9350_v49, 1 }
 0x267   : > { %v888_v50 = vmax.f32 %v815_v47, 0.0  ;;  %v1174_v54 = vmul.f32 %v1092_v51, %v887_v45  ;;  %v1122_v45 = vpop.permute.xlu0 %1121  ;;  %v1127_v47 = vpop.permute.xlu1 %1126 }
 0x268   : > { %v2669_v57 = vsel %vm2642_vm1, %v2666_v0, %v2668_v53  ;;  %v1999_v0 = vshll.u32 %v9369_v22, 16 }
 0x269   : > { %v1175_v55 = vmul.f32 %v1097_v52, %v888_v50  ;;  %8462 = vmatprep.mubr.bf16.mxu1 %v2669_v57 }
 0x26a   : > { %v819_v56 = vpop.f32.mrb[64].mxu0  ;;  %v2001_v49 = vrot.slane %v1999_v0, 1 }
 0x26b   : > { %v7803_v58 = vpack.c.bf16 %v1175_v55, %v1174_v54  ;;  %v820_v60 = vadd.f32 %v10378_v59, %v819_v56  ;;  %v8300_v61 = vpop.f32.mrb[65].mxu0  ;;  %v1997_v54 = vshrl.u32 %v9369_v22, 16  ;;  %v2006_v55 = vrot.slane %v2004_v42, 1  ;;  %v10392_v56 = vld [vmem:[#allocation2 + $0x18] sm:$0xff]   ;;  %v10402_v22 = vld [vmem:[#allocation2 + $0x28] sm:$0xff]  }
 0x26c   : > { %v822_v26 = vpop.f32.mrb[66].mxu0  ;;  %v9352_v62 = vld [vmem:[#allocation2 + $0x70] sm:$0xff]   ;;  %v2012_v61 = vshll.u32 %v9373_v44, 16 }
 0x26d   : > { %7907 = vst [vmem:[#allocation2 + $0x78] sm:$0xff] %v7803_v58   ;;  %v889_v63 = vmax.f32 %v820_v60, 0.0  ;;  %v823_v25 = vadd.f32 %v10378_v59, %v822_v26  ;;  %v8301_v1 = vpop.f32.mrb[67].mxu0  ;;  %8362 = vmatprep.mubr.bf16.mxu0 %v9352_v62  ;;  %v9354_v2 = vld [vmem:[#allocation2 + $0x70] sm:$0xff]  }
 0x26e   : > { %v2670_v6 = vrot.slane %v9354_v2, 1 }
 0x26f   : > { %v890_v3 = vmax.f32 %v823_v25, 0.0  ;;  %v1176_v7 = vmul.f32 %v1102_v4, %v889_v63  ;;  %v2002_v63 = vor.u32 %v2001_v49, %v1997_v54  ;;  %v9383_v49 = vld [vmem:[#allocation2 + $0x20] sm:$0xff]  }
 0x270   : > { %v2671_v11 = vsel %vm2642_vm1, %v2668_v53, %v2670_v6 }
 0x271   : > { %v1177_v8 = vmul.f32 %v1107_v5, %v890_v3  ;;  %8463 = vmatmul.mubr.bf16.gmra.mrb[24].mxu1 %v2671_v11  ;;  %v2007_v3 = vsel %vm1995_vm2, %v2002_v63, %v2006_v55  ;;  %v2020_v5 = vshll.u32 %v10392_v56, 16  ;;  %v9389_v63 = vld [vmem:[#allocation2 + $0x40] sm:$0xff]  }
 0x272   : > { %v827_v9 = vpop.f32.mrb[68].mxu0 }
 0x273   : > { %v7808_v12 = vpack.c.bf16 %v1177_v8, %v1176_v7  ;;  %v828_v13 = vadd.f32 %v10378_v59, %v827_v9  ;;  %v8304_v14 = vpop.f32.mrb[69].mxu0  ;;  %v9379_v7 = vld [vmem:[#allocation2 + $0x20] sm:$0xff]   ;;  %v1132_v8 = vpop.permute.xlu0 %1131 }
 0x274   : > { %v830_v15 = vpop.f32.mrb[70].mxu0  ;;  %v9357_v16 = vld [vmem:[#allocation2 + $0x78] sm:$0xff]   ;;  %v1137_v9 = vpop.permute.xlu1 %1136 }
 0x275   : > { %7908 = vst [vmem:[#allocation2 + $0x80] sm:$0xff] %v7808_v12   ;;  %v891_v17 = vmax.f32 %v828_v13, 0.0  ;;  %v831_v18 = vadd.f32 %v10378_v59, %v830_v15  ;;  %v8305_v19 = vpop.f32.mrb[71].mxu0  ;;  %8363 = vmatmul.mubr.bf16.gmra.mrb[112].mxu0 %v9357_v16  ;;  %v9359_v20 = vld [vmem:[#allocation2 + $0x78] sm:$0xff]   ;;  %v2014_v12 = vrot.slane %v2012_v61, 1  ;;  %v2008_v15 = vshrl.u32 %v10386_v32, 16 }
 0x276   : > { %v2672_v27 = vrot.slane %v9359_v20, 1  ;;  %v10399_v16 = vld [vmem:[#allocation2 + $0x10] sm:$0xff]   ;;  %v2016_v19 = vshrl.u32 %v9373_v44, 16  ;;  %v2022_v20 = vrot.slane %v2020_v5, 1 }
 0x277   : > { %v892_v21 = vmax.f32 %v831_v18, 0.0  ;;  %v1178_v28 = vmul.f32 %v1112_v23, %v891_v17 }
 0x278   : > { %v2673_v31 = vsel %vm2642_vm1, %v2670_v6, %v2672_v27 }
 0x279   : > { %v1179_v29 = vmul.f32 %v1117_v24, %v892_v21  ;;  %8466 = vmatprep.mubr.bf16.mxu1 %v2673_v31  ;;  %v9377_v21 = vld [vmem:[#allocation2 + $0x8] sm:$0xfe]   ;;  %v2010_v24 = vor.u32 %v2008_v15, %v2006_v55  ;;  %v9404_v31 = vld [vmem:[#allocation12 + $0x208] sm:$0xff]  }
 0x27a   : > { %v835_v30 = vpop.f32.mrb[72].mxu0  ;;  %v9411_v55 = vld [vmem:[#allocation12 + $0x218] sm:$0xff]  }
 0x27b   : > { %v7813_v33 = vpack.c.bf16 %v1179_v29, %v1178_v28  ;;  %v836_v34 = vadd.f32 %v10378_v59, %v835_v30  ;;  %v8308_v35 = vpop.f32.mrb[73].mxu0  ;;  %v2028_v28 = vshll.u32 %v9379_v7, 16  ;;  %v2018_v29 = vor.u32 %v2016_v19, %v2014_v12  ;;  %v9391_v19 = vld [vmem:[#allocation2 + $0x38] sm:$0xff]  }
 0x27c   : > { %v838_v36 = vpop.f32.mrb[74].mxu0  ;;  %v9362_v37 = vld [vmem:[#allocation2 + $0x80] sm:$0xff]   ;;  %v1142_v35 = vpop.permute.xlu0 %1141 }
 0x27d   : > { %7909 = vst [vmem:[#allocation2 + $0x88] sm:$0xff] %v7813_v33   ;;  %v893_v38 = vmax.f32 %v836_v34, 0.0  ;;  %v839_v39 = vadd.f32 %v10378_v59, %v838_v36  ;;  %v8309_v40 = vpop.f32.mrb[75].mxu0  ;;  %8366 = vmatprep.mubr.bf16.mxu0 %v9362_v37  ;;  %v9364_v41 = vld [vmem:[#allocation2 + $0x80] sm:$0xff]   ;;  %v2015_v33 = vsel %vm1995_vm2, %v2010_v24, %v2014_v12  ;;  %v3179_v34 = vrot.slane %v10399_v16, 1 }
 0x27e   : > { %v2674_v48 = vrot.slane %v9364_v41, 1  ;;  %v2023_v0 = vsel %vm1995_vm2, %v2018_v29, %v2022_v20  ;;  %v2036_v37 = vshll.u32 %v10402_v22, 16  ;;  %v9384_v40 = vld [vmem:[#allocation2 + $0x30] sm:$0xff]   ;;  %v2030_v42 = vrot.slane %v2028_v28, 1 }
 0x27f   : > { %v894_v43 = vmax.f32 %v839_v39, 0.0  ;;  %v1180_v50 = vmul.f32 %v1122_v45, %v893_v38  ;;  %v9382_v38 = vld [vmem:[#allocation2 + $0x18] sm:$0xff]   ;;  %v3178_v39 = vrot.slane %v9377_v21, 1  ;;  %v2044_v54 = vshll.u32 %v9384_v40, 16  ;;  %v10431_v21 = vld [vmem:[#allocation2 + $0x40] sm:$0xff]  }
 0x280   : > { %v2675_v53 = vsel %vm2642_vm1, %v2672_v27, %v2674_v48  ;;  %v2064_v29 = vshrl.u32 %v9389_v63, 16 }
 0x281   : > { %v1181_v51 = vmul.f32 %v1127_v47, %v894_v43  ;;  %8467 = vmatmul.mubr.bf16.gmra.mrb[28].mxu1 %v2675_v53  ;;  %v9407_v43 = vld [vmem:[#allocation12 + $0x210] sm:$0xff]   ;;  %v3180_v45 = vsel %vm2642_vm1, %v3178_v39, %v3179_v34  ;;  %v2024_v47 = vshrl.u32 %v10392_v56, 16  ;;  %v3181_v53 = vrot.slane %v9382_v38, 1  ;;  %v9426_v39 = vld [vmem:[#allocation12 + $0x238] sm:$0xff]  }
 0x282   : > { %v843_v52 = vpop.f32.mrb[76].mxu0 }
 0x283   : > { %v7818_v57 = vpack.c.bf16 %v1181_v51, %v1180_v50  ;;  %v844_v58 = vadd.f32 %v10378_v59, %v843_v52  ;;  %v8312_v60 = vpop.f32.mrb[77].mxu0  ;;  %v2038_v50 = vrot.slane %v2036_v37, 1  ;;  %v10413_v51 = vld [vmem:[#allocation2 + $0x38] sm:$0xff]   ;;  %v2026_v52 = vor.u32 %v2024_v47, %v2022_v20 }
 0x284   : > { %v846_v26 = vpop.f32.mrb[78].mxu0  ;;  %v9366_v62 = vld [vmem:[#allocation2 + $0x88] sm:$0xff]   ;;  %v9387_v60 = vld [vmem:[#allocation12 + $0x108] sm:$0xff]   ;;  %v2052_v61 = vshll.u32 %v10413_v51, 16  ;;  %v2056_v20 = vshrl.u32 %v10413_v51, 16 }
 0x285   : > { %7910 = vst [vmem:[#allocation2 + $0x90] sm:$0xff] %v7818_v57   ;;  %v895_v25 = vmax.f32 %v844_v58, 0.0  ;;  %v847_v1 = vadd.f32 %v10378_v59, %v846_v26  ;;  %v8313_v2 = vpop.f32.mrb[79].mxu0  ;;  %8367 = vmatmul.mubr.bf16.gmra.mrb[116].mxu0 %v9366_v62  ;;  %v9371_v4 = vld [vmem:[#allocation2 + $0x88] sm:$0xff]   ;;  %v2031_v57 = vsel %vm1995_vm2, %v2026_v52, %v2030_v42  ;;  %v3183_v58 = vrot.slane %v9383_v49, 1  ;;  %v10418_v62 = vld [vmem:[#allocation2 + $0x30] sm:$0xff]  }
 0x286   : > { %8386 = vmatprep.mubr.bf16.mxu0 %v2007_v3  ;;  %v2676_v11 = vrot.slane %v9371_v4, 1  ;;  %v9386_v26 = vld [vmem:[#allocation2 + $0x28] sm:$0xff]   ;;  %v3182_v2 = vsel %vm2642_vm1, %v3179_v34, %v3181_v53  ;;  %v2046_v3 = vrot.slane %v2044_v54, 1  ;;  %v9414_v4 = vld [vmem:[#allocation12 + $0x220] sm:$0xff]   ;;  %v3187_v12 = vrot.slane %v10418_v62, 1  ;;  %v9412_v47 = vld [vmem:[#allocation12 + $0x128] sm:$0xff]  }
 0x287   : > { %v896_v6 = vmax.f32 %v847_v1, 0.0  ;;  %v1182_v13 = vmul.f32 %v1132_v8, %v895_v25  ;;  %v2040_v25 = vshrl.u32 %v10402_v22, 16  ;;  %v10421_v1 = vld [vmem:[#allocation2 + $0x48] sm:$0xff]   ;;  %v3184_v5 = vsel %vm2642_vm1, %v3181_v53, %v3183_v58  ;;  %v9394_v22 = vld [vmem:[#allocation2 + $0x50] sm:$0xff]  }
 0x288   : > { %v2677_v18 = vsel %vm2642_vm1, %v2674_v48, %v2676_v11  ;;  %v2032_v48 = vshrl.u32 %v9379_v7, 16  ;;  %v2054_v7 = vrot.slane %v2052_v61, 1  ;;  %v3185_v8 = vrot.slane %v9386_v26, 1  ;;  %v9397_v52 = vld [vmem:[#allocation2 + $0x50] sm:$0xff]   ;;  %v9401_v53 = vld [vmem:[#allocation2 + $0x68] sm:$0xff]  }
 0x289   : > { %v1183_v14 = vmul.f32 %v1137_v9, %v896_v6  ;;  %8470 = vmatprep.mubr.bf16.mxu1 %v2677_v18  ;;  %v2048_v6 = vshrl.u32 %v9384_v40, 16  ;;  %v9393_v9 = vld [vmem:[#allocation12 + $0x110] sm:$0xff]   ;;  %v2068_v16 = vshll.u32 %v10421_v1, 16  ;;  %v9418_v18 = vld [vmem:[#allocation12 + $0x228] sm:$0xff]   ;;  %v2076_v34 = vshll.u32 %v9394_v22, 16 }
 0x28a   : > { %v851_v17 = vpop.f32.mrb[80].mxu0  ;;  %v3188_v28 = vsel %vm2642_vm1, %v3185_v8, %v3187_v12  ;;  %v2080_v51 = vshrl.u32 %v9394_v22, 16  ;;  %v3195_v61 = vrot.slane %v9397_v52, 1  ;;  %v2100_v62 = vshll.u32 %v9401_v53, 16 }
 0x28b   : > { %v7823_v23 = vpack.c.bf16 %v1183_v14, %v1182_v13  ;;  %v852_v27 = vadd.f32 %v10378_v59, %v851_v17  ;;  %v2060_v13 = vshll.u32 %v9389_v63, 16  ;;  %v2050_v14 = vor.u32 %v2048_v6, %v2046_v3  ;;  %v9398_v17 = vld [vmem:[#allocation12 + $0x118] sm:$0xff]   ;;  %v9402_v63 = vld [vmem:[#allocation2 + $0x58] sm:$0xff]  }
 0x28c   : > { %v9376_v30 = vld [vmem:[#allocation2 + $0x90] ss:$0 sps:$4 sm:$0x11]  }
 0x28d   : > { %7911 = vst [vmem:[#allocation2 + $0x98] sm:$0xff] %v7823_v23   ;;  %v897_v32 = vmax.f32 %v852_v27, 0.0  ;;  %8387 = vmatmul.mubr.bf16.vlgmr.msra.gmra.mrb[84].mxu0 %v2015_v33  ;;  %v2678_v36 = vrot.slane %v9376_v30, 1  ;;  %v3186_v23 = vsel %vm2642_vm1, %v3183_v58, %v3185_v8  ;;  %v2062_v24 = vrot.slane %v2060_v13, 1  ;;  %v8316_v27 = vpop.f32.mrb[81].mxu0  ;;  %v9421_v30 = vld [vmem:[#allocation12 + $0x230] sm:$0xff]  }
 0x28e   : > { %8390 = vmatprep.mubr.bf16.mxu0 %v2023_v0  ;;  %8735 = vmatpush3.bf16.msra.mxu0 %v10356_v10  ;;  %v2034_v10 = vor.u32 %v2032_v48, %v2030_v42  ;;  %v2058_v33 = vor.u32 %v2056_v20, %v2054_v7  ;;  %v854_v37 = vpop.f32.mrb[82].mxu0  ;;  %v2102_v8 = vrot.slane %v2100_v62, 1  ;;  %v9409_v20 = vld [vmem:[#allocation2 + $0x68] sm:$0xff]  }
 0x28f   : > { %v1184_v59 = vmul.f32 %v1142_v35, %v897_v32  ;;  %v2679_v41 = vsel %vm2642_vm1, %v2676_v11, %v2678_v36  ;;  %8736 = vmatprep.subr.bf16.mxu0 %v9404_v31  ;;  %v2042_v11 = vor.u32 %v2040_v25, %v2038_v50  ;;  %v10435_v32 = vld [vmem:[#allocation2 + $0x58] sm:$0xff]   ;;  %v2066_v0 = vor.u32 %v2064_v29, %v2062_v24  ;;  %v8317_v40 = vpop.f32.mrb[83].mxu0 }
 0x290   : > { %8471 = vmatmul.mubr.bf16.gmra.mrb[32].mxu1 %v2679_v41  ;;  %v2039_v56 = vsel %vm1995_vm2, %v2034_v10, %v2038_v50  ;;  %v9405_v35 = vld [vmem:[#allocation12 + $0x120] sm:$0xff]   ;;  %v3189_v36 = vrot.slane %v9391_v19, 1  ;;  %v2063_v38 = vsel %vm1995_vm2, %v2058_v33, %v2062_v24  ;;  %v2084_v42 = vshll.u32 %v10435_v32, 16 }
 0x291   : > { %v7724_v44 = vpack.c.bf16 %v1184_v59, %v1184_v59  ;;  %8490 = vmatprep.mubr.bf16.mxu1 %v3180_v45  ;;  %v2047_v15 = vsel %vm1995_vm2, %v2042_v11, %v2046_v3  ;;  %v3191_v59 = vrot.slane %v10431_v21, 1  ;;  %v9399_v45 = vld [vmem:[#allocation2 + $0x60] sm:$0xff]   ;;  %v2072_v50 = vshrl.u32 %v10421_v1, 16  ;;  %v9428_v1 = vld [vmem:[#allocation12 + $0x138] sm:$0xff]   ;;  %v9416_v40 = vld [vmem:[#allocation2 + $0x78] sm:$0xff]  }
 0x292   : > { %8737 = vmatpush3.bf16.msra.mxu0 %v9404_v31  ;;  %v2070_v31 = vrot.slane %v2068_v16, 1  ;;  %v3190_v48 = vsel %vm2642_vm1, %v3187_v12, %v3189_v36  ;;  %v2086_v10 = vrot.slane %v2084_v42, 1  ;;  %v2088_v25 = vshrl.u32 %v10435_v32, 16  ;;  %v10449_v12 = vld [vmem:[#allocation12 + $0x140] sm:$0xff]   ;;  %v9417_v42 = vld [vmem:[#allocation2 + $0x80] sm:$0xff]  }
 0x293   : > { %1390 = vst [vmem:[#allocation2 + $0xa0] sm:$0xf] %v7724_v44  ;;  %8738 = vmatprep.subr.bf16.mxu0 %v9407_v43  ;;  %v9396_v44 = vld [vmem:[#allocation2 + $0x48] sm:$0xff]   ;;  %v3192_v49 = vsel %vm2642_vm1, %v3189_v36, %v3191_v59  ;;  %v2096_v6 = vshrl.u32 %v9399_v45, 16  ;;  %v2104_v19 = vshrl.u32 %v9401_v53, 16  ;;  %v3201_v33 = vrot.slane %v9409_v20, 1 }
 0x294   : > { %v2071_v41 = vsel %vm1995_vm2, %v2066_v0, %v2070_v31  ;;  %v2074_v54 = vor.u32 %v2072_v50, %v2070_v31  ;;  %v3193_v58 = vrot.slane %v9396_v44, 1  ;;  %v2090_v11 = vor.u32 %v2088_v25, %v2086_v10  ;;  %v9423_v53 = vld [vmem:[#allocation2 + $0x18] sm:$0xff]  }
 0x295   : > { %8391 = vmatmul.mubr.bf16.gmra.mrb[88].mxu0 %v2031_v57  ;;  %v2106_v31 = vor.u32 %v2104_v19, %v2102_v8  ;;  %v6124_v62 = vrot.slane %v9423_v53, 3 }
 0x296   : > { %8394 = vmatprep.mubr.bf16.mxu0 %v2039_v56  ;;  %8739 = vmatpush3.bf16.msra.mxu0 %v9407_v43  ;;  %v2078_v43 = vrot.slane %v2076_v34, 1 }
 0x297   : > { %8740 = vmatprep.subr.bf16.mxu0 %v9411_v55 }
 0x298   : > { %8491 = vmatmul.mubr.bf16.vlgmr.msra.gmra.mrb[0].mxu1 %v3182_v2  ;;  %v2082_v57 = vor.u32 %v2080_v51, %v2078_v43  ;;  %v2079_v56 = vsel %vm1995_vm2, %v2074_v54, %v2078_v43  ;;  %v3194_v2 = vsel %vm2642_vm1, %v3191_v59, %v3193_v58  ;;  %v9419_v43 = vld [vmem:[#allocation2 + $0x90] ss:$0 sps:$4 sm:$0x11]   ;;  %v3207_v51 = vrot.slane %v9417_v42, 1  ;;  %v9422_v54 = vld [vmem:[#allocation2 + $0x10] sm:$0xf8]  }
 0x299   : > { %8527 = vmatpush3.bf16.msra.mxu1 %v10349_v46  ;;  %8494 = vmatprep.mubr.bf16.mxu1 %v3184_v5  ;;  %v2055_v46 = vsel %vm1995_vm2, %v2050_v14, %v2054_v7  ;;  %v3196_v5 = vsel %vm2642_vm1, %v3193_v58, %v3195_v61  ;;  %v9403_v7 = vld [vmem:[#allocation2 + $0x60] sm:$0xff]   ;;  %v3197_v14 = vrot.slane %v9402_v63, 1  ;;  %v2140_v52 = vshll.u32 %v9419_v43, 16  ;;  %v9432_v58 = vld [vmem:[#allocation2 + $0x10] sm:$0xff]   ;;  %v9431_v63 = vld [vmem:[#allocation2 + $0x8] sm:$0xfe]  }
 0x29a   : > { %8528 = vmatprep.subr.bf16.mxu1 %v9387_v60  ;;  %8741 = vmatpush3.bf16.msra.mxu0 %v9411_v55  ;;  %v9420_v55 = vld [vmem:[#allocation12 + $0x130] sm:$0xff]   ;;  %v2087_v26 = vsel %vm1995_vm2, %v2082_v57, %v2086_v10  ;;  %v9442_v43 = vld [vmem:[#allocation2 + $0x30] sm:$0xff]  }
 0x29b   : > { %8742 = vmatprep.subr.bf16.mxu0 %v9414_v4  ;;  %v3198_v21 = vsel %vm2642_vm1, %v3195_v61, %v3197_v14  ;;  %v9424_v57 = vld [vmem:[#allocation2 + $0x88] sm:$0xff]   ;;  %v2142_v61 = vrot.slane %v2140_v52, 1  ;;  %v3759_v52 = vshrl.u32 %v9442_v43, 16 }
 0x29d   : > { %8395 = vmatmul.mubr.bf16.gmra.mrb[92].mxu0 %v2047_v15  ;;  %8529 = vmatpush3.bf16.msra.mxu1 %v9387_v60  ;;  %v2092_v60 = vshll.u32 %v9399_v45, 16 }
 0x29e   : > { %8398 = vmatprep.mubr.bf16.mxu0 %v2055_v46  ;;  %8530 = vmatprep.subr.bf16.mxu1 %v9393_v9 }
 0x29f   : > { %8743 = vmatpush3.bf16.msra.mxu0 %v9414_v4  ;;  %v2094_v3 = vrot.slane %v2092_v60, 1  ;;  %v9406_v4 = vld [vmem:[#allocation2 + $0x70] sm:$0xff]  }
 0x2a0   : > { %8495 = vmatmul.mubr.bf16.gmra.mrb[4].mxu1 %v3186_v23  ;;  %8744 = vmatprep.subr.bf16.mxu0 %v9418_v18  ;;  %v2108_v15 = vshll.u32 %v9406_v4, 16  ;;  %v9413_v23 = vld [vmem:[#allocation2 + $0x80] sm:$0xff]   ;;  %v2112_v27 = vshrl.u32 %v9406_v4, 16  ;;  %v3726_v4 = vshll.u32 %v9432_v58, 16 }
 0x2a1   : > { %8498 = vmatprep.mubr.bf16.mxu1 %v3188_v28  ;;  %8531 = vmatpush3.bf16.msra.mxu1 %v9393_v9  ;;  %v9408_v9 = vld [vmem:[#allocation2 + $0x78] sm:$0xff]   ;;  %v2098_v13 = vor.u32 %v2096_v6, %v2094_v3  ;;  %v2095_v16 = vsel %vm1995_vm2, %v2090_v11, %v2094_v3  ;;  %v9410_v28 = vld [vmem:[#allocation2 + $0x70] sm:$0xff]   ;;  %v2124_v34 = vshll.u32 %v9413_v23, 16  ;;  %v2128_v44 = vshrl.u32 %v9413_v23, 16 }
 0x2a2   : > { %8532 = vmatprep.subr.bf16.mxu1 %v9398_v17  ;;  %v2116_v46 = vshll.u32 %v9408_v9, 16  ;;  %v2110_v22 = vrot.slane %v2108_v15, 1  ;;  %v3203_v0 = vrot.slane %v9410_v28, 1  ;;  %v2120_v59 = vshrl.u32 %v9408_v9, 16  ;;  %v9429_v9 = vld [vmem:[#allocation2 + $0x28] sm:$0xff]  }
 0x2a3   : > { %8745 = vmatpush3.bf16.msra.mxu0 %v9418_v18  ;;  %v2103_v18 = vsel %vm1995_vm2, %v2098_v13, %v2102_v8  ;;  %v3723_v3 = vshrl.u32 %v9432_v58, 16  ;;  %v3715_v11 = vshrl.u32 %v9431_v63, 16  ;;  %v3718_v13 = vshll.u32 %v9431_v63, 16 }
 0x2a4   : > { %8746 = vmatprep.subr.bf16.mxu0 %v9421_v30  ;;  %v2118_v29 = vrot.slane %v2116_v46, 1  ;;  %v2114_v32 = vor.u32 %v2112_v27, %v2110_v22  ;;  %v3728_v20 = vrot.slane %v3726_v4, 2 }
 0x2a5   : > { %8399 = vmatmul.mubr.bf16.gmra.mrb[96].mxu0 %v2063_v38  ;;  %8533 = vmatpush3.bf16.msra.mxu1 %v9398_v17  ;;  %v3199_v17 = vrot.slane %v9403_v7, 1  ;;  %v9427_v7 = vld [vmem:[#allocation2 + $0x20] sm:$0xff]   ;;  %v3725_v19 = vrot.slane %v3723_v3, 1  ;;  %v3720_v23 = vrot.slane %v3718_v13, 2 }
 0x2a6   : > { %8402 = vmatprep.mubr.bf16.mxu0 %v2071_v41  ;;  %8534 = vmatprep.subr.bf16.mxu1 %v9405_v35  ;;  %v2119_v36 = vsel %vm1995_vm2, %v2114_v32, %v2118_v29  ;;  %v3204_v41 = vsel %vm2642_vm1, %v3201_v33, %v3203_v0  ;;  %v6126_v46 = vrot.slane %v9427_v7, 3  ;;  %v9433_v32 = vld [vmem:[#allocation2 + $0x30] sm:$0xff]  }
 0x2a7   : > { %8747 = vmatpush3.bf16.msra.mxu0 %v9421_v30  ;;  %v3200_v24 = vsel %vm2642_vm1, %v3197_v14, %v3199_v17  ;;  %v9415_v30 = vld [vmem:[#allocation2 + $0x88] sm:$0xff]   ;;  %v3202_v38 = vsel %vm2642_vm1, %v3199_v17, %v3201_v33  ;;  %v9436_v14 = vld [vmem:[#allocation2 + $0x18] sm:$0xff]   ;;  %v9437_v17 = vld [vmem:[#allocation2 + $0x20] sm:$0xff]  }
 0x2a8   : > { %8499 = vmatmul.mubr.bf16.gmra.mrb[8].mxu1 %v3190_v48  ;;  %8748 = vmatprep.subr.bf16.mxu0 %v9426_v39  ;;  %v2132_v37 = vshll.u32 %v9415_v30, 16  ;;  %v3735_v28 = vshll.u32 %v9436_v14, 16  ;;  %v3744_v33 = vshll.u32 %v9437_v17, 16 }
 0x2a9   : > { %8502 = vmatprep.mubr.bf16.mxu1 %v3192_v49  ;;  %8535 = vmatpush3.bf16.msra.mxu1 %v9405_v35  ;;  %v2111_v35 = vsel %vm1995_vm2, %v2106_v31, %v2110_v22  ;;  %v3205_v49 = vrot.slane %v9416_v40, 1  ;;  %v3717_v22 = vrot.slane %v3715_v11, 1  ;;  %v3729_v31 = vor.u32 %v3728_v20, %v3725_v19 }
 0x2aa   : > { %8536 = vmatprep.subr.bf16.mxu1 %v9412_v47  ;;  %v2134_v45 = vrot.slane %v2132_v37, 1  ;;  %v6130_v40 = vrot.slane %v9433_v32, 3  ;;  %v3746_v42 = vrot.slane %v3744_v33, 2  ;;  %v9448_v32 = vld [vmem:[#allocation2 + $0x60] sm:$0xff]  }
 0x2ab   : > { %8749 = vmatpush3.bf16.msra.mxu0 %v9426_v39  ;;  %v2126_v39 = vrot.slane %v2124_v34, 1  ;;  %v3208_v60 = vsel %vm2642_vm1, %v3205_v49, %v3207_v51 }
 0x2ad   : > { %8403 = vmatmul.mubr.bf16.gmra.mrb[100].mxu0 %v2079_v56  ;;  %8537 = vmatpush3.bf16.msra.mxu1 %v9412_v47  ;;  %v2122_v47 = vor.u32 %v2120_v59, %v2118_v29  ;;  %v2130_v48 = vor.u32 %v2128_v44, %v2126_v39  ;;  %v2136_v56 = vshrl.u32 %v9415_v30, 16  ;;  %v3741_v29 = vshrl.u32 %v9437_v17, 16  ;;  %v9440_v59 = vld [vmem:[#allocation2 + $0x28] sm:$0xff]  }
 0x2ae   : > { %8406 = vmatprep.mubr.bf16.mxu0 %v2087_v26  ;;  %8538 = vmatprep.subr.bf16.mxu1 %v9420_v55  ;;  %v9425_v26 = vld [vmem:[#allocation2 + $0x90] sm:$0xff]   ;;  %v6127_v30 = vsel %vm6122_vm3, %v6124_v62, %v6126_v46 }
 0x2af   : > { %v2127_v50 = vsel %vm1995_vm2, %v2122_v47, %v2126_v39  ;;  %v2135_v10 = vsel %vm1995_vm2, %v2130_v48, %v2134_v45  ;;  %v2138_v25 = vor.u32 %v2136_v56, %v2134_v45  ;;  %v3211_v6 = vrot.slane %v9425_v26, 1  ;;  %v9445_v56 = vld [vmem:[#allocation2 + $0x38] sm:$0xff]  }
 0x2b0   : > { %8503 = vmatmul.mubr.bf16.gmra.mrb[12].mxu1 %v3194_v2  ;;  %v3209_v2 = vrot.slane %v9424_v57, 1  ;;  %v3750_v47 = vshrl.u32 %v9440_v59, 16  ;;  %v3753_v48 = vshll.u32 %v9440_v59, 16  ;;  %v3768_v4 = vshrl.u32 %v9445_v56, 16 }
 0x2b1   : > { %8506 = vmatprep.mubr.bf16.mxu1 %v3196_v5  ;;  %8539 = vmatpush3.bf16.msra.mxu1 %v9420_v55  ;;  %v3206_v55 = vsel %vm2642_vm1, %v3203_v0, %v3205_v49  ;;  %v2143_v5 = vsel %vm1995_vm2, %v2138_v25, %v2142_v61  ;;  %v3721_v0 = vor.u32 %v3720_v23, %v3717_v22  ;;  %v9446_v25 = vld [vmem:[#allocation2 + $0x40] sm:$0xff]   ;;  %v9451_v22 = vld [vmem:[#allocation2 + $0x50] sm:$0xff]  }
 0x2b2   : > { %8540 = vmatprep.subr.bf16.mxu1 %v9428_v1  ;;  %v3210_v15 = vsel %vm2642_vm1, %v3207_v51, %v3209_v2  ;;  %v9438_v51 = vld [vmem:[#allocation2 + $0x40] sm:$0xff]   ;;  %v3752_v58 = vrot.slane %v3750_v47, 1  ;;  %v3780_v11 = vshll.u32 %v9446_v25, 16  ;;  %v3795_v33 = vshrl.u32 %v9451_v22, 16 }
 0x2b3   : > { %v3730_v39 = vsel %vm3713_vm4, %v3721_v0, %v3729_v31  ;;  %v6134_v26 = vrot.slane %v9438_v51, 3  ;;  %v9449_v0 = vld [vmem:[#allocation2 + $0x68] sm:$0xff]  }
 0x2b4   : > { %v9466_v47 = vld [vmem:[#allocation12 + $0x170] sm:$0xff]  }
 0x2b5   : > { %8407 = vmatmul.mubr.bf16.gmra.mrb[104].mxu0 %v2095_v16  ;;  %8541 = vmatpush3.bf16.msra.mxu1 %v9428_v1  ;;  %v6123_v1 = vrot.slane %v9422_v54, 3  ;;  %v9430_v16 = vld [vmem:[#allocation2 + $0x98] ss:$0 sps:$4 sm:$0x11]   ;;  %v9439_v54 = vld [vmem:[#allocation2 + $0x48] sm:$0xff]  }
 0x2b6   : > { %8410 = vmatprep.mubr.bf16.mxu0 %v2103_v18  ;;  %8578 = vmatprep.subr.bf16.mxu1 %v10449_v12  ;;  %v3212_v18 = vsel %vm2642_vm1, %v3209_v2, %v3211_v6  ;;  %v3213_v27 = vrot.slane %v9430_v16, 1  ;;  %v9447_v2 = vld [vmem:[#allocation12 + $0x150] sm:$0xff]   ;;  %v3770_v16 = vrot.slane %v3768_v4, 1  ;;  %v10489_v4 = vld [vmem:[#allocation12 + $0x180] sm:$0xff]  }
 0x2b7   : > { %v6125_v8 = vsel %vm6122_vm3, %v6123_v1, %v6124_v62  ;;  %v3761_v62 = vrot.slane %v3759_v52, 1  ;;  %v6136_v1 = vrot.slane %v9439_v54, 3 }
 0x2b8   : > { %8507 = vmatmul.mubr.bf16.gmra.mrb[16].mxu1 %v3198_v21  ;;  %v6128_v21 = vrot.slane %v9429_v9, 3  ;;  %v3214_v37 = vsel %vm2642_vm1, %v3211_v6, %v3213_v27  ;;  %v3777_v9 = vshrl.u32 %v9446_v25, 16 }
 0x2b9   : > { %8510 = vmatprep.mubr.bf16.mxu1 %v3200_v24  ;;  %v3732_v24 = vshrl.u32 %v9436_v14, 16  ;;  %v6137_v13 = vsel %vm6122_vm3, %v6134_v26, %v6136_v1  ;;  %v9444_v14 = vld [vmem:[#allocation2 + $0x58] sm:$0xff]  }
 0x2ba   : > { %v6129_v34 = vsel %vm6122_vm3, %v6126_v46, %v6128_v21  ;;  %v6131_v49 = vsel %vm6122_vm3, %v6128_v21, %v6130_v40  ;;  %v3779_v20 = vrot.slane %v3777_v9, 1  ;;  %v3782_v21 = vrot.slane %v3780_v11, 2  ;;  %v9458_v11 = vld [vmem:[#allocation2 + $0x80] sm:$0xff]  }
 0x2bb   : > { %v6140_v23 = vrot.slane %v9444_v14, 3 }
 0x2bd   : > { %8411 = vmatmul.mubr.bf16.gmra.mrb[108].mxu0 %v2111_v35  ;;  %v9434_v35 = vld [vmem:[#allocation2 + $0x38] sm:$0xff]  }
 0x2be   : > { %8414 = vmatprep.mubr.bf16.mxu0 %v2119_v36  ;;  %v3734_v36 = vrot.slane %v3732_v24, 1  ;;  %v6132_v44 = vrot.slane %v9434_v35, 3  ;;  %v9457_v24 = vld [vmem:[#allocation12 + $0x160] sm:$0xff]  }
 0x2c0   : > { %8511 = vmatmul.mubr.bf16.gmra.mrb[20].mxu1 %v3202_v38  ;;  %v3737_v38 = vrot.slane %v3735_v28, 2  ;;  %v6133_v53 = vsel %vm6122_vm3, %v6130_v40, %v6132_v44  ;;  %v6135_v6 = vsel %vm6122_vm3, %v6132_v44, %v6134_v26  ;;  %v9456_v44 = vld [vmem:[#allocation2 + $0x60] sm:$0xff]   ;;  %v9460_v26 = vld [vmem:[#allocation2 + $0x68] sm:$0xff]  }
 0x2c1   : > { %8514 = vmatprep.mubr.bf16.mxu1 %v3204_v41  ;;  %v3743_v41 = vrot.slane %v3741_v29, 1  ;;  %v3816_v54 = vshll.u32 %v9456_v44, 16 }
 0x2c2   : > { %v3738_v45 = vor.u32 %v3737_v38, %v3734_v36  ;;  %v9462_v36 = vld [vmem:[#allocation12 + $0x168] sm:$0xff]  }
 0x2c4   : > { %v3739_v57 = vsel %vm3713_vm4, %v3729_v31, %v3738_v45  ;;  %v3783_v31 = vor.u32 %v3782_v21, %v3779_v20  ;;  %v6150_v20 = vrot.slane %v9458_v11, 3  ;;  %v9475_v11 = vld [vmem:[#allocation2 + $0x20] sm:$0xff]  }
 0x2c5   : > { %8415 = vmatmul.mubr.bf16.gmra.mrb[112].mxu0 %v2127_v50  ;;  %v3747_v50 = vor.u32 %v3746_v42, %v3743_v41  ;;  %v6142_v41 = vrot.slane %v9448_v32, 3  ;;  %v3797_v42 = vrot.slane %v3795_v33, 1  ;;  %v10497_v32 = vld [vmem:[#allocation2 + $0x90] sm:$0xff]  }
 0x2c6   : > { %8418 = vmatprep.mubr.bf16.mxu0 %v2135_v10  ;;  %v3762_v10 = vshll.u32 %v9442_v43, 16 }
 0x2c7   : > { %v3748_v61 = vsel %vm3713_vm4, %v3738_v45, %v3747_v50  ;;  %v6144_v45 = vrot.slane %v9449_v0, 3  ;;  %v6143_v51 = vsel %vm6122_vm3, %v6140_v23, %v6142_v41 }
 0x2c8   : > { %8515 = vmatmul.mubr.bf16.gmra.mrb[24].mxu1 %v3206_v55  ;;  %v9441_v55 = vld [vmem:[#allocation12 + $0x148] sm:$0xff]   ;;  %v3764_v63 = vrot.slane %v3762_v10, 2  ;;  %v9453_v10 = vld [vmem:[#allocation2 + $0x70] sm:$0xff]  }
 0x2c9   : > { %8518 = vmatprep.mubr.bf16.mxu1 %v3208_v60  ;;  %v3755_v60 = vrot.slane %v3753_v48, 2 }
 0x2ca   : > { %v3765_v7 = vor.u32 %v3764_v63, %v3761_v62  ;;  %v6146_v63 = vrot.slane %v9453_v10, 3 }
 0x2cb   : > { %v3756_v3 = vor.u32 %v3755_v60, %v3752_v58  ;;  %v9469_v58 = vld [vmem:[#allocation12 + $0x178] sm:$0xff]  }
 0x2cd   : > { %8419 = vmatmul.mubr.bf16.gmra.mrb[116].mxu0 %v2143_v5  ;;  %v3771_v5 = vshll.u32 %v9445_v56, 16  ;;  %v3766_v46 = vsel %vm3713_vm4, %v3756_v3, %v3765_v7 }
 0x2ce   : > { %8750 = vmatprep.mubr.bf16.mxu0 %v6125_v8  ;;  %v9443_v8 = vld [vmem:[#allocation2 + $0x50] sm:$0xff]  }
 0x2cf   : > { %v3773_v17 = vrot.slane %v3771_v5, 2  ;;  %v6138_v19 = vrot.slane %v9443_v8, 3  ;;  %v6147_v8 = vsel %vm6122_vm3, %v6144_v45, %v6146_v63 }
 0x2d0   : > { %8519 = vmatmul.mubr.bf16.gmra.mrb[28].mxu1 %v3210_v15  ;;  %v3757_v15 = vsel %vm3713_vm4, %v3747_v50, %v3756_v3 }
 0x2d1   : > { %8522 = vmatprep.mubr.bf16.mxu1 %v3212_v18  ;;  %v9450_v18 = vld [vmem:[#allocation2 + $0x48] sm:$0xff]   ;;  %v3774_v27 = vor.u32 %v3773_v17, %v3770_v16  ;;  %v6141_v35 = vsel %vm6122_vm3, %v6138_v19, %v6140_v23  ;;  %v9465_v23 = vld [vmem:[#allocation2 + $0x80] sm:$0xff]  }
 0x2d2   : > { %v3786_v28 = vshrl.u32 %v9450_v18, 16  ;;  %v3789_v29 = vshll.u32 %v9450_v18, 16  ;;  %v3849_v33 = vshrl.u32 %v9465_v23, 16 }
 0x2d3   : > { %v3784_v40 = vsel %vm3713_vm4, %v3774_v27, %v3783_v31 }
 0x2d4   : > { %v3788_v38 = vrot.slane %v3786_v28, 1  ;;  %v3791_v59 = vrot.slane %v3789_v29, 2 }
 0x2d5   : > { %8751 = vmatmul.mubr.bf16.vlgmr.msra.gmra.mrb[120].mxu0 %v6127_v30  ;;  %v6139_v30 = vsel %vm6122_vm3, %v6136_v1, %v6138_v19  ;;  %v3818_v1 = vrot.slane %v3816_v54, 2 }
 0x2d6   : > { %8754 = vmatprep.mubr.bf16.mxu0 %v6129_v34  ;;  %v3798_v34 = vshll.u32 %v9451_v22, 16  ;;  %v3792_v48 = vor.u32 %v3791_v59, %v3788_v38  ;;  %v9467_v38 = vld [vmem:[#allocation2 + $0x88] sm:$0xff]  }
 0x2d8   : > { %8523 = vmatmul.mubr.bf16.gmra.mrb[32].mxu1 %v3214_v37  ;;  %v3775_v37 = vsel %vm3713_vm4, %v3765_v7, %v3774_v27  ;;  %v3800_v43 = vrot.slane %v3798_v34, 2  ;;  %v3793_v60 = vsel %vm3713_vm4, %v3783_v31, %v3792_v48  ;;  %v3825_v7 = vshll.u32 %v9460_v26, 16 }
 0x2d9   : > { %8542 = vmatprep.mubr.bf16.mxu1 %v3730_v39  ;;  %v9455_v39 = vld [vmem:[#allocation2 + $0x58] sm:$0xff]   ;;  %v3852_v34 = vshll.u32 %v9465_v23, 16 }
 0x2da   : > { %v3807_v50 = vshll.u32 %v9455_v39, 16  ;;  %v3801_v52 = vor.u32 %v3800_v43, %v3797_v42  ;;  %v3827_v18 = vrot.slane %v3825_v7, 2  ;;  %v9468_v42 = vld [vmem:[#allocation2 + $0x90] sm:$0xff]   ;;  %v9479_v23 = vld [vmem:[#allocation2 + $0x38] sm:$0xff]  }
 0x2dc   : > { %v3802_v62 = vsel %vm3713_vm4, %v3792_v48, %v3801_v52 }
 0x2dd   : > { %8755 = vmatmul.mubr.bf16.gmra.mrb[124].mxu0 %v6131_v49  ;;  %v3804_v49 = vshrl.u32 %v9455_v39, 16  ;;  %v11018_v39 = vrot.slane %v10497_v32, 3 }
 0x2de   : > { %8758 = vmatprep.mubr.bf16.mxu0 %v6133_v53  ;;  %v3813_v53 = vshrl.u32 %v9456_v44, 16  ;;  %v3858_v44 = vshrl.u32 %v9467_v38, 16 }
 0x2df   : > { %v3806_v56 = vrot.slane %v3804_v49, 1  ;;  %v3867_v49 = vshrl.u32 %v9468_v42, 16 }
 0x2e0   : > { %8543 = vmatmul.mubr.bf16.vlgmr.msra.gmra.mrb[0].mxu1 %v3739_v57  ;;  %v9454_v57 = vld [vmem:[#allocation2 + $0x78] sm:$0xff]   ;;  %v3815_v25 = vrot.slane %v3813_v53, 1 }
 0x2e1   : > { %8579 = vmatpush3.bf16.msra.mxu1 %v10449_v12  ;;  %8546 = vmatprep.mubr.bf16.mxu1 %v3748_v61  ;;  %v9452_v12 = vld [vmem:[#allocation12 + $0x158] sm:$0xff]   ;;  %v3809_v61 = vrot.slane %v3807_v50, 2  ;;  %v6148_v3 = vrot.slane %v9454_v57, 3  ;;  %v3870_v50 = vshll.u32 %v9468_v42, 16  ;;  %v9486_v42 = vld [vmem:[#allocation2 + $0x60] sm:$0xff]  }
 0x2e2   : > { %8580 = vmatprep.subr.bf16.mxu1 %v9441_v55  ;;  %v3819_v9 = vor.u32 %v3818_v1, %v3815_v25  ;;  %v9470_v53 = vld [vmem:[#allocation2 + $0x98] ss:$0 sps:$4 sm:$0x33]   ;;  %v9472_v1 = vld [vmem:[#allocation2 + $0x10] sm:$0xff]  }
 0x2e3   : > { %v3810_v5 = vor.u32 %v3809_v61, %v3806_v56  ;;  %v3872_v57 = vrot.slane %v3870_v50, 2  ;;  %v3879_v56 = vshll.u32 %v9470_v53, 16  ;;  %v9489_v50 = vld [vmem:[#allocation2 + $0x70] sm:$0xff]  }
 0x2e5   : > { %8759 = vmatmul.mubr.bf16.gmra.mrb[128].mxu0 %v6135_v6  ;;  %8581 = vmatpush3.bf16.msra.mxu1 %v9441_v55  ;;  %v6145_v55 = vsel %vm6122_vm3, %v6142_v41, %v6144_v45  ;;  %v3822_v6 = vshrl.u32 %v9460_v26, 16  ;;  %v3811_v16 = vsel %vm3713_vm4, %v3801_v52, %v3810_v5  ;;  %v3820_v19 = vsel %vm3713_vm4, %v3810_v5, %v3819_v9 }
 0x2e6   : > { %8762 = vmatprep.mubr.bf16.mxu0 %v6137_v13  ;;  %8582 = vmatprep.subr.bf16.mxu1 %v9447_v2  ;;  %v3854_v41 = vrot.slane %v3852_v34, 2  ;;  %v3861_v45 = vshll.u32 %v9467_v38, 16  ;;  %v3860_v52 = vrot.slane %v3858_v44, 1  ;;  %v4384_v5 = vrot.slane %v9472_v1, 2  ;;  %v9496_v38 = vld [vmem:[#allocation12 + $0x1b8] sm:$0xff]  }
 0x2e7   : > { %v3824_v17 = vrot.slane %v3822_v6, 1  ;;  %v9497_v1 = vld [vmem:[#allocation2 + $0x98] ss:$0 sps:$4 sm:$0x33]  }
 0x2e8   : > { %8547 = vmatmul.mubr.bf16.gmra.mrb[4].mxu1 %v3757_v15  ;;  %v9459_v15 = vld [vmem:[#allocation2 + $0x88] sm:$0xff]   ;;  %v3863_v10 = vrot.slane %v3861_v45, 2  ;;  %v4404_v45 = vrot.slane %v9486_v42, 2 }
 0x2e9   : > { %8550 = vmatprep.mubr.bf16.mxu1 %v3766_v46  ;;  %8583 = vmatpush3.bf16.msra.mxu1 %v9447_v2  ;;  %v9461_v2 = vld [vmem:[#allocation2 + $0x70] sm:$0xff]   ;;  %v9464_v46 = vld [vmem:[#allocation2 + $0x78] sm:$0xff]   ;;  %v3828_v27 = vor.u32 %v3827_v18, %v3824_v17 }
 0x2ea   : > { %8584 = vmatprep.subr.bf16.mxu1 %v9452_v12  ;;  %v3831_v13 = vshrl.u32 %v9461_v2, 16  ;;  %v3834_v14 = vshll.u32 %v9461_v2, 16  ;;  %v3840_v28 = vshrl.u32 %v9464_v46, 16  ;;  %v3843_v29 = vshll.u32 %v9464_v46, 16  ;;  %v9471_v2 = vld [vmem:[#allocation2 + $0x8] sm:$0xfc]  }
 0x2eb   : > { %v3829_v0 = vsel %vm3713_vm4, %v3819_v9, %v3828_v27  ;;  %v4383_v6 = vrot.slane %v9471_v2, 2  ;;  %v9478_v18 = vld [vmem:[#allocation2 + $0x30] sm:$0xff]   ;;  %v9481_v46 = vld [vmem:[#allocation12 + $0x190] sm:$0xff]  }
 0x2ec   : > { %v3833_v21 = vrot.slane %v3831_v13, 1  ;;  %v3836_v22 = vrot.slane %v3834_v14, 2  ;;  %v4388_v14 = vrot.slane %v9475_v11, 2  ;;  %v4418_v11 = vrot.slane %v9497_v1, 2 }
 0x2ed   : > { %8763 = vmatmul.mubr.bf16.gmra.mrb[132].mxu0 %v6139_v30  ;;  %8585 = vmatpush3.bf16.msra.mxu1 %v9452_v12  ;;  %v6149_v12 = vsel %vm6122_vm3, %v6146_v63, %v6148_v3  ;;  %v6151_v30 = vsel %vm6122_vm3, %v6148_v3, %v6150_v20  ;;  %v3881_v63 = vrot.slane %v3879_v56, 2  ;;  %v4385_v9 = vsel %vm4382_vm5, %v4383_v6, %v4384_v5  ;;  %v9494_v56 = vld [vmem:[#allocation2 + $0x88] sm:$0xff]  }
 0x2ee   : > { %8766 = vmatprep.mubr.bf16.mxu0 %v6141_v35  ;;  %8586 = vmatprep.subr.bf16.mxu1 %v9457_v24  ;;  %v3837_v31 = vor.u32 %v3836_v22, %v3833_v21  ;;  %v9484_v21 = vld [vmem:[#allocation12 + $0x198] sm:$0xff]  }
 0x2f0   : > { %8551 = vmatmul.mubr.bf16.gmra.mrb[8].mxu1 %v3775_v37  ;;  %v3845_v37 = vrot.slane %v3843_v29, 2  ;;  %v3838_v59 = vsel %vm3713_vm4, %v3828_v27, %v3837_v31  ;;  %v9480_v27 = vld [vmem:[#allocation2 + $0x40] sm:$0xff]  }
 0x2f1   : > { %8554 = vmatprep.mubr.bf16.mxu1 %v3784_v40  ;;  %8587 = vmatpush3.bf16.msra.mxu1 %v9457_v24  ;;  %v6152_v24 = vrot.slane %v9459_v15, 3  ;;  %v3851_v40 = vrot.slane %v3849_v33, 1  ;;  %v4396_v29 = vrot.slane %v9480_v27, 2  ;;  %v9482_v33 = vld [vmem:[#allocation2 + $0x48] sm:$0xff]   ;;  %v9503_v27 = vld [vmem:[#allocation2 + $0x30] sm:$0xff]  }
 0x2f2   : > { %8588 = vmatprep.subr.bf16.mxu1 %v9462_v36 }
 0x2f3   : > { %v6153_v35 = vsel %vm6122_vm3, %v6150_v20, %v6152_v24  ;;  %v3855_v48 = vor.u32 %v3854_v41, %v3851_v40  ;;  %v4392_v20 = vrot.slane %v9478_v18, 2  ;;  %v9485_v40 = vld [vmem:[#allocation2 + $0x58] sm:$0xff]   ;;  %v9502_v18 = vld [vmem:[#allocation2 + $0x28] sm:$0xff]  }
 0x2f4   : > { %v4402_v44 = vrot.slane %v9485_v40, 2 }
 0x2f5   : > { %8767 = vmatmul.mubr.bf16.gmra.mrb[136].mxu0 %v6143_v51  ;;  %8589 = vmatpush3.bf16.msra.mxu1 %v9462_v36  ;;  %v3842_v36 = vrot.slane %v3840_v28, 1  ;;  %v9487_v28 = vld [vmem:[#allocation12 + $0x1a0] sm:$0xff]  }
 0x2f6   : > { %8770 = vmatprep.mubr.bf16.mxu0 %v6145_v55  ;;  %8590 = vmatprep.subr.bf16.mxu1 %v9466_v47  ;;  %v3869_v55 = vrot.slane %v3867_v49, 1  ;;  %v4405_v49 = vsel %vm4382_vm5, %v4402_v44, %v4404_v45 }
 0x2f7   : > { %v3846_v43 = vor.u32 %v3845_v37, %v3842_v36  ;;  %v4398_v36 = vrot.slane %v9482_v33, 2  ;;  %v9508_v33 = vld [vmem:[#allocation12 + $0x1d0] sm:$0xff]  }
 0x2f8   : > { %8555 = vmatmul.mubr.bf16.gmra.mrb[12].mxu1 %v3793_v60  ;;  %v3876_v60 = vshrl.u32 %v9470_v53, 16  ;;  %v3873_v61 = vor.u32 %v3872_v57, %v3869_v55  ;;  %v9491_v53 = vld [vmem:[#allocation2 + $0x78] sm:$0xff]   ;;  %v9492_v55 = vld [vmem:[#allocation2 + $0x80] sm:$0xff]  }
 0x2f9   : > { %8558 = vmatprep.mubr.bf16.mxu1 %v3802_v62  ;;  %8591 = vmatpush3.bf16.msra.mxu1 %v9466_v47  ;;  %v6155_v47 = vsel %vm6122_vm3, %v6152_v24, %v11018_v39  ;;  %v3847_v51 = vsel %vm3713_vm4, %v3837_v31, %v3846_v43  ;;  %v3856_v54 = vsel %vm3713_vm4, %v3846_v43, %v3855_v48  ;;  %v9500_v43 = vld [vmem:[#allocation12 + $0x1c0] sm:$0xff]   ;;  %v4410_v57 = vrot.slane %v9491_v53, 2 }
 0x2fa   : > { %8592 = vmatprep.subr.bf16.mxu1 %v9469_v58  ;;  %v3878_v62 = vrot.slane %v3876_v60, 1  ;;  %v9510_v53 = vld [vmem:[#allocation2 + $0x58] sm:$0xff]  }
 0x2fc   : > { %v3882_v3 = vor.u32 %v3881_v63, %v3878_v62  ;;  %v4414_v62 = vrot.slane %v9494_v56, 2  ;;  %v4935_v56 = vrot.slane %v9510_v53, 2  ;;  %v9521_v53 = vld [vmem:[#allocation2 + $0x90] sm:$0xff]  }
 0x2fd   : > { %8771 = vmatmul.mubr.bf16.gmra.mrb[140].mxu0 %v6147_v8  ;;  %8593 = vmatpush3.bf16.msra.mxu1 %v9469_v58  ;;  %v3864_v58 = vor.u32 %v3863_v10, %v3860_v52  ;;  %v9474_v8 = vld [vmem:[#allocation2 + $0x18] sm:$0xff]   ;;  %v4408_v52 = vrot.slane %v9489_v50, 2 }
 0x2fe   : > { %8774 = vmatprep.mubr.bf16.mxu0 %v6149_v12  ;;  %8630 = vmatprep.subr.bf16.mxu1 %v10489_v4  ;;  %v3883_v7 = vsel %vm3713_vm4, %v3873_v61, %v3882_v3  ;;  %v4386_v13 = vrot.slane %v9474_v8, 2  ;;  %v9477_v12 = vld [vmem:[#allocation12 + $0x188] sm:$0xff]   ;;  %v9498_v8 = vld [vmem:[#allocation2 + $0x10] sm:$0xfc]  }
 0x2ff   : > { %v3865_v26 = vsel %vm3713_vm4, %v3855_v48, %v3864_v58  ;;  %v3874_v25 = vsel %vm3713_vm4, %v3864_v58, %v3873_v61  ;;  %v9488_v48 = vld [vmem:[#allocation2 + $0x68] sm:$0xff]   ;;  %v4412_v58 = vrot.slane %v9492_v55, 2  ;;  %v4411_v60 = vsel %vm4382_vm5, %v4408_v52, %v4410_v57 }
 0x300   : > { %8559 = vmatmul.mubr.bf16.gmra.mrb[16].mxu1 %v3811_v16  ;;  %v4387_v15 = vsel %vm4382_vm5, %v4384_v5, %v4386_v13  ;;  %v9476_v16 = vld [vmem:[#allocation2 + $0x28] sm:$0xff]   ;;  %v4389_v17 = vsel %vm4382_vm5, %v4386_v13, %v4388_v14  ;;  %v9499_v5 = vld [vmem:[#allocation2 + $0x18] sm:$0xff]  }
 0x301   : > { %8562 = vmatprep.mubr.bf16.mxu1 %v3820_v19  ;;  %v4390_v19 = vrot.slane %v9476_v16, 2  ;;  %v4413_v61 = vsel %vm4382_vm5, %v4410_v57, %v4412_v58  ;;  %v4919_v13 = vrot.slane %v9499_v5, 2  ;;  %v9520_v57 = vld [vmem:[#allocation12 + $0x1f0] sm:$0xff]  }
 0x302   : > { %v9513_v5 = vld [vmem:[#allocation2 + $0x68] sm:$0xff]  }
 0x303   : > { %v4391_v22 = vsel %vm4382_vm5, %v4388_v14, %v4390_v19  ;;  %v4393_v24 = vsel %vm4382_vm5, %v4390_v19, %v4392_v20  ;;  %v4918_v14 = vrot.slane %v9498_v8, 2  ;;  %v9548_v8 = vld [vmem:[#allocation15 + $0x10] sm:$0xff]  }
 0x305   : > { %8775 = vmatmul.mubr.bf16.gmra.mrb[144].mxu0 %v6151_v30  ;;  %v9490_v30 = vld [vmem:[#allocation12 + $0x1a8] sm:$0xff]  }
 0x306   : > { %8778 = vmatprep.mubr.bf16.mxu0 %v6153_v35  ;;  %v9483_v35 = vld [vmem:[#allocation2 + $0x50] sm:$0xff]  }
 0x307   : > { %v4400_v37 = vrot.slane %v9483_v35, 2  ;;  %v4925_v35 = vrot.slane %v9503_v27, 2  ;;  %v9516_v27 = vld [vmem:[#allocation2 + $0x78] sm:$0xff]  }
 0x308   : > { %8563 = vmatmul.mubr.bf16.gmra.mrb[20].mxu1 %v3829_v0  ;;  %v9493_v0 = vld [vmem:[#allocation12 + $0x1b0] sm:$0xff]  }
 0x309   : > { %8566 = vmatprep.mubr.bf16.mxu1 %v3838_v59  ;;  %v4399_v59 = vsel %vm4382_vm5, %v4396_v29, %v4398_v36  ;;  %v4401_v41 = vsel %vm4382_vm5, %v4398_v36, %v4400_v37  ;;  %v9511_v36 = vld [vmem:[#allocation12 + $0x1d8] sm:$0xff]  }
 0x30d   : > { %8779 = vmatmul.mubr.bf16.gmra.mrb[148].mxu0 %v6155_v47  ;;  %v4403_v47 = vsel %vm4382_vm5, %v4400_v37, %v4402_v44  ;;  %v9514_v44 = vld [vmem:[#allocation12 + $0x1e0] sm:$0xff]  }
 0x310   : > { %8567 = vmatmul.mubr.bf16.gmra.mrb[24].mxu1 %v3847_v51  ;;  %v4406_v51 = vrot.slane %v9488_v48, 2 }
 0x311   : > { %8570 = vmatprep.mubr.bf16.mxu1 %v3856_v54 }
 0x312   : > { %v4407_v10 = vsel %vm4382_vm5, %v4404_v45, %v4406_v51  ;;  %v4409_v54 = vsel %vm4382_vm5, %v4406_v51, %v4408_v52  ;;  %v9509_v51 = vld [vmem:[#allocation2 + $0x50] sm:$0xff]  }
 0x318   : > { %8571 = vmatmul.mubr.bf16.gmra.mrb[28].mxu1 %v3865_v26  ;;  %v9495_v26 = vld [vmem:[#allocation2 + $0x90] sm:$0xff]  }
 0x319   : > { %8574 = vmatprep.mubr.bf16.mxu1 %v3874_v25  ;;  %v4416_v63 = vrot.slane %v9495_v26, 2  ;;  %v4415_v25 = vsel %vm4382_vm5, %v4412_v58, %v4414_v62  ;;  %v9547_v26 = vld [vmem:[#allocation15 + $0x8] sm:$0xff]  }
 0x31b   : > { %v4417_v3 = vsel %vm4382_vm5, %v4414_v62, %v4416_v63  ;;  %v9523_v62 = vld [vmem:[#allocation12 + $0x1f8] sm:$0xff]  }
 0x320   : > { %8575 = vmatmul.mubr.bf16.gmra.mrb[32].mxu1 %v3883_v7 }
 0x321   : > { %8594 = vmatprep.mubr.bf16.mxu1 %v4385_v9 }
 0x328   : > { %8595 = vmatmul.mubr.bf16.vlgmr.msra.gmra.mrb[0].mxu1 %v4387_v15  ;;  %v9501_v15 = vld [vmem:[#allocation2 + $0x20] sm:$0xff]  }
 0x329   : > { %8631 = vmatpush3.bf16.msra.mxu1 %v10489_v4  ;;  %8598 = vmatprep.mubr.bf16.mxu1 %v4389_v17  ;;  %v4394_v4 = vrot.slane %v9479_v23, 2  ;;  %v4920_v17 = vsel %vm4382_vm5, %v4918_v14, %v4919_v13  ;;  %v9504_v23 = vld [vmem:[#allocation12 + $0x1c8] sm:$0xff]  }
 0x32a   : > { %8632 = vmatprep.subr.bf16.mxu1 %v9477_v12 }
 0x32b   : > { %v4395_v31 = vsel %vm4382_vm5, %v4392_v20, %v4394_v4  ;;  %v4397_v34 = vsel %vm4382_vm5, %v4394_v4, %v4396_v29  ;;  %v9505_v29 = vld [vmem:[#allocation2 + $0x38] sm:$0xff]  }
 0x32d   : > { %8633 = vmatpush3.bf16.msra.mxu1 %v9477_v12  ;;  %v4419_v12 = vsel %vm4382_vm5, %v4416_v63, %v4418_v11 }
 0x32e   : > { %8634 = vmatprep.subr.bf16.mxu1 %v9481_v46 }
 0x330   : > { %8599 = vmatmul.mubr.bf16.gmra.mrb[4].mxu1 %v4391_v22  ;;  %v4923_v22 = vrot.slane %v9502_v18, 2  ;;  %v10587_v18 = vld [vmem:[#allocation12 + $0x200] sm:$0xff]  }
 0x331   : > { %8602 = vmatprep.mubr.bf16.mxu1 %v4393_v24  ;;  %8635 = vmatpush3.bf16.msra.mxu1 %v9481_v46 }
 0x332   : > { %8636 = vmatprep.subr.bf16.mxu1 %v9484_v21  ;;  %v4926_v37 = vsel %vm4382_vm5, %v4923_v22, %v4925_v35 }
 0x335   : > { %8637 = vmatpush3.bf16.msra.mxu1 %v9484_v21  ;;  %v4921_v21 = vrot.slane %v9501_v15, 2  ;;  %v4939_v15 = vrot.slane %v9513_v5, 2 }
 0x336   : > { %8638 = vmatprep.subr.bf16.mxu1 %v9487_v28 }
 0x337   : > { %v4922_v24 = vsel %vm4382_vm5, %v4919_v13, %v4921_v21  ;;  %v4924_v4 = vsel %vm4382_vm5, %v4921_v21, %v4923_v22  ;;  %v9515_v22 = vld [vmem:[#allocation2 + $0x70] sm:$0xff]  }
 0x338   : > { %8603 = vmatmul.mubr.bf16.gmra.mrb[8].mxu1 %v4395_v31 }
 0x339   : > { %8606 = vmatprep.mubr.bf16.mxu1 %v4397_v34  ;;  %8639 = vmatpush3.bf16.msra.mxu1 %v9487_v28 }
 0x33a   : > { %8640 = vmatprep.subr.bf16.mxu1 %v9490_v30 }
 0x33d   : > { %8641 = vmatpush3.bf16.msra.mxu1 %v9490_v30 }
 0x33e   : > { %8642 = vmatprep.subr.bf16.mxu1 %v9493_v0 }
 0x340   : > { %8607 = vmatmul.mubr.bf16.gmra.mrb[12].mxu1 %v4399_v59 }
 0x341   : > { %8610 = vmatprep.mubr.bf16.mxu1 %v4401_v41  ;;  %8643 = vmatpush3.bf16.msra.mxu1 %v9493_v0  ;;  %v4927_v0 = vrot.slane %v9505_v29, 2  ;;  %v9507_v41 = vld [vmem:[#allocation2 + $0x48] sm:$0xff]  }
 0x342   : > { %8644 = vmatprep.subr.bf16.mxu1 %v9496_v38  ;;  %v4931_v48 = vrot.slane %v9507_v41, 2 }
 0x343   : > { %v4928_v40 = vsel %vm4382_vm5, %v4925_v35, %v4927_v0 }
 0x345   : > { %8645 = vmatpush3.bf16.msra.mxu1 %v9496_v38  ;;  %v9506_v38 = vld [vmem:[#allocation2 + $0x40] sm:$0xff]  }
 0x346   : > { %8682 = vmatprep.subr.bf16.mxu1 %v9500_v43 }
 0x348   : > { %8611 = vmatmul.mubr.bf16.gmra.mrb[16].mxu1 %v4403_v47  ;;  %v4929_v47 = vrot.slane %v9506_v38, 2  ;;  %v9518_v38 = vld [vmem:[#allocation2 + $0x80] sm:$0xff]  }
 0x349   : > { %8614 = vmatprep.mubr.bf16.mxu1 %v4405_v49  ;;  %v9517_v49 = vld [vmem:[#allocation12 + $0x1e8] sm:$0xff]  }
 0x34a   : > { %v4930_v50 = vsel %vm4382_vm5, %v4927_v0, %v4929_v47  ;;  %v4941_v0 = vrot.slane %v9515_v22, 2  ;;  %v9524_v22 = vld [vmem:[#allocation2 + $0xa0] ss:$0 sps:$4 sm:$0x33]  }
 0x350   : > { %8615 = vmatmul.mubr.bf16.gmra.mrb[20].mxu1 %v4407_v10  ;;  %v4932_v10 = vsel %vm4382_vm5, %v4929_v47, %v4931_v48 }
 0x351   : > { %8618 = vmatprep.mubr.bf16.mxu1 %v4409_v54 }
 0x358   : > { %8619 = vmatmul.mubr.bf16.gmra.mrb[24].mxu1 %v4411_v60  ;;  %v4933_v60 = vrot.slane %v9509_v51, 2 }
 0x359   : > { %8622 = vmatprep.mubr.bf16.mxu1 %v4413_v61  ;;  %v9546_v61 = vld [vmem:[#allocation15] sm:$0xff]  }
 0x35a   : > { %8786 = vmatprep.subr.bf16.mxu0 %v9546_v61  ;;  %v4934_v63 = vsel %vm4382_vm5, %v4931_v48, %v4933_v60 }
 0x35b   : > { %8787 = vmatpush3.bf16.msra.mxu0 %v9546_v61  ;;  %v9526_v61 = vld [vmem:[#allocation2 + $0x18] sm:$0xff]  }
 0x35c   : > { %8788 = vmatprep.subr.bf16.mxu0 %v9547_v26 }
 0x35f   : > { %8789 = vmatpush3.bf16.msra.mxu0 %v9547_v26 }
 0x360   : > { %v10528_v2 = vpop.f32.mrb[84].mxu0  ;;  %8623 = vmatmul.mubr.bf16.gmra.mrb[28].mxu1 %v4415_v25  ;;  %v9512_v25 = vld [vmem:[#allocation2 + $0x60] sm:$0xff]   ;;  %8790 = vmatprep.subr.bf16.mxu0 %v9548_v8 }
 0x361   : > { %v10531_v6 = vpop.f32.mrb[85].mxu0  ;;  %8626 = vmatprep.mubr.bf16.mxu1 %v4417_v3  ;;  %v4936_v3 = vsel %vm4382_vm5, %v4933_v60, %v4935_v56 }
 0x362   : > { %v10533_v7 = vpop.f32.mrb[86].mxu0 }
 0x363   : > { %v10535_v9 = vpop.f32.mrb[87].mxu0  ;;  %8791 = vmatpush3.bf16.msra.mxu0 %v9548_v8  ;;  %v5463_v8 = vshrl.u32 %v9526_v61, 16 }
 0x368   : > { %v10538_v16 = vpop.f32.mrb[88].mxu0  ;;  %8627 = vmatmul.mubr.bf16.gmra.mrb[32].mxu1 %v4419_v12  ;;  %v4937_v12 = vrot.slane %v9512_v25, 2 }
 0x369   : > { %v10541_v46 = vpop.f32.mrb[89].mxu0  ;;  %8646 = vmatprep.mubr.bf16.mxu1 %v4920_v17  ;;  %v9549_v17 = vld [vmem:[#allocation15 + $0x18] sm:$0xff]  }
 0x36a   : > { %v10543_v19 = vpop.f32.mrb[90].mxu0  ;;  %v4938_v21 = vsel %vm4382_vm5, %v4935_v56, %v4937_v12  ;;  %8792 = vmatprep.subr.bf16.mxu0 %v9549_v17  ;;  %v9522_v56 = vld [vmem:[#allocation2 + $0x98] sm:$0xff]  }
 0x36b   : > { %v10545_v20 = vpop.f32.mrb[91].mxu0  ;;  %8793 = vmatpush3.bf16.msra.mxu0 %v9549_v17  ;;  %v4951_v5 = vrot.slane %v9522_v56, 2 }
 0x370   : > { %v10548_v28 = vpop.f32.mrb[92].mxu0  ;;  %8647 = vmatmul.mubr.bf16.vlgmr.msra.gmra.mrb[0].mxu1 %v4922_v24  ;;  %v4940_v24 = vsel %vm4382_vm5, %v4937_v12, %v4939_v15  ;;  %v5466_v12 = vshll.u32 %v9526_v61, 16 }
 0x371   : > { %8683 = vmatpush3.bf16.msra.mxu1 %v9500_v43  ;;  %v10551_v30 = vpop.f32.mrb[93].mxu0  ;;  %8650 = vmatprep.mubr.bf16.mxu1 %v4924_v4  ;;  %v9550_v4 = vld [vmem:[#allocation15 + $0x20] sm:$0xff]  }
 0x372   : > { %v10553_v31 = vpop.f32.mrb[94].mxu0  ;;  %8684 = vmatprep.subr.bf16.mxu1 %v9504_v23  ;;  %8794 = vmatprep.subr.bf16.mxu0 %v9550_v4 }
 0x373   : > { %v10555_v34 = vpop.f32.mrb[95].mxu0  ;;  %8795 = vmatpush3.bf16.msra.mxu0 %v9550_v4 }
 0x375   : > { %8685 = vmatpush3.bf16.msra.mxu1 %v9504_v23 }
 0x376   : > { %8686 = vmatprep.subr.bf16.mxu1 %v9508_v33 }
 0x378   : > { %v10558_v59 = vpop.f32.mrb[96].mxu0  ;;  %8651 = vmatmul.mubr.bf16.gmra.mrb[4].mxu1 %v4926_v37  ;;  %v4942_v37 = vsel %vm4382_vm5, %v4939_v15, %v4941_v0 }
 0x379   : > { %v10561_v42 = vpop.f32.mrb[97].mxu0  ;;  %8654 = vmatprep.mubr.bf16.mxu1 %v4928_v40  ;;  %8687 = vmatpush3.bf16.msra.mxu1 %v9508_v33 }
 0x37a   : > { %v10563_v43 = vpop.f32.mrb[98].mxu0  ;;  %8688 = vmatprep.subr.bf16.mxu1 %v9511_v36 }
 0x37b   : > { %v10565_v45 = vpop.f32.mrb[99].mxu0 }
 0x37d   : > { %8689 = vmatpush3.bf16.msra.mxu1 %v9511_v36  ;;  %v4943_v36 = vrot.slane %v9516_v27, 2 }
 0x37e   : > { %8690 = vmatprep.subr.bf16.mxu1 %v9514_v44 }
 0x37f   : > { %v4944_v41 = vsel %vm4382_vm5, %v4941_v0, %v4943_v36  ;;  %v5465_v0 = vrot.slane %v5463_v8, 2 }
 0x380   : > { %v10568_v52 = vpop.f32.mrb[100].mxu0  ;;  %8655 = vmatmul.mubr.bf16.gmra.mrb[8].mxu1 %v4930_v50  ;;  %v4945_v50 = vrot.slane %v9518_v38, 2 }
 0x381   : > { %v10571_v54 = vpop.f32.mrb[101].mxu0  ;;  %8658 = vmatprep.mubr.bf16.mxu1 %v4932_v10  ;;  %8691 = vmatpush3.bf16.msra.mxu1 %v9514_v44  ;;  %v9519_v44 = vld [vmem:[#allocation2 + $0x88] sm:$0xff]  }
 0x382   : > { %v10573_v55 = vpop.f32.mrb[102].mxu0  ;;  %8692 = vmatprep.subr.bf16.mxu1 %v9517_v49  ;;  %v4947_v51 = vrot.slane %v9519_v44, 2  ;;  %v4946_v10 = vsel %vm4382_vm5, %v4943_v36, %v4945_v50  ;;  %v5468_v36 = vrot.slane %v5466_v12, 3 }
 0x383   : > { %v10575_v58 = vpop.f32.mrb[103].mxu0 }
 0x384   : > { %v4948_v60 = vsel %vm4382_vm5, %v4945_v50, %v4947_v51  ;;  %v5469_v56 = vor.u32 %v5468_v36, %v5465_v0 }
 0x385   : > { %8693 = vmatpush3.bf16.msra.mxu1 %v9517_v49 }
 0x386   : > { %8694 = vmatprep.subr.bf16.mxu1 %v9520_v57 }
 0x388   : > { %v10578_v1 = vpop.f32.mrb[104].mxu0  ;;  %8659 = vmatmul.mubr.bf16.gmra.mrb[12].mxu1 %v4934_v63  ;;  %v9525_v63 = vld [vmem:[#allocation2 + $0x10] sm:$0xfc]  }
 0x389   : > { %11042 = vst [vmem:[#allocation25_spill] sm:$0xff] %v10578_v1  ;;  %v10581_v11 = vpop.f32.mrb[105].mxu0  ;;  %8662 = vmatprep.mubr.bf16.mxu1 %v4936_v3  ;;  %8695 = vmatpush3.bf16.msra.mxu1 %v9520_v57  ;;  %v4949_v3 = vrot.slane %v9521_v53, 2  ;;  %v5455_v15 = vshrl.u32 %v9525_v63, 16  ;;  %v5458_v17 = vshll.u32 %v9525_v63, 16 }
 0x38a   : > { %11043 = vst [vmem:[#allocation26_spill] sm:$0xff] %v10581_v11  ;;  %v10583_v13 = vpop.f32.mrb[106].mxu0  ;;  %8696 = vmatprep.subr.bf16.mxu1 %v9523_v62 }
 0x38b   : > { %11044 = vst [vmem:[#allocation27_spill] sm:$0xff] %v10583_v13  ;;  %v10585_v14 = vpop.f32.mrb[107].mxu0  ;;  %v4952_v4 = vsel %vm4382_vm5, %v4949_v3, %v4951_v5  ;;  %v5457_v44 = vrot.slane %v5455_v15, 2  ;;  %v5460_v50 = vrot.slane %v5458_v17, 3 }
 0x38c   : > { %11045 = vst [vmem:[#allocation28_spill] sm:$0xff] %v10585_v14 }
 0x38d   : > { %8697 = vmatpush3.bf16.msra.mxu1 %v9523_v62 }
 0x38e   : > { %8838 = vmatprep.subr.bf16.mxu1 %v10587_v18 }
 0x390   : > { %v10591_v23 = vpop.f32.mrb[108].mxu0  ;;  %8663 = vmatmul.mubr.bf16.gmra.mrb[16].mxu1 %v4938_v21  ;;  %v4950_v21 = vsel %vm4382_vm5, %v4947_v51, %v4949_v3  ;;  %v4953_v51 = vrot.slane %v9524_v22, 2  ;;  %v5461_v3 = vor.u32 %v5460_v50, %v5457_v44  ;;  %v9530_v22 = vld [vmem:[#allocation2 + $0x38] sm:$0xff]  }
 0x391   : > { %11046 = vst [vmem:[#allocation29_spill] sm:$0xff] %v10591_v23  ;;  %v10594_v29 = vpop.f32.mrb[109].mxu0  ;;  %8666 = vmatprep.mubr.bf16.mxu1 %v4940_v24  ;;  %v9527_v24 = vld [vmem:[#allocation2 + $0x20] sm:$0xff]  }
 0x392   : > { %11047 = vst [vmem:[#allocation30_spill] sm:$0xff] %v10594_v29  ;;  %v10596_v33 = vpop.f32.mrb[110].mxu0  ;;  %v5472_v53 = vshrl.u32 %v9527_v24, 16  ;;  %v4954_v8 = vsel %vm4382_vm5, %v4951_v5, %v4953_v51  ;;  %v5470_v15 = vsel %vm5453_vm6, %v5461_v3, %v5469_v56  ;;  %v5499_v51 = vshrl.u32 %v9530_v22, 16 }
 0x393   : > { %11048 = vst [vmem:[#allocation31_spill] sm:$0xff] %v10596_v33  ;;  %v10598_v35 = vpop.f32.mrb[111].mxu0 }
 0x394   : > { %11049 = vst [vmem:[#allocation32_spill] sm:$0xff] %v10598_v35  ;;  %v5474_v12 = vrot.slane %v5472_v53, 2  ;;  %v5502_v53 = vshll.u32 %v9530_v22, 16 }
 0x398   : > { %v10601_v40 = vpop.f32.mrb[112].mxu0  ;;  %8667 = vmatmul.mubr.bf16.gmra.mrb[20].mxu1 %v4942_v37  ;;  %v9528_v37 = vld [vmem:[#allocation2 + $0x28] sm:$0xff]  }
 0x399   : > { %11050 = vst [vmem:[#allocation33_spill] sm:$0xff] %v10601_v40  ;;  %v10604_v47 = vpop.f32.mrb[113].mxu0  ;;  %8670 = vmatprep.mubr.bf16.mxu1 %v4944_v41  ;;  %v5481_v61 = vshrl.u32 %v9528_v37, 16  ;;  %v5484_v63 = vshll.u32 %v9528_v37, 16 }
 0x39a   : > { %11051 = vst [vmem:[#allocation34_spill] sm:$0xff] %v10604_v47  ;;  %v10606_v48 = vpop.f32.mrb[114].mxu0 }
 0x39b   : > { %11052 = vst [vmem:[#allocation35_spill] sm:$0xff] %v10606_v48  ;;  %v10608_v49 = vpop.f32.mrb[115].mxu0  ;;  %v5483_v17 = vrot.slane %v5481_v61, 2  ;;  %v9531_v61 = vld [vmem:[#allocation2 + $0x40] sm:$0xff]  }
 0x39c   : > { %11053 = vst [vmem:[#allocation36_spill] sm:$0xff] %v10608_v49  ;;  %v5511_v22 = vshll.u32 %v9531_v61, 16 }
 0x3a0   : > { %v10611_v57 = vpop.f32.mrb[116].mxu0  ;;  %8671 = vmatmul.mubr.bf16.gmra.mrb[24].mxu1 %v4946_v10 }
 0x3a1   : > { %11054 = vst [vmem:[#allocation37_spill] sm:$0xff] %v10611_v57  ;;  %v10614_v26 = vpop.f32.mrb[117].mxu0  ;;  %8674 = vmatprep.mubr.bf16.mxu1 %v4948_v60  ;;  %v5475_v60 = vshll.u32 %v9527_v24, 16  ;;  %v9532_v57 = vld [vmem:[#allocation2 + $0x48] sm:$0xff]  }
 0x3a2   : > { %11055 = vst [vmem:[#allocation38_spill] sm:$0xff] %v10614_v26  ;;  %v10616_v62 = vpop.f32.mrb[118].mxu0  ;;  %v5504_v26 = vrot.slane %v5502_v53, 3 }
 0x3a3   : > { %11056 = vst [vmem:[#allocation39_spill] sm:$0xff] %v10616_v62  ;;  %v10618_v25 = vpop.f32.mrb[119].mxu0  ;;  %v5501_v62 = vrot.slane %v5499_v51, 2  ;;  %v9557_v51 = vld [vmem:[#allocation12 + $0x210] sm:$0xff]  }
 0x3a4   : > { %11057 = vst [vmem:[#allocation40_spill] sm:$0xff] %v10618_v25  ;;  %v5486_v25 = vrot.slane %v5484_v63, 3 }
 0x3a6   : > { %v5487_v50 = vor.u32 %v5486_v25, %v5483_v17  ;;  %v5508_v17 = vshrl.u32 %v9531_v61, 16 }
 0x3a8   : > { %8675 = vmatmul.mubr.bf16.gmra.mrb[28].mxu1 %v4950_v21  ;;  %v10621_v27 = vpop.f32.mrb[120].mxu0  ;;  %v5477_v21 = vrot.slane %v5475_v60, 3  ;;  %v5510_v53 = vrot.slane %v5508_v17, 2 }
 0x3a9   : > { %8678 = vmatprep.mubr.bf16.mxu1 %v4952_v4  ;;  %v10624_v38 = vpop.f32.mrb[121].mxu0  ;;  %v9529_v4 = vld [vmem:[#allocation2 + $0x30] sm:$0xff]  }
 0x3aa   : > { %v10626_v41 = vpop.f32.mrb[122].mxu0  ;;  %v5478_v37 = vor.u32 %v5477_v21, %v5474_v12  ;;  %v5490_v5 = vshrl.u32 %v9529_v4, 16  ;;  %v5493_v44 = vshll.u32 %v9529_v4, 16  ;;  %v9556_v21 = vld [vmem:[#allocation12 + $0x208] sm:$0xff]  }
 0x3ab   : > { %v10628_v10 = vpop.f32.mrb[123].mxu0 }
 0x3ac   : > { %v5479_v60 = vsel %vm5453_vm6, %v5469_v56, %v5478_v37  ;;  %v5495_v3 = vrot.slane %v5493_v44, 3  ;;  %v5517_v44 = vshrl.u32 %v9532_v57, 16 }
 0x3ae   : > { %v5519_v47 = vrot.slane %v5517_v44, 2 }
 0x3b0   : > { %8679 = vmatmul.mubr.bf16.gmra.mrb[32].mxu1 %v4954_v8  ;;  %v10631_v39 = vpop.f32.mrb[124].mxu0  ;;  %v5492_v8 = vrot.slane %v5490_v5, 2  ;;  %v5505_v5 = vor.u32 %v5504_v26, %v5501_v62  ;;  %v9558_v62 = vld [vmem:[#allocation12 + $0x218] sm:$0xff]  }
 0x3b1   : > { %8698 = vmatprep.mubr.bf16.mxu1 %v5470_v15  ;;  %v10634_v24 = vpop.f32.mrb[125].mxu0  ;;  %v5488_v15 = vsel %vm5453_vm6, %v5478_v37, %v5487_v50  ;;  %v5520_v37 = vshll.u32 %v9532_v57, 16 }
 0x3b2   : > { %v10636_v0 = vpop.f32.mrb[126].mxu0  ;;  %v5496_v4 = vor.u32 %v5495_v3, %v5492_v8  ;;  %v9534_v3 = vld [vmem:[#allocation2 + $0x58] sm:$0xff]  }
 0x3b3   : > { %v10638_v36 = vpop.f32.mrb[127].mxu0  ;;  %v5522_v8 = vrot.slane %v5520_v37, 3  ;;  %v5538_v40 = vshll.u32 %v9534_v3, 16 }
 0x3b4   : > { %v5506_v48 = vsel %vm5453_vm6, %v5496_v4, %v5505_v5 }
 0x3b8   : > { %8699 = vmatmul.mubr.bf16.vlgmr.msra.gmra.mrb[0].mxu1 %v5479_v60  ;;  %v10641_v63 = vpop.f32.mrb[128].mxu0  ;;  %v5513_v60 = vrot.slane %v5511_v22, 3  ;;  %v5523_v22 = vor.u32 %v5522_v8, %v5519_v47  ;;  %v9560_v8 = vld [vmem:[#allocation12 + $0x228] sm:$0xff]  }
 0x3b9   : > { %8846 = vmatpush3.bf16.msra.mxu1 %v10587_v18  ;;  %8702 = vmatprep.mubr.bf16.mxu1 %v5488_v15  ;;  %v10645_v12 = vpop.f32.mrb[129].mxu0  ;;  %v5497_v18 = vsel %vm5453_vm6, %v5487_v50, %v5496_v4  ;;  %v9533_v15 = vld [vmem:[#allocation2 + $0x50] sm:$0xff]  }
 0x3ba   : > { %v10647_v25 = vpop.f32.mrb[130].mxu0  ;;  %8839 = vmatprep.subr.bf16.mxu1 %v9556_v21  ;;  %v5514_v61 = vor.u32 %v5513_v60, %v5510_v53  ;;  %v5529_v17 = vshll.u32 %v9533_v15, 16  ;;  %v9559_v4 = vld [vmem:[#allocation12 + $0x220] sm:$0xff]   ;;  %v5540_v53 = vrot.slane %v5538_v40, 3  ;;  %v9536_v60 = vld [vmem:[#allocation2 + $0x68] sm:$0xff]  }
 0x3bb   : > { %v10649_v56 = vpop.f32.mrb[131].mxu0  ;;  %v5556_v23 = vshll.u32 %v9536_v60, 16 }
 0x3bc   : > { %v5531_v37 = vrot.slane %v5529_v17, 3  ;;  %v5524_v33 = vsel %vm5453_vm6, %v5514_v61, %v5523_v22 }
 0x3bd   : > { %8847 = vmatpush3.bf16.msra.mxu1 %v9556_v21  ;;  %v5526_v21 = vshrl.u32 %v9533_v15, 16 }
 0x3be   : > { %8840 = vmatprep.subr.bf16.mxu1 %v9557_v51 }
 0x3bf   : > { %v5528_v44 = vrot.slane %v5526_v21, 2 }
 0x3c0   : > { %8703 = vmatmul.mubr.bf16.gmra.mrb[4].mxu1 %v5497_v18  ;;  %v10652_v49 = vpop.f32.mrb[132].mxu0  ;;  %v5535_v18 = vshrl.u32 %v9534_v3, 16 }
 0x3c1   : > { %8706 = vmatprep.mubr.bf16.mxu1 %v5506_v48  ;;  %v10655_v26 = vpop.f32.mrb[133].mxu0  ;;  %8848 = vmatpush3.bf16.msra.mxu1 %v9557_v51  ;;  %v5515_v48 = vsel %vm5453_vm6, %v5505_v5, %v5514_v61  ;;  %v9535_v51 = vld [vmem:[#allocation2 + $0x60] sm:$0xff]   ;;  %v5532_v3 = vor.u32 %v5531_v37, %v5528_v44  ;;  %v5558_v44 = vrot.slane %v5556_v23, 3  ;;  %v9538_v37 = vld [vmem:[#allocation2 + $0x78] sm:$0xff]  }
 0x3c2   : > { %v10657_v57 = vpop.f32.mrb[134].mxu0  ;;  %8841 = vmatprep.subr.bf16.mxu1 %v9558_v62  ;;  %v5537_v29 = vrot.slane %v5535_v18, 2  ;;  %v5547_v21 = vshll.u32 %v9535_v51, 16  ;;  %v9561_v61 = vld [vmem:[#allocation12 + $0x230] sm:$0xff]  }
 0x3c3   : > { %v10659_v50 = vpop.f32.mrb[135].mxu0 }
 0x3c4   : > { %v5541_v17 = vor.u32 %v5540_v53, %v5537_v29  ;;  %v5549_v18 = vrot.slane %v5547_v21, 3  ;;  %v9562_v53 = vld [vmem:[#allocation12 + $0x238] sm:$0xff]  }
 0x3c5   : > { %8849 = vmatpush3.bf16.msra.mxu1 %v9558_v62  ;;  %v5544_v62 = vshrl.u32 %v9535_v51, 16 }
 0x3c6   : > { %8842 = vmatprep.subr.bf16.mxu1 %v9559_v4  ;;  %v5542_v13 = vsel %vm5453_vm6, %v5532_v3, %v5541_v17 }
 0x3c7   : > { %v5546_v40 = vrot.slane %v5544_v62, 2 }
 0x3c8   : > { %8707 = vmatmul.mubr.bf16.gmra.mrb[8].mxu1 %v5515_v48  ;;  %v10662_v35 = vpop.f32.mrb[136].mxu0  ;;  %v5553_v48 = vshrl.u32 %v9536_v60, 16 }
 0x3c9   : > { %8710 = vmatprep.mubr.bf16.mxu1 %v5524_v33  ;;  %v10665_v47 = vpop.f32.mrb[137].mxu0  ;;  %8850 = vmatpush3.bf16.msra.mxu1 %v9559_v4  ;;  %v5533_v33 = vsel %vm5453_vm6, %v5523_v22, %v5532_v3  ;;  %v9537_v4 = vld [vmem:[#allocation2 + $0x70] sm:$0xff]   ;;  %v5550_v60 = vor.u32 %v5549_v18, %v5546_v40 }
 0x3ca   : > { %v10667_v15 = vpop.f32.mrb[138].mxu0  ;;  %8843 = vmatprep.subr.bf16.mxu1 %v9560_v8  ;;  %v5555_v11 = vrot.slane %v5553_v48, 2  ;;  %v5565_v62 = vshll.u32 %v9537_v4, 16  ;;  %v9539_v48 = vld [vmem:[#allocation2 + $0x80] sm:$0xff]  }
 0x3cb   : > { %v10669_v5 = vpop.f32.mrb[139].mxu0  ;;  %v5551_v23 = vsel %vm5453_vm6, %v5541_v17, %v5550_v60  ;;  %v5580_v17 = vshrl.u32 %v9539_v48, 16 }
 0x3cc   : > { %v5559_v21 = vor.u32 %v5558_v44, %v5555_v11  ;;  %v5583_v44 = vshll.u32 %v9539_v48, 16 }
 0x3cd   : > { %8851 = vmatpush3.bf16.msra.mxu1 %v9560_v8  ;;  %v5562_v8 = vshrl.u32 %v9537_v4, 16 }
 0x3ce   : > { %8844 = vmatprep.subr.bf16.mxu1 %v9561_v61 }
 0x3cf   : > { %v5564_v3 = vrot.slane %v5562_v8, 2 }
 0x3d0   : > { %8711 = vmatmul.mubr.bf16.gmra.mrb[12].mxu1 %v5533_v33  ;;  %v10672_v14 = vpop.f32.mrb[140].mxu0  ;;  %v5571_v33 = vshrl.u32 %v9538_v37, 16 }
 0x3d1   : > { %11058 = vst [vmem:[#allocation41_spill] sm:$0xff] %v10672_v14  ;;  %8714 = vmatprep.mubr.bf16.mxu1 %v5542_v13  ;;  %v10675_v29 = vpop.f32.mrb[141].mxu0  ;;  %8852 = vmatpush3.bf16.msra.mxu1 %v9561_v61  ;;  %v5574_v14 = vshll.u32 %v9538_v37, 16  ;;  %v5567_v13 = vrot.slane %v5565_v62, 3 }
 0x3d2   : > { %11059 = vst [vmem:[#allocation42_spill] sm:$0xff] %v10675_v29  ;;  %v10677_v51 = vpop.f32.mrb[142].mxu0  ;;  %8845 = vmatprep.subr.bf16.mxu1 %v9562_v53  ;;  %v5573_v29 = vrot.slane %v5571_v33, 2  ;;  %v9541_v33 = vld [vmem:[#allocation2 + $0x90] sm:$0xff]  }
 0x3d3   : > { %11060 = vst [vmem:[#allocation43_spill] sm:$0xff] %v10677_v51  ;;  %v10679_v22 = vpop.f32.mrb[143].mxu0  ;;  %v5560_v51 = vsel %vm5453_vm6, %v5550_v60, %v5559_v21  ;;  %v5576_v1 = vrot.slane %v5574_v14, 3  ;;  %v5568_v4 = vor.u32 %v5567_v13, %v5564_v3  ;;  %v5585_v60 = vrot.slane %v5583_v44, 3 }
 0x3d4   : > { %11061 = vst [vmem:[#allocation44_spill] sm:$0xff] %v10679_v22  ;;  %v9540_v22 = vld [vmem:[#allocation2 + $0x88] sm:$0xff]  }
 0x3d5   : > { %8853 = vmatpush3.bf16.msra.mxu1 %v9562_v53  ;;  %v5577_v37 = vor.u32 %v5576_v1, %v5573_v29  ;;  %v5589_v53 = vshrl.u32 %v9540_v22, 16  ;;  %v5592_v8 = vshll.u32 %v9540_v22, 16  ;;  %v5569_v62 = vsel %vm5453_vm6, %v5559_v21, %v5568_v4 }
 0x3d6   : > { %v5598_v22 = vshrl.u32 %v9541_v33, 16  ;;  %v5601_v21 = vshll.u32 %v9541_v33, 16 }
 0x3d8   : > { %8715 = vmatmul.mubr.bf16.gmra.mrb[16].mxu1 %v5551_v23  ;;  %v10682_v61 = vpop.f32.mrb[144].mxu0  ;;  %v5582_v23 = vrot.slane %v5580_v17, 2 }
 0x3d9   : > { %11062 = vst [vmem:[#allocation45_spill] sm:$0xff] %v10682_v61  ;;  %8718 = vmatprep.mubr.bf16.mxu1 %v5560_v51  ;;  %v10685_v40 = vpop.f32.mrb[145].mxu0  ;;  %v5578_v51 = vsel %vm5453_vm6, %v5568_v4, %v5577_v37  ;;  %v9542_v61 = vld [vmem:[#allocation2 + $0x98] sm:$0xff]   ;;  %v5603_v4 = vrot.slane %v5601_v21, 3  ;;  %v11070_v21 = vrot.slane %v10497_v32, 3 }
 0x3da   : > { %11063 = vst [vmem:[#allocation46_spill] sm:$0xff] %v10685_v40  ;;  %v10687_v11 = vpop.f32.mrb[146].mxu0  ;;  %v5591_v40 = vrot.slane %v5589_v53, 2  ;;  %v5586_v29 = vor.u32 %v5585_v60, %v5582_v23  ;;  %v5607_v17 = vshrl.u32 %v9542_v61, 16  ;;  %v5610_v44 = vshll.u32 %v9542_v61, 16 }
 0x3db   : > { %11064 = vst [vmem:[#allocation47_spill] sm:$0xff] %v10687_v11  ;;  %v10689_v18 = vpop.f32.mrb[147].mxu0  ;;  %v5594_v11 = vrot.slane %v5592_v8, 3  ;;  %v9543_v53 = vld [vmem:[#allocation2 + $0xa0] ss:$0 sps:$4 sm:$0x77]  }
 0x3dc   : > { %11065 = vst [vmem:[#allocation48_spill] sm:$0xff] %v10689_v18  ;;  %v5616_v18 = vshrl.u32 %v9543_v53, 16 }
 0x3dd   : > { %v5595_v48 = vor.u32 %v5594_v11, %v5591_v40 }
 0x3de   : > { %v5618_v40 = vrot.slane %v5616_v18, 2 }
 0x3df   : > { %v5596_v8 = vsel %vm5453_vm6, %v5586_v29, %v5595_v48 }
 0x3e0   : > { %8719 = vmatmul.mubr.bf16.gmra.mrb[20].mxu1 %v5569_v62  ;;  %v10692_v14 = vpop.f32.mrb[148].mxu0  ;;  %v5587_v62 = vsel %vm5453_vm6, %v5577_v37, %v5586_v29  ;;  %v9544_v37 = vld [vmem:[#allocation2 + $0x98] sm:$0xff]  }
 0x3e1   : > { %11066 = vst [vmem:[#allocation49_spill] sm:$0xff] %v10692_v14  ;;  %8722 = vmatprep.mubr.bf16.mxu1 %v5578_v51  ;;  %v10695_v3 = vpop.f32.mrb[149].mxu0  ;;  %v5600_v14 = vrot.slane %v5598_v22, 2  ;;  %v5609_v51 = vrot.slane %v5607_v17, 2  ;;  %v6156_v22 = vrot.slane %v9544_v37, 3 }
 0x3e2   : > { %11067 = vst [vmem:[#allocation50_spill] sm:$0xff] %v10695_v3  ;;  %v10697_v13 = vpop.f32.mrb[150].mxu0  ;;  %v5612_v3 = vrot.slane %v5610_v44, 3 }
 0x3e3   : > { %11068 = vst [vmem:[#allocation51_spill] sm:$0xff] %v10697_v13  ;;  %v10699_v1 = vpop.f32.mrb[151].mxu0  ;;  %v5604_v13 = vor.u32 %v5603_v4, %v5600_v14  ;;  %v6157_v14 = vsel %vm6122_vm3, %v11070_v21, %v6156_v22  ;;  %v10711_v4 = vld [vmem:[#allocation13] ss:$0 sm:$0xff] }
 0x3e4   : > { %11069 = vst [vmem:[#allocation52_spill] sm:$0xff] %v10699_v1  ;;  %v5619_v1 = vshll.u32 %v9543_v53, 16  ;;  %v5613_v23 = vor.u32 %v5612_v3, %v5609_v51  ;;  %v9545_v3 = vld [vmem:[#allocation2 + $0xa0] ss:$0 sps:$4 sm:$0x77]  }
 0x3e5   : > { %v5605_v60 = vsel %vm5453_vm6, %v5595_v48, %v5604_v13  ;;  %v6158_v17 = vrot.slane %v9545_v3, 3  ;;  %v9553_v48 = vld [vmem:[#allocation15 + $0x38] sm:$0xff]  }
 0x3e6   : > { %v5621_v11 = vrot.slane %v5619_v1, 3  ;;  %v5614_v61 = vsel %vm5453_vm6, %v5604_v13, %v5613_v23  ;;  %v9551_v1 = vld [vmem:[#allocation15 + $0x28] sm:$0xff]   ;;  %v9552_v13 = vld [vmem:[#allocation15 + $0x30] sm:$0xff]  }
 0x3e7   : > { %v6159_v18 = vsel %vm6122_vm3, %v6156_v22, %v6158_v17  ;;  %8796 = vmatprep.subr.bf16.mxu0 %v9551_v1 }
 0x3e8   : > { %8723 = vmatmul.mubr.bf16.gmra.mrb[24].mxu1 %v5587_v62  ;;  %v5622_v33 = vor.u32 %v5621_v11, %v5618_v40  ;;  %8797 = vmatpush3.bf16.msra.mxu0 %v9551_v1 }
 0x3e9   : > { %8726 = vmatprep.mubr.bf16.mxu1 %v5596_v8  ;;  %8798 = vmatprep.subr.bf16.mxu0 %v9552_v13 }
 0x3ea   : > { %v5623_v29 = vsel %vm5453_vm6, %v5613_v23, %v5622_v33 }
 0x3ec   : > { %8799 = vmatpush3.bf16.msra.mxu0 %v9552_v13 }
 0x3ed   : > { %8800 = vmatprep.subr.bf16.mxu0 %v9553_v48 }
 0x3f0   : > { %8727 = vmatmul.mubr.bf16.gmra.mrb[28].mxu1 %v5605_v60  ;;  %8801 = vmatpush3.bf16.msra.mxu0 %v9553_v48 }
 0x3f1   : > { %8730 = vmatprep.mubr.bf16.mxu1 %v5614_v61 }
 0x3f8   : > { %8731 = vmatmul.mubr.bf16.gmra.mrb[32].mxu1 %v5623_v29 }
 0x3f9   : > { %8782 = vmatprep.mubr.bf16.mxu1 %v6157_v14 }
 0x404   : > { %8783 = vmatmul.mubr.bf16.vlgmr.msra.gmra.mrb[32].mxu1 %v6159_v18 }
 0x48b   : > { %v8700_v44 = vpop.f32.mrb[0].mxu1 }
 0x48c   : > { %v8854_v32 = vadd.f32 %v8700_v44, %v10528_v2  ;;  %v5724_v62 = vpop.f32.mrb[1].mxu1 }
 0x48d   : > { %v8856_v53 = vadd.f32 %v5724_v62, %v10531_v6  ;;  %v8701_v8 = vpop.f32.mrb[2].mxu1 }
 0x48e   : > { %v8855_v51 = vadd.f32 %v8854_v32, %v10621_v27  ;;  %v8858_v23 = vadd.f32 %v8701_v8, %v10533_v7  ;;  %v5727_v60 = vpop.f32.mrb[3].mxu1 }
 0x48f   : > { %v8857_v40 = vadd.f32 %v8856_v53, %v10624_v38  ;;  %v8860_v11 = vadd.f32 %v5727_v60, %v10535_v9 }
 0x490   : > { %v6520_v61 = vadd.f32 %v8855_v51, %v10711_v4  ;;  %v8859_v37 = vadd.f32 %v8858_v23, %v10626_v41 }
 0x491   : > { %v6518_v2 = vadd.f32 %v8857_v40, %v10711_v4  ;;  %v8861_v33 = vadd.f32 %v8860_v11, %v10628_v10 }
 0x492   : > { %v6521_v6 = vadd.f32 %v8859_v37, %v10711_v4  ;;  %v6556_v29 = vmax.f32 %v6520_v61, 0.0 }
 0x493   : > { %v6519_v22 = vadd.f32 %v8861_v33, %v10711_v4  ;;  %v8704_v27 = vpop.f32.mrb[4].mxu1  ;;  %v6554_v14 = vmax.f32 %v6518_v2, 0.0 }
 0x494   : > { %v6557_v7 = vmax.f32 %v6521_v6, 0.0  ;;  %v8862_v21 = vadd.f32 %v8704_v27, %v10538_v16  ;;  %v5740_v38 = vpop.f32.mrb[5].mxu1 }
 0x495   : > { %v6555_v9 = vmax.f32 %v6519_v22, 0.0  ;;  %v8864_v3 = vadd.f32 %v5740_v38, %v10541_v46  ;;  %v8705_v17 = vpop.f32.mrb[6].mxu1 }
 0x496   : > { %v6591_v41 = vpack.c.bf16 %v6557_v7, %v6556_v29  ;;  %v8863_v18 = vadd.f32 %v8862_v21, %v10631_v39  ;;  %v8866_v10 = vadd.f32 %v8705_v17, %v10543_v19  ;;  %v5743_v1 = vpop.f32.mrb[7].mxu1 }
 0x497   : > { %v8865_v13 = vadd.f32 %v8864_v3, %v10634_v24  ;;  %v8868_v48 = vadd.f32 %v5743_v1, %v10545_v20  ;;  %v6590_v44 = vpack.c.bf16 %v6555_v9, %v6554_v14 }
 0x498   : > { %v6524_v32 = vadd.f32 %v8863_v18, %v10711_v4  ;;  %v8867_v16 = vadd.f32 %v8866_v10, %v10636_v0 }
 0x499   : > { %v6522_v62 = vadd.f32 %v8865_v13, %v10711_v4  ;;  %v8869_v46 = vadd.f32 %v8868_v48, %v10638_v36  ;;  %8802 = vmatprep.mubr.bf16.mxu0 %v6590_v44 }
 0x49a   : > { %v6525_v53 = vadd.f32 %v8867_v16, %v10711_v4  ;;  %8803 = vmatmul.mubr.bf16.vlgmr.msra.gmra.mrb[152].mxu0 %v6591_v41  ;;  %v6560_v8 = vmax.f32 %v6524_v32, 0.0 }
 0x49b   : > { %v6523_v39 = vadd.f32 %v8869_v46, %v10711_v4  ;;  %v8708_v19 = vpop.f32.mrb[8].mxu1  ;;  %v6558_v23 = vmax.f32 %v6522_v62, 0.0 }
 0x49c   : > { %v6561_v24 = vmax.f32 %v6525_v53, 0.0  ;;  %v8870_v20 = vadd.f32 %v8708_v19, %v10548_v28  ;;  %v5756_v51 = vpop.f32.mrb[9].mxu1 }
 0x49d   : > { %v6559_v60 = vmax.f32 %v6523_v39, 0.0  ;;  %v8872_v0 = vadd.f32 %v5756_v51, %v10551_v30  ;;  %v8709_v40 = vpop.f32.mrb[10].mxu1 }
 0x49e   : > { %v8871_v11 = vadd.f32 %v8870_v20, %v10641_v63  ;;  %v8874_v36 = vadd.f32 %v8709_v40, %v10553_v31  ;;  %v5759_v61 = vpop.f32.mrb[11].mxu1  ;;  %v6593_v37 = vpack.c.bf16 %v6561_v24, %v6560_v8 }
 0x49f   : > { %v8873_v2 = vadd.f32 %v8872_v0, %v10645_v12  ;;  %v8876_v33 = vadd.f32 %v5759_v61, %v10555_v34  ;;  %v6592_v6 = vpack.c.bf16 %v6559_v60, %v6558_v23 }
 0x4a0   : > { %v6528_v22 = vadd.f32 %v8871_v11, %v10711_v4  ;;  %v8875_v28 = vadd.f32 %v8874_v36, %v10647_v25  ;;  %v11071_v11 = vld [vmem:[#allocation25_spill] sm:$0xff] }
 0x4a1   : > { %v6526_v27 = vadd.f32 %v8873_v2, %v10711_v4  ;;  %v8877_v30 = vadd.f32 %v8876_v33, %v10649_v56  ;;  %8806 = vmatprep.mubr.bf16.mxu0 %v6592_v6  ;;  %v11072_v2 = vld [vmem:[#allocation26_spill] sm:$0xff]  ;;  %v11073_v6 = vld [vmem:[#allocation41_spill] sm:$0xff] }
 0x4a2   : > { %v6529_v63 = vadd.f32 %v8875_v28, %v10711_v4  ;;  %8807 = vmatmul.mubr.bf16.gmra.mrb[156].mxu0 %v6593_v37  ;;  %v6564_v7 = vmax.f32 %v6528_v22, 0.0 }
 0x4a3   : > { %v6527_v31 = vadd.f32 %v8877_v30, %v10711_v4  ;;  %v8712_v29 = vpop.f32.mrb[12].mxu1  ;;  %v6562_v38 = vmax.f32 %v6526_v27, 0.0 }
 0x4a4   : > { %v6565_v12 = vmax.f32 %v6529_v63, 0.0  ;;  %v8878_v34 = vadd.f32 %v8712_v29, %v10558_v59  ;;  %v5772_v21 = vpop.f32.mrb[13].mxu1  ;;  %v11075_v63 = vld [vmem:[#allocation42_spill] sm:$0xff]  ;;  %v11076_v29 = vld [vmem:[#allocation28_spill] sm:$0xff] }
 0x4a5   : > { %v6563_v14 = vmax.f32 %v6527_v31, 0.0  ;;  %v8880_v25 = vadd.f32 %v5772_v21, %v10561_v42  ;;  %v8713_v9 = vpop.f32.mrb[14].mxu1  ;;  %v11077_v21 = vld [vmem:[#allocation43_spill] sm:$0xff] }
 0x4a6   : > { %v8879_v3 = vadd.f32 %v8878_v34, %v10652_v49  ;;  %v8882_v56 = vadd.f32 %v8713_v9, %v10563_v43  ;;  %v5775_v17 = vpop.f32.mrb[15].mxu1  ;;  %v6595_v41 = vpack.c.bf16 %v6565_v12, %v6564_v7 }
 0x4a7   : > { %v8881_v18 = vadd.f32 %v8880_v25, %v10655_v26  ;;  %v8884_v10 = vadd.f32 %v5775_v17, %v10565_v45  ;;  %v6594_v1 = vpack.c.bf16 %v6563_v14, %v6562_v38  ;;  %v11078_v25 = vld [vmem:[#allocation44_spill] sm:$0xff] }
 0x4a8   : > { %v6532_v13 = vadd.f32 %v8879_v3, %v10711_v4  ;;  %v8883_v59 = vadd.f32 %v8882_v56, %v10657_v57 }
 0x4a9   : > { %v6530_v48 = vadd.f32 %v8881_v18, %v10711_v4  ;;  %v8885_v42 = vadd.f32 %v8884_v10, %v10659_v50  ;;  %8810 = vmatprep.mubr.bf16.mxu0 %v6594_v1  ;;  %v11079_v10 = vld [vmem:[#allocation29_spill] sm:$0xff] }
 0x4aa   : > { %v6533_v49 = vadd.f32 %v8883_v59, %v10711_v4  ;;  %8811 = vmatmul.mubr.bf16.gmra.mrb[160].mxu0 %v6595_v41  ;;  %v6568_v32 = vmax.f32 %v6532_v13, 0.0 }
 0x4ab   : > { %v6531_v43 = vadd.f32 %v8885_v42, %v10711_v4  ;;  %v8716_v44 = vpop.f32.mrb[16].mxu1  ;;  %v6566_v62 = vmax.f32 %v6530_v48, 0.0  ;;  %v11080_v42 = vld [vmem:[#allocation30_spill] sm:$0xff] }
 0x4ac   : > { %v6569_v26 = vmax.f32 %v6533_v49, 0.0  ;;  %v8886_v45 = vadd.f32 %v8716_v44, %v10568_v52  ;;  %v5788_v16 = vpop.f32.mrb[17].mxu1  ;;  %v11081_v44 = vld [vmem:[#allocation45_spill] sm:$0xff] }
 0x4ad   : > { %v6567_v46 = vmax.f32 %v6531_v43, 0.0  ;;  %v8888_v57 = vadd.f32 %v5788_v16, %v10571_v54  ;;  %v8717_v53 = vpop.f32.mrb[18].mxu1 }
 0x4ae   : > { %v8887_v39 = vadd.f32 %v8886_v45, %v10662_v35  ;;  %v8890_v50 = vadd.f32 %v8717_v53, %v10573_v55  ;;  %v5791_v19 = vpop.f32.mrb[19].mxu1  ;;  %v6597_v8 = vpack.c.bf16 %v6569_v26, %v6568_v32  ;;  %v11082_v26 = vld [vmem:[#allocation31_spill] sm:$0xff]  ;;  %v11084_v53 = vld [vmem:[#allocation32_spill] sm:$0xff] }
 0x4af   : > { %v8889_v24 = vadd.f32 %v8888_v57, %v10665_v47  ;;  %v8892_v20 = vadd.f32 %v5791_v19, %v10575_v58  ;;  %v6596_v51 = vpack.c.bf16 %v6567_v46, %v6566_v62  ;;  %v11083_v46 = vld [vmem:[#allocation46_spill] sm:$0xff] }
 0x4b0   : > { %v6536_v23 = vadd.f32 %v8887_v39, %v10711_v4  ;;  %v8891_v52 = vadd.f32 %v8890_v50, %v10667_v15 }
 0x4b1   : > { %v6534_v60 = vadd.f32 %v8889_v24, %v10711_v4  ;;  %v8893_v54 = vadd.f32 %v8892_v20, %v10669_v5  ;;  %8814 = vmatprep.mubr.bf16.mxu0 %v6596_v51  ;;  %v11074_v5 = vld [vmem:[#allocation27_spill] sm:$0xff]  ;;  %v11086_v51 = vld [vmem:[#allocation48_spill] sm:$0xff] }
 0x4b2   : > { %v6537_v35 = vadd.f32 %v8891_v52, %v10711_v4  ;;  %8815 = vmatmul.mubr.bf16.gmra.mrb[164].mxu0 %v6597_v8  ;;  %v6572_v40 = vmax.f32 %v6536_v23, 0.0  ;;  %v11085_v8 = vld [vmem:[#allocation47_spill] sm:$0xff] }
 0x4b3   : > { %v6535_v55 = vadd.f32 %v8893_v54, %v10711_v4  ;;  %v8720_v0 = vpop.f32.mrb[20].mxu1  ;;  %v6570_v61 = vmax.f32 %v6534_v60, 0.0 }
 0x4b4   : > { %v6573_v47 = vmax.f32 %v6537_v35, 0.0  ;;  %v8894_v58 = vadd.f32 %v8720_v0, %v11071_v11  ;;  %v5804_v36 = vpop.f32.mrb[21].mxu1  ;;  %v11087_v0 = vld [vmem:[#allocation33_spill] sm:$0xff] }
 0x4b5   : > { %v6571_v37 = vmax.f32 %v6535_v55, 0.0  ;;  %v8896_v15 = vadd.f32 %v5804_v36, %v11072_v2  ;;  %v8721_v33 = vpop.f32.mrb[22].mxu1  ;;  %v11088_v36 = vld [vmem:[#allocation34_spill] sm:$0xff]  ;;  %v11089_v2 = vld [vmem:[#allocation49_spill] sm:$0xff] }
 0x4b6   : > { %v8895_v22 = vadd.f32 %v8894_v58, %v11073_v6  ;;  %v8898_v28 = vadd.f32 %v8721_v33, %v11074_v5  ;;  %v5807_v27 = vpop.f32.mrb[23].mxu1  ;;  %v6599_v30 = vpack.c.bf16 %v6573_v47, %v6572_v40  ;;  %v11090_v33 = vld [vmem:[#allocation35_spill] sm:$0xff] }
 0x4b7   : > { %v8897_v31 = vadd.f32 %v8896_v15, %v11075_v63  ;;  %v8900_v7 = vadd.f32 %v5807_v27, %v11076_v29  ;;  %v6598_v12 = vpack.c.bf16 %v6571_v37, %v6570_v61 }
 0x4b8   : > { %v6540_v34 = vadd.f32 %v8895_v22, %v10711_v4  ;;  %v8899_v38 = vadd.f32 %v8898_v28, %v11077_v21  ;;  %v11091_v28 = vld [vmem:[#allocation50_spill] sm:$0xff]  ;;  %v11094_v21 = vld [vmem:[#allocation52_spill] sm:$0xff] }
 0x4b9   : > { %v6538_v14 = vadd.f32 %v8897_v31, %v10711_v4  ;;  %v8901_v9 = vadd.f32 %v8900_v7, %v11078_v25  ;;  %8818 = vmatprep.mubr.bf16.mxu0 %v6598_v12  ;;  %v11093_v7 = vld [vmem:[#allocation51_spill] sm:$0xff] }
 0x4ba   : > { %v6541_v3 = vadd.f32 %v8899_v38, %v10711_v4  ;;  %8819 = vmatmul.mubr.bf16.gmra.mrb[168].mxu0 %v6599_v30  ;;  %v6576_v41 = vmax.f32 %v6540_v34, 0.0  ;;  %v11092_v30 = vld [vmem:[#allocation36_spill] sm:$0xff] }
 0x4bb   : > { %v6539_v56 = vadd.f32 %v8901_v9, %v10711_v4  ;;  %v8724_v17 = vpop.f32.mrb[24].mxu1  ;;  %v6574_v59 = vmax.f32 %v6538_v14, 0.0 }
 0x4bc   : > { %v6577_v18 = vmax.f32 %v6541_v3, 0.0  ;;  %v8902_v1 = vadd.f32 %v8724_v17, %v11079_v10  ;;  %v5820_v13 = vpop.f32.mrb[25].mxu1 }
 0x4bd   : > { %v6575_v48 = vmax.f32 %v6539_v56, 0.0  ;;  %v8904_v49 = vadd.f32 %v5820_v13, %v11080_v42  ;;  %v8725_v43 = vpop.f32.mrb[26].mxu1 }
 0x4be   : > { %v8903_v32 = vadd.f32 %v8902_v1, %v11081_v44  ;;  %v8906_v45 = vadd.f32 %v8725_v43, %v11082_v26  ;;  %v5823_v16 = vpop.f32.mrb[27].mxu1  ;;  %v6601_v62 = vpack.c.bf16 %v6577_v18, %v6576_v41  ;;  %v11095_v1 = vld [vmem:[#allocation37_spill] sm:$0xff]  ;;  %v11097_v44 = vld [vmem:[#allocation39_spill] sm:$0xff] }
 0x4bf   : > { %v8905_v57 = vadd.f32 %v8904_v49, %v11083_v46  ;;  %v8908_v39 = vadd.f32 %v5823_v16, %v11084_v53  ;;  %v6600_v50 = vpack.c.bf16 %v6575_v48, %v6574_v59  ;;  %v11096_v48 = vld [vmem:[#allocation38_spill] sm:$0xff]  ;;  %v11098_v16 = vld [vmem:[#allocation40_spill] sm:$0xff] }
 0x4c0   : > { %v6544_v19 = vadd.f32 %v8903_v32, %v10711_v4  ;;  %v8907_v24 = vadd.f32 %v8906_v45, %v11085_v8 }
 0x4c1   : > { %v6542_v20 = vadd.f32 %v8905_v57, %v10711_v4  ;;  %v8909_v23 = vadd.f32 %v8908_v39, %v11086_v51  ;;  %8822 = vmatprep.mubr.bf16.mxu0 %v6600_v50  ;;  %v6624_v51 = vld [vmem:[%s10228_s10 + $0x8] sm:$0xe] }
 0x4c2   : > { %v6545_v52 = vadd.f32 %v8907_v24, %v10711_v4  ;;  %8823 = vmatmul.mubr.bf16.gmra.mrb[172].mxu0 %v6601_v62  ;;  %v6580_v35 = vmax.f32 %v6544_v19, 0.0 }
 0x4c3   : > { %v6543_v60 = vadd.f32 %v8909_v23, %v10711_v4  ;;  %v8728_v54 = vpop.f32.mrb[28].mxu1  ;;  %v6578_v11 = vmax.f32 %v6542_v20, 0.0  ;;  %v7912_v20 = vld [vmem:[%s10228_s10 + $0x10] sm:$0xff]   ;;  %v6625_v23 = vld [vmem:[%s10228_s10 + $0xc] sm:$0xf] }
 0x4c4   : > { %v6581_v55 = vmax.f32 %v6545_v52, 0.0  ;;  %v8910_v40 = vadd.f32 %v8728_v54, %v11087_v0  ;;  %v5836_v47 = vpop.f32.mrb[29].mxu1  ;;  %v7913_v52 = vld [vmem:[%s10228_s10 + $0x18] sm:$0xff]   ;;  %v7828_v54 = vunpack.c.h.bf16 %v7912_v20 }
 0x4c5   : > { %v6579_v58 = vmax.f32 %v6543_v60, 0.0  ;;  %v8912_v61 = vadd.f32 %v5836_v47, %v11088_v36  ;;  %v8729_v37 = vpop.f32.mrb[30].mxu1  ;;  %v7827_v60 = vunpack.c.l.bf16 %v7912_v20  ;;  %v10821_v36 = vld [vmem:[#allocation16] ss:$0 sm:$0xff] }
 0x4c6   : > { %v8911_v15 = vadd.f32 %v8910_v40, %v11089_v2  ;;  %v8914_v6 = vadd.f32 %v8729_v37, %v11090_v33  ;;  %v5839_v22 = vpop.f32.mrb[31].mxu1  ;;  %v6603_v5 = vpack.c.bf16 %v6581_v55, %v6580_v35  ;;  %v6661_v35 = vunpack.c.l.bf16 %v6624_v51  ;;  %v7915_v37 = vld [vmem:[%s10228_s10 + $0x28] sm:$0xff]  }
 0x4c7   : > { %v8913_v27 = vadd.f32 %v8912_v61, %v11091_v28  ;;  %v8916_v63 = vadd.f32 %v5839_v22, %v11092_v30  ;;  %v6602_v31 = vpack.c.bf16 %v6579_v58, %v6578_v11  ;;  %v6662_v55 = vunpack.c.l.bf16 %v6625_v23  ;;  %v7914_v58 = vld [vmem:[%s10228_s10 + $0x20] sm:$0xff]  }
 0x4c8   : > { %v6548_v29 = vadd.f32 %v8911_v15, %v10711_v4  ;;  %v8915_v12 = vadd.f32 %v8914_v6, %v11093_v7  ;;  %v6971_v0 = vrot.slane %v7827_v60, 3  ;;  %v6973_v40 = vrot.slane %v7828_v54, 3 }
 0x4c9   : > { %v6546_v34 = vadd.f32 %v8913_v27, %v10711_v4  ;;  %v8917_v38 = vadd.f32 %v8916_v63, %v11094_v21  ;;  %8826 = vmatprep.mubr.bf16.mxu0 %v6602_v31  ;;  %v6968_v47 = vrot.slane %v6661_v35, 3  ;;  %v6969_v11 = vrot.slane %v6662_v55, 3  ;;  %v7918_v35 = vld [vmem:[%s10228_s10 + $0x40] sm:$0xff]  }
 0x4ca   : > { %v6549_v14 = vadd.f32 %v8915_v12, %v10711_v4  ;;  %8827 = vmatmul.mubr.bf16.gmra.mrb[176].mxu0 %v6603_v5  ;;  %v6584_v9 = vmax.f32 %v6548_v29, 0.0  ;;  %v6974_v15 = vsel %vm6122_vm3, %v6971_v0, %v6973_v40  ;;  %v7835_v33 = vunpack.c.l.bf16 %v7914_v58 }
 0x4cb   : > { %v6547_v25 = vadd.f32 %v8917_v38, %v10711_v4  ;;  %v6582_v56 = vmax.f32 %v6546_v34, 0.0  ;;  %v7836_v6 = vunpack.c.h.bf16 %v7914_v58  ;;  %v6970_v28 = vsel %vm6122_vm3, %v6968_v47, %v6969_v11  ;;  %v7919_v47 = vld [vmem:[%s10228_s10 + $0x48] sm:$0xff]  }
 0x4cc   : > { %v6585_v3 = vmax.f32 %v6549_v14, 0.0  ;;  %v7832_v27 = vunpack.c.h.bf16 %v7913_v52  ;;  %v7839_v29 = vunpack.c.l.bf16 %v7915_v37  ;;  %v6972_v21 = vsel %vm6122_vm3, %v6969_v11, %v6971_v0 }
 0x4cd   : > { %v6583_v17 = vmax.f32 %v6547_v25, 0.0  ;;  %v6979_v25 = vrot.slane %v7835_v33, 3 }
 0x4ce   : > { %v6605_v41 = vpack.c.bf16 %v6585_v3, %v6584_v9  ;;  %v6981_v9 = vrot.slane %v7836_v6, 3 }
 0x4cf   : > { %v6604_v18 = vpack.c.bf16 %v6583_v17, %v6582_v56  ;;  %v6977_v17 = vrot.slane %v7832_v27, 3 }
 0x4d1   : > { %8830 = vmatprep.mubr.bf16.mxu0 %v6604_v18 }
 0x4d2   : > { %8831 = vmatmul.mubr.bf16.gmra.mrb[180].mxu0 %v6605_v41  ;;  %v7916_v41 = vld [vmem:[%s10228_s10 + $0x30] sm:$0xff]  }
 0x4d7   : > { %v8784_v10 = vpop.f32.mrb[32].mxu1 }
 0x4d8   : > { %v8918_v13 = vadd.f32 %v8784_v10, %v11095_v1  ;;  %v6388_v59 = vpop.f32.mrb[33].mxu1  ;;  %v6983_v1 = vrot.slane %v7839_v29, 3 }
 0x4d9   : > { %v8919_v42 = vadd.f32 %v6388_v59, %v11096_v48  ;;  %v8785_v49 = vpop.f32.mrb[34].mxu1  ;;  %v7917_v59 = vld [vmem:[%s10228_s10 + $0x38] sm:$0xff]  }
 0x4da   : > { %v6552_v43 = vadd.f32 %v8918_v13, %v10711_v4  ;;  %v8920_v32 = vadd.f32 %v8785_v49, %v11097_v44  ;;  %v6391_v26 = vpop.f32.mrb[35].mxu1  ;;  %v6982_v49 = vsel %vm6122_vm3, %v6979_v25, %v6981_v9  ;;  %v7844_v44 = vunpack.c.h.bf16 %v7916_v41 }
 0x4db   : > { %v6550_v45 = vadd.f32 %v8919_v42, %v10711_v4  ;;  %v8921_v62 = vadd.f32 %v6391_v26, %v11098_v16  ;;  %v7840_v16 = vunpack.c.h.bf16 %v7915_v37  ;;  %v7851_v37 = vunpack.c.l.bf16 %v7918_v35 }
 0x4dc   : > { %v6553_v46 = vadd.f32 %v8920_v32, %v10711_v4  ;;  %v6588_v53 = vmax.f32 %v6552_v43, 0.0  ;;  %v7843_v43 = vunpack.c.l.bf16 %v7916_v41  ;;  %v6989_v23 = vrot.slane %v7844_v44, 3 }
 0x4dd   : > { %v6551_v57 = vadd.f32 %v8921_v62, %v10711_v4  ;;  %v6586_v50 = vmax.f32 %v6550_v45, 0.0  ;;  %v7831_v4 = vunpack.c.l.bf16 %v7913_v52  ;;  %v6985_v54 = vrot.slane %v7840_v16, 3 }
 0x4de   : > { %v6589_v39 = vmax.f32 %v6553_v46, 0.0  ;;  %v6987_v51 = vrot.slane %v7843_v43, 3 }
 0x4df   : > { %v6587_v19 = vmax.f32 %v6551_v57, 0.0  ;;  %v6975_v61 = vrot.slane %v7831_v4, 3  ;;  %v6984_v57 = vsel %vm6122_vm3, %v6981_v9, %v6983_v1  ;;  %v6986_v6 = vsel %vm6122_vm3, %v6983_v1, %v6985_v54 }
 0x4e0   : > { %v6607_v8 = vpack.c.bf16 %v6589_v39, %v6588_v53  ;;  %v7847_v53 = vunpack.c.l.bf16 %v7917_v59 }
 0x4e1   : > { %v6606_v24 = vpack.c.bf16 %v6587_v19, %v6586_v50  ;;  %v6976_v31 = vsel %vm6122_vm3, %v6973_v40, %v6975_v61  ;;  %v6978_v45 = vsel %vm6122_vm3, %v6975_v61, %v6977_v17  ;;  %v6990_v61 = vsel %vm6122_vm3, %v6987_v51, %v6989_v23 }
 0x4e2   : > { %v6991_v0 = vrot.slane %v7847_v53, 3 }
 0x4e3   : > { %8834 = vmatprep.mubr.bf16.mxu0 %v6606_v24 }
 0x4e4   : > { %8835 = vmatmul.mubr.bf16.gmra.mrb[184].mxu0 %v6607_v8  ;;  %v6980_v8 = vsel %vm6122_vm3, %v6977_v17, %v6979_v25  ;;  %v6992_v27 = vsel %vm6122_vm3, %v6989_v23, %v6991_v0 }
 0x56d   : > { %v8804_v2 = vpop.f32.mrb[152].mxu0 }
 0x56e   : > { %v6796_v22 = vadd.f32 %v8804_v2, %v10821_v36  ;;  %v6787_v5 = vpop.f32.mrb[153].mxu0  ;;  %v7852_v2 = vunpack.c.h.bf16 %v7918_v35 }
 0x56f   : > { %v6788_v30 = vadd.f32 %v10821_v36, %v6787_v5  ;;  %v8805_v63 = vpop.f32.mrb[154].mxu0 }
 0x570   : > { %v7079_v7 = vadd.f32 %v6974_v15, %v6796_v22  ;;  %v6799_v12 = vadd.f32 %v8805_v63, %v10821_v36  ;;  %v6790_v34 = vpop.f32.mrb[155].mxu0  ;;  %v7848_v22 = vunpack.c.h.bf16 %v7917_v59 }
 0x571   : > { %v7077_v38 = vadd.f32 %v6970_v28, %v6788_v30  ;;  %v6791_v14 = vadd.f32 %v10821_v36, %v6790_v34  ;;  %v7855_v30 = vunpack.c.l.bf16 %v7919_v47 }
 0x572   : > { %v7115_v3 = vmax.f32 %v7079_v7, 0.0  ;;  %v7080_v56 = vadd.f32 %v6976_v31, %v6799_v12  ;;  %v6988_v7 = vsel %vm6122_vm3, %v6985_v54, %v6987_v51  ;;  %v6993_v9 = vrot.slane %v7848_v22, 3 }
 0x573   : > { %v7113_v18 = vmax.f32 %v7077_v38, 0.0  ;;  %v7078_v10 = vadd.f32 %v6972_v21, %v6791_v14  ;;  %v6995_v21 = vrot.slane %v7851_v37, 3  ;;  %v6997_v38 = vrot.slane %v7852_v2, 3 }
 0x574   : > { %7151 = vst [vmem:[%s10834_s14 + $0x10] sm:$0xff] %v7115_v3  ;;  %v7116_v13 = vmax.f32 %v7080_v56, 0.0  ;;  %v7920_v3 = vld [vmem:[%s10228_s10 + $0x50] sm:$0xff]   ;;  %v6999_v41 = vrot.slane %v7855_v30, 3  ;;  %v6994_v44 = vsel %vm6122_vm3, %v6991_v0, %v6993_v9 }
 0x575   : > { %7149 = vst [vmem:[%s10834_s14] sm:$0xff] %v7113_v18  ;;  %v7114_v48 = vmax.f32 %v7078_v10, 0.0  ;;  %v8808_v42 = vpop.f32.mrb[156].mxu0  ;;  %v7921_v10 = vld [vmem:[%s10228_s10 + $0x58] sm:$0xff]   ;;  %v6998_v59 = vsel %vm6122_vm3, %v6995_v21, %v6997_v38 }
 0x576   : > { %7152 = vst [vmem:[%s10834_s14 + $0x18] sm:$0xff] %v7116_v13  ;;  %v6812_v32 = vadd.f32 %v8808_v42, %v10821_v36  ;;  %v6803_v26 = vpop.f32.mrb[157].mxu0  ;;  %v7860_v42 = vunpack.c.h.bf16 %v7920_v3  ;;  %v7000_v16 = vsel %vm6122_vm3, %v6997_v38, %v6999_v41 }
 0x577   : > { %7150 = vst [vmem:[%s10834_s14 + $0x8] sm:$0xff] %v7114_v48  ;;  %v6804_v62 = vadd.f32 %v10821_v36, %v6803_v26  ;;  %v8809_v46 = vpop.f32.mrb[158].mxu0  ;;  %v7859_v48 = vunpack.c.l.bf16 %v7920_v3 }
 0x578   : > { %v7083_v39 = vadd.f32 %v6982_v49, %v6812_v32  ;;  %v6815_v50 = vadd.f32 %v8809_v46, %v10821_v36  ;;  %v6806_v19 = vpop.f32.mrb[159].mxu0  ;;  %v7856_v32 = vunpack.c.h.bf16 %v7919_v47 }
 0x579   : > { %v7081_v24 = vadd.f32 %v6978_v45, %v6804_v62  ;;  %v6807_v20 = vadd.f32 %v10821_v36, %v6806_v19  ;;  %v7863_v62 = vunpack.c.l.bf16 %v7921_v10 }
 0x57a   : > { %v7119_v52 = vmax.f32 %v7083_v39, 0.0  ;;  %v7084_v60 = vadd.f32 %v6984_v57, %v6815_v50  ;;  %v6996_v39 = vsel %vm6122_vm3, %v6993_v9, %v6995_v21  ;;  %v7001_v23 = vrot.slane %v7856_v32, 3 }
 0x57b   : > { %v7117_v55 = vmax.f32 %v7081_v24, 0.0  ;;  %v7082_v4 = vadd.f32 %v6980_v8, %v6807_v20  ;;  %v7003_v8 = vrot.slane %v7859_v48, 3  ;;  %v7005_v24 = vrot.slane %v7860_v42, 3 }
 0x57c   : > { %7155 = vst [vmem:[%s10834_s14 + $0x30] sm:$0xff] %v7119_v52  ;;  %v7120_v40 = vmax.f32 %v7084_v60, 0.0  ;;  %v7922_v52 = vld [vmem:[%s10228_s10 + $0x60] sm:$0xff]   ;;  %v7007_v35 = vrot.slane %v7863_v62, 3  ;;  %v7002_v2 = vsel %vm6122_vm3, %v6999_v41, %v7001_v23 }
 0x57d   : > { %7153 = vst [vmem:[%s10834_s14 + $0x20] sm:$0xff] %v7117_v55  ;;  %v7118_v11 = vmax.f32 %v7082_v4, 0.0  ;;  %v8812_v58 = vpop.f32.mrb[160].mxu0  ;;  %v7923_v4 = vld [vmem:[%s10228_s10 + $0x68] sm:$0xff]   ;;  %v7006_v47 = vsel %vm6122_vm3, %v7003_v8, %v7005_v24 }
 0x57e   : > { %7156 = vst [vmem:[%s10834_s14 + $0x38] sm:$0xff] %v7120_v40  ;;  %v6828_v15 = vadd.f32 %v8812_v58, %v10821_v36  ;;  %v6819_v33 = vpop.f32.mrb[161].mxu0  ;;  %v7868_v58 = vunpack.c.h.bf16 %v7922_v52  ;;  %v7008_v22 = vsel %vm6122_vm3, %v7005_v24, %v7007_v35 }
 0x57f   : > { %7154 = vst [vmem:[%s10834_s14 + $0x28] sm:$0xff] %v7118_v11  ;;  %v6820_v5 = vadd.f32 %v10821_v36, %v6819_v33  ;;  %v8813_v28 = vpop.f32.mrb[162].mxu0  ;;  %v7867_v11 = vunpack.c.l.bf16 %v7922_v52 }
 0x580   : > { %v7087_v63 = vadd.f32 %v6990_v61, %v6828_v15  ;;  %v6831_v31 = vadd.f32 %v8813_v28, %v10821_v36  ;;  %v6822_v29 = vpop.f32.mrb[163].mxu0  ;;  %v7864_v15 = vunpack.c.h.bf16 %v7921_v10 }
 0x581   : > { %v7085_v12 = vadd.f32 %v6986_v6, %v6820_v5  ;;  %v6823_v34 = vadd.f32 %v10821_v36, %v6822_v29  ;;  %v7871_v5 = vunpack.c.l.bf16 %v7923_v4 }
 0x582   : > { %v7123_v14 = vmax.f32 %v7087_v63, 0.0  ;;  %v7088_v25 = vadd.f32 %v6992_v27, %v6831_v31  ;;  %v7004_v63 = vsel %vm6122_vm3, %v7001_v23, %v7003_v8  ;;  %v7009_v38 = vrot.slane %v7864_v15, 3 }
 0x583   : > { %v7121_v56 = vmax.f32 %v7085_v12, 0.0  ;;  %v7086_v17 = vadd.f32 %v6988_v7, %v6823_v34  ;;  %v7011_v7 = vrot.slane %v7867_v11, 3  ;;  %v7013_v12 = vrot.slane %v7868_v58, 3 }
 0x584   : > { %7159 = vst [vmem:[%s10834_s14 + $0x50] sm:$0xff] %v7123_v14  ;;  %v7124_v18 = vmax.f32 %v7088_v25, 0.0  ;;  %v7924_v14 = vld [vmem:[%s10228_s10 + $0x70] sm:$0xff]   ;;  %v7015_v3 = vrot.slane %v7871_v5, 3  ;;  %v7010_v42 = vsel %vm6122_vm3, %v7007_v35, %v7009_v38 }
 0x585   : > { %7157 = vst [vmem:[%s10834_s14 + $0x40] sm:$0xff] %v7121_v56  ;;  %v7122_v1 = vmax.f32 %v7086_v17, 0.0  ;;  %v8816_v13 = vpop.f32.mrb[164].mxu0  ;;  %v7925_v17 = vld [vmem:[%s10228_s10 + $0x78] sm:$0xff]   ;;  %v7014_v10 = vsel %vm6122_vm3, %v7011_v7, %v7013_v12 }
 0x586   : > { %7160 = vst [vmem:[%s10834_s14 + $0x58] sm:$0xff] %v7124_v18  ;;  %v6844_v49 = vadd.f32 %v8816_v13, %v10821_v36  ;;  %v6835_v43 = vpop.f32.mrb[165].mxu0  ;;  %v7876_v13 = vunpack.c.h.bf16 %v7924_v14  ;;  %v7016_v32 = vsel %vm6122_vm3, %v7013_v12, %v7015_v3 }
 0x587   : > { %7158 = vst [vmem:[%s10834_s14 + $0x48] sm:$0xff] %v7122_v1  ;;  %v6836_v26 = vadd.f32 %v10821_v36, %v6835_v43  ;;  %v8817_v45 = vpop.f32.mrb[166].mxu0  ;;  %v7875_v1 = vunpack.c.l.bf16 %v7924_v14 }
 0x588   : > { %v7091_v46 = vadd.f32 %v6998_v59, %v6844_v49  ;;  %v6847_v57 = vadd.f32 %v8817_v45, %v10821_v36  ;;  %v6838_v53 = vpop.f32.mrb[167].mxu0  ;;  %v7872_v49 = vunpack.c.h.bf16 %v7923_v4 }
 0x589   : > { %v7089_v50 = vadd.f32 %v6994_v44, %v6836_v26  ;;  %v6839_v19 = vadd.f32 %v10821_v36, %v6838_v53  ;;  %v7879_v26 = vunpack.c.l.bf16 %v7925_v17 }
 0x58a   : > { %v7127_v20 = vmax.f32 %v7091_v46, 0.0  ;;  %v7092_v51 = vadd.f32 %v7000_v16, %v6847_v57  ;;  %v7012_v46 = vsel %vm6122_vm3, %v7009_v38, %v7011_v7  ;;  %v7017_v24 = vrot.slane %v7872_v49, 3 }
 0x58b   : > { %v7125_v60 = vmax.f32 %v7089_v50, 0.0  ;;  %v7090_v54 = vadd.f32 %v6996_v39, %v6839_v19  ;;  %v7019_v39 = vrot.slane %v7875_v1, 3  ;;  %v7021_v50 = vrot.slane %v7876_v13, 3 }
 0x58c   : > { %7163 = vst [vmem:[%s10834_s14 + $0x70] sm:$0xff] %v7127_v20  ;;  %v7128_v55 = vmax.f32 %v7092_v51, 0.0  ;;  %v7926_v20 = vld [vmem:[%s10228_s10 + $0x80] sm:$0xff]   ;;  %v7023_v52 = vrot.slane %v7879_v26, 3  ;;  %v7018_v58 = vsel %vm6122_vm3, %v7015_v3, %v7017_v24 }
 0x58d   : > { %7161 = vst [vmem:[%s10834_s14 + $0x60] sm:$0xff] %v7125_v60  ;;  %v7126_v0 = vmax.f32 %v7090_v54, 0.0  ;;  %v8820_v40 = vpop.f32.mrb[168].mxu0  ;;  %v10908_v54 = vld [vmem:[%s10228_s10 + $0x88] sm:$0xff]   ;;  %v7022_v4 = vsel %vm6122_vm3, %v7019_v39, %v7021_v50 }
 0x58e   : > { %7164 = vst [vmem:[%s10834_s14 + $0x78] sm:$0xff] %v7128_v55  ;;  %v6860_v61 = vadd.f32 %v8820_v40, %v10821_v36  ;;  %v6851_v37 = vpop.f32.mrb[169].mxu0  ;;  %v7884_v40 = vunpack.c.h.bf16 %v7926_v20  ;;  %v7024_v15 = vsel %vm6122_vm3, %v7021_v50, %v7023_v52  ;;  %v7888_v50 = vunpack.c.h.bf16 %v10908_v54 }
 0x58f   : > { %7162 = vst [vmem:[%s10834_s14 + $0x68] sm:$0xff] %v7126_v0  ;;  %v6852_v33 = vadd.f32 %v10821_v36, %v6851_v37  ;;  %v8821_v6 = vpop.f32.mrb[170].mxu0  ;;  %v7883_v0 = vunpack.c.l.bf16 %v7926_v20 }
 0x590   : > { %v7095_v28 = vadd.f32 %v7006_v47, %v6860_v61  ;;  %v6863_v27 = vadd.f32 %v8821_v6, %v10821_v36  ;;  %v6854_v30 = vpop.f32.mrb[171].mxu0  ;;  %v7880_v61 = vunpack.c.h.bf16 %v7925_v17  ;;  %v7033_v20 = vrot.slane %v7888_v50, 3 }
 0x591   : > { %v7093_v31 = vadd.f32 %v7002_v2, %v6852_v33  ;;  %v6855_v29 = vadd.f32 %v10821_v36, %v6854_v30  ;;  %v7887_v33 = vunpack.c.l.bf16 %v10908_v54 }
 0x592   : > { %v7131_v34 = vmax.f32 %v7095_v28, 0.0  ;;  %v7096_v21 = vadd.f32 %v7008_v22, %v6863_v27  ;;  %v7020_v28 = vsel %vm6122_vm3, %v7017_v24, %v7019_v39  ;;  %v7025_v12 = vrot.slane %v7880_v61, 3 }
 0x593   : > { %v7129_v25 = vmax.f32 %v7093_v31, 0.0  ;;  %v7094_v9 = vadd.f32 %v7004_v63, %v6855_v29  ;;  %v7027_v63 = vrot.slane %v7883_v0, 3  ;;  %v7029_v31 = vrot.slane %v7884_v40, 3 }
 0x594   : > { %7167 = vst [vmem:[%s10834_s14 + $0x90] sm:$0xff] %v7131_v34  ;;  %v7132_v56 = vmax.f32 %v7096_v21, 0.0  ;;  %v7031_v38 = vrot.slane %v7887_v33, 3 }
 0x595   : > { %7165 = vst [vmem:[%s10834_s14 + $0x80] sm:$0xff] %v7129_v25  ;;  %v7130_v41 = vmax.f32 %v7094_v9, 0.0  ;;  %v8824_v18 = vpop.f32.mrb[172].mxu0  ;;  %v7030_v3 = vsel %vm6122_vm3, %v7027_v63, %v7029_v31 }
 0x596   : > { %7168 = vst [vmem:[%s10834_s14 + $0x98] sm:$0xff] %v7132_v56  ;;  %v6876_v59 = vadd.f32 %v8824_v18, %v10821_v36  ;;  %v6867_v48 = vpop.f32.mrb[173].mxu0  ;;  %v7032_v1 = vsel %vm6122_vm3, %v7029_v31, %v7031_v38 }
 0x597   : > { %7166 = vst [vmem:[%s10834_s14 + $0x88] sm:$0xff] %v7130_v41  ;;  %v6868_v43 = vadd.f32 %v10821_v36, %v6867_v48  ;;  %v8825_v44 = vpop.f32.mrb[174].mxu0  ;;  %v7026_v41 = vsel %vm6122_vm3, %v7023_v52, %v7025_v12 }
 0x598   : > { %v7099_v45 = vadd.f32 %v7014_v10, %v6876_v59  ;;  %v6879_v16 = vadd.f32 %v8825_v44, %v10821_v36  ;;  %v6870_v62 = vpop.f32.mrb[175].mxu0 }
 0x599   : > { %v7097_v57 = vadd.f32 %v7010_v42, %v6868_v43  ;;  %v6871_v53 = vadd.f32 %v10821_v36, %v6870_v62  ;;  %v7028_v42 = vsel %vm6122_vm3, %v7025_v12, %v7027_v63  ;;  %v7928_v62 = vld [vmem:[%s10228_s10 + $0x90] sm:$0xff]  }
 0x59a   : > { %v7135_v19 = vmax.f32 %v7099_v45, 0.0  ;;  %v7100_v8 = vadd.f32 %v7016_v32, %v6879_v16  ;;  %v7892_v39 = vunpack.c.h.bf16 %v7928_v62 }
 0x59b   : > { %v7133_v51 = vmax.f32 %v7097_v57, 0.0  ;;  %v7098_v23 = vadd.f32 %v7012_v46, %v6871_v53  ;;  %v6660_v57 = vld [vmem:[%s10228_s10 + $0x98] sm:$0x3]  ;;  %v7891_v53 = vunpack.c.l.bf16 %v7928_v62 }
 0x59c   : > { %7171 = vst [vmem:[%s10834_s14 + $0xb0] sm:$0xff] %v7135_v19  ;;  %v7136_v60 = vmax.f32 %v7100_v8, 0.0  ;;  %v6697_v19 = vunpack.c.l.bf16 %v6660_v57  ;;  %v7037_v24 = vrot.slane %v7892_v39, 3 }
 0x59d   : > { %7169 = vst [vmem:[%s10834_s14 + $0xa0] sm:$0xff] %v7133_v51  ;;  %v7134_v35 = vmax.f32 %v7098_v23, 0.0  ;;  %v8828_v55 = vpop.f32.mrb[176].mxu0  ;;  %v7035_v8 = vrot.slane %v7891_v53, 3 }
 0x59e   : > { %7172 = vst [vmem:[%s10834_s14 + $0xb8] sm:$0xff] %v7136_v60  ;;  %v6892_v47 = vadd.f32 %v8828_v55, %v10821_v36  ;;  %v6883_v11 = vpop.f32.mrb[177].mxu0  ;;  %v7039_v51 = vrot.slane %v6697_v19, 3  ;;  %v7034_v55 = vsel %vm6122_vm3, %v7031_v38, %v7033_v20 }
 0x59f   : > { %7170 = vst [vmem:[%s10834_s14 + $0xa8] sm:$0xff] %v7134_v35  ;;  %v6884_v37 = vadd.f32 %v10821_v36, %v6883_v11  ;;  %v8829_v2 = vpop.f32.mrb[178].mxu0  ;;  %v7038_v52 = vsel %vm6122_vm3, %v7035_v8, %v7037_v24 }
 0x5a0   : > { %v7103_v6 = vadd.f32 %v7022_v4, %v6892_v47  ;;  %v6895_v22 = vadd.f32 %v8829_v2, %v10821_v36  ;;  %v6886_v5 = vpop.f32.mrb[179].mxu0  ;;  %v7040_v54 = vsel %vm6122_vm3, %v7037_v24, %v7039_v51 }
 0x5a1   : > { %v7101_v27 = vadd.f32 %v7018_v58, %v6884_v37  ;;  %v6887_v30 = vadd.f32 %v10821_v36, %v6886_v5  ;;  %v7036_v58 = vsel %vm6122_vm3, %v7033_v20, %v7035_v8 }
 0x5a2   : > { %v7139_v29 = vmax.f32 %v7103_v6, 0.0  ;;  %v7104_v7 = vadd.f32 %v7024_v15, %v6895_v22 }
 0x5a3   : > { %v7137_v34 = vmax.f32 %v7101_v27, 0.0  ;;  %v7102_v21 = vadd.f32 %v7020_v28, %v6887_v30 }
 0x5a4   : > { %7175 = vst [vmem:[%s10834_s14 + $0xd0] sm:$0xff] %v7139_v29  ;;  %v7140_v14 = vmax.f32 %v7104_v7, 0.0 }
 0x5a5   : > { %7173 = vst [vmem:[%s10834_s14 + $0xc0] sm:$0xff] %v7137_v34  ;;  %v7138_v25 = vmax.f32 %v7102_v21, 0.0  ;;  %v8832_v9 = vpop.f32.mrb[180].mxu0 }
 0x5a6   : > { %7176 = vst [vmem:[%s10834_s14 + $0xd8] sm:$0xff] %v7140_v14  ;;  %v6908_v56 = vadd.f32 %v8832_v9, %v10821_v36  ;;  %v6899_v17 = vpop.f32.mrb[181].mxu0 }
 0x5a7   : > { %7174 = vst [vmem:[%s10834_s14 + $0xc8] sm:$0xff] %v7138_v25  ;;  %v6900_v18 = vadd.f32 %v10821_v36, %v6899_v17  ;;  %v8833_v10 = vpop.f32.mrb[182].mxu0 }
 0x5a8   : > { %v7107_v13 = vadd.f32 %v7030_v3, %v6908_v56  ;;  %v6911_v59 = vadd.f32 %v8833_v10, %v10821_v36  ;;  %v6902_v48 = vpop.f32.mrb[183].mxu0 }
 0x5a9   : > { %v7105_v49 = vadd.f32 %v7026_v41, %v6900_v18  ;;  %v6903_v43 = vadd.f32 %v10821_v36, %v6902_v48 }
 0x5aa   : > { %v7143_v44 = vmax.f32 %v7107_v13, 0.0  ;;  %v7108_v32 = vadd.f32 %v7032_v1, %v6911_v59 }
 0x5ab   : > { %v7141_v26 = vmax.f32 %v7105_v49, 0.0  ;;  %v7106_v45 = vadd.f32 %v7028_v42, %v6903_v43 }
 0x5ac   : > { %7179 = vst [vmem:[%s10834_s14 + $0xf0] sm:$0xff] %v7143_v44  ;;  %v7144_v16 = vmax.f32 %v7108_v32, 0.0 }
 0x5ad   : > { %7177 = vst [vmem:[%s10834_s14 + $0xe0] sm:$0xff] %v7141_v26  ;;  %v7142_v46 = vmax.f32 %v7106_v45, 0.0 }
 0x5ae   : > { %7180 = vst [vmem:[%s10834_s14 + $0xf8] sm:$0xff] %v7144_v16 }
 0x5af   : > { %7178 = vst [vmem:[%s10834_s14 + $0xe8] sm:$0xff] %v7142_v46 }
 0x5b7   : > { %v8836_v23 = vpop.f32.mrb[184].mxu0 }
 0x5b8   : > { %v6924_v60 = vadd.f32 %v8836_v23, %v10821_v36  ;;  %v6915_v35 = vpop.f32.mrb[185].mxu0 }
 0x5b9   : > { %v6916_v4 = vadd.f32 %v10821_v36, %v6915_v35  ;;  %v8837_v0 = vpop.f32.mrb[186].mxu0 }
 0x5ba   : > { %v7111_v40 = vadd.f32 %v7038_v52, %v6924_v60  ;;  %v6927_v47 = vadd.f32 %v8837_v0, %v10821_v36  ;;  %v6918_v11 = vpop.f32.mrb[187].mxu0 }
 0x5bb   : > { %v7109_v61 = vadd.f32 %v7034_v55, %v6916_v4  ;;  %v6919_v37 = vadd.f32 %v10821_v36, %v6918_v11 }
 0x5bc   : > { %v7147_v2 = vmax.f32 %v7111_v40, 0.0  ;;  %v7112_v15 = vadd.f32 %v7040_v54, %v6927_v47 }
 0x5bd   : > { %v7145_v33 = vmax.f32 %v7109_v61, 0.0  ;;  %v7110_v6 = vadd.f32 %v7036_v58, %v6919_v37 }
 0x5be   : > { %7183 = vst [vmem:[%s10834_s14 + $0x110] sm:$0xff] %v7147_v2  ;;  %v7148_v22 = vmax.f32 %v7112_v15, 0.0 }
 0x5bf   : > { %7181 = vst [vmem:[%s10834_s14 + $0x100] sm:$0xff] %v7145_v33  ;;  %v7146_v5 = vmax.f32 %v7110_v6, 0.0 }
 0x5c0   : > { %7184 = vst [vmem:[%s10834_s14 + $0x118] sm:$0xff] %v7148_v22 }
 0x5c1   : > { %7182 = vst [vmem:[%s10834_s14 + $0x108] sm:$0xff] %v7146_v5 }
 0x5c2   : > { %9802 = shalt.err (!%p9799_p10)
}
 0x5c3   : > { %s9803_s13 = scalar_lea.hbm %s10955_s18, 4608  ;;  %s9807_s12 = scalar_lea.hbm %s11012_s8, 9216 }
 0x5c4   : > { %p9804_p11 = scmp.ne.s32.totalorder %s10955_s18, %s9803_s13  ;;  %p9808_p9 = scmp.lt.u32.totalorder %s10955_s18, %s11012_s8 }
 0x5c5   : > { %p9809_p7 = scmp.lt.u32.totalorder %s9807_s12, %s9803_s13  ;;  %p9811_p12 = scmp.lt.u32.totalorder %s9803_s13, %s10955_s18 }
 0x5c6   : > { %p9805_p3 = pnand %p9804_p11, %p11099_p1 }
 0x5c7   : > { %p9810_p4 = por %p9809_p7, %p9808_p9 }
 0x5c8   : > { %p9806_p5 = pneg %p9805_p3 }
 0x5c9   : > { %p9812_p13 = por %p9811_p12, %p9810_p4 }
 0x5cb   : > { %p9813_p0 = pnand %p9812_p13, %p9806_p5 }
 0x5cd   : > { %9816 = shalt.err (!%p9813_p0)
}
 0x5ce   : > { %s9889_s22 = smov 128   ;;  %s9890_s24 = smov 8  }
 0x5cf   : > { %9177 = dma.vmem_to_hbm [thread:$0]  (%p11099_p1), %s10958_s20, 4608, %s10955_s18, %s7186_s11, %s9889_s22, %s9889_s22, %s9890_s24  }
 0x5d0 PF: > { %s7214_s23 = sand.u32 1, %s9859_s27   ;;  %p11100_p2 = scmp.ne.s32.totalorder %s11029_s16, 0 }
 0x5d1   : > { %p11101_p8 = scmp.ge.s32.totalorder %s9871_s30, 2  ;;  %s7215_s1 = scalar_lea.sflag [#allocation6], %s7214_s23 }
 0x5d3   : > { %p9206_p6 = pnand %p11101_p8, %p11100_p2 }
 0x5d5   : > { %9854 = dma.done.wait (!%p9206_p6), %s7215_s1, 4608  }
 0x5d6   : > { %9856 = vsyncadd (!%p9206_p6), %s7215_s1, 4294962688  ;;  %p25_p10 = scmp.ge.s32.totalorder %s10148_s15, 4   ;;  %s11102_s27 = smov %s9863_s28 }
 0x5d7   : > { %s11103_s28 = smov %s9867_s29  ;;  %s11104_s29 = smov %s10160_s25 }
 0x5d8   : > { %s11105_s30 = smov %s10148_s15  ;;  %27 = sbr.rel (!%p25_p10) target bundleno = 12 (0xc), region = 133 }
 0x5df   :  { %7220 = vsyncpa [#allocation5], 1 }
 0x5e0   :  { %7222 = vsyncpa [#allocation5 + $0x1], 1 }
 0x5e1   :  { %7223 = vsyncpa [#allocation8], 1 }
 0x5e2   :  { %7224 = vsyncpa [#allocation11], 1 }
 0x5e3   :  { %7225 = vsyncpa [#allocation14], 1 }
 0x5e4   :  { %7226 = vsyncpa [#allocation17], 1 }
 0x5e5   :  { %7227 = vsyncpa [#allocation6], 1 }
 0x5e6   :  { %7229 = vsyncpa [#allocation6 + $0x1], 1 }

</bundles_post_ra>
